<compile_context>
chip_gen: v6e
topology: v6e:2x2x1
jax: 0.10.0
libtpu: 0.0.40
codegen_flags: <defaults>
</compile_context>

<pallas_src>
import functools

import jax
import jax.numpy as jnp
import numpy as np
from jax.experimental import pallas as pl
from jax.experimental.pallas import tpu as pltpu

C_IN, C1, C2 = 8, 32, 64   # channel sizes from the module definition
KH, KW = 3, 3


def cost_net_kernel(x_ref, sz_ref, w1_ref, b1_ref, w2_ref, b2_ref,
                    fwc_ref, fws_ref, fb_ref, o_ref, *, BT, H, W):
    """Forward for one batch tile (BT elements) per grid step.

    x_ref  : (BT, H, W*C_IN)    bf16  NHWC input with (W,C) lane-flattened
    sz_ref : (BT, 1)            f32   scalar feature
    w1_ref : (3, W*C_IN, W*C1)  bf16  conv1 banded weights (one per kh)
    b1_ref : (1, W*C1)          f32   conv1 bias tiled over W
    w2_ref : (3, W*C1, W*C2)    bf16  conv2 banded weights (one per kh)
    b2_ref : (1, W*C2)          f32   conv2 bias tiled over W
    fwc_ref: (1, W*C2)          f32   fc conv weights tiled over W, /(H*W)
    fws_ref: (1, 1)             f32   fc weight for the sz feature (SMEM)
    fb_ref : (1, 1)             f32   fc bias (SMEM)
    o_ref  : (BT, 1)            f32   output
    """
    M = BT * H

    def conv3x3(inp2d, wband_ref, b_ref, n_out):
        # inp2d: (M, K) bf16.  wband_ref[kh]: (K, n_out) banded weight that
        # applies all three kw taps (incl. the W-boundary zero padding) at once.
        y0 = jnp.dot(inp2d, wband_ref[0], preferred_element_type=jnp.float32)
        y1 = jnp.dot(inp2d, wband_ref[1], preferred_element_type=jnp.float32)
        y2 = jnp.dot(inp2d, wband_ref[2], preferred_element_type=jnp.float32)
        y0 = y0.reshape(BT, H, n_out)
        y1 = y1.reshape(BT, H, n_out)
        y2 = y2.reshape(BT, H, n_out)
        # out[h] = y0[h-1] + y1[h] + y2[h+1]   (rows outside [0,H) are zero)
        zrow = jnp.zeros((BT, 1, n_out), jnp.float32)
        acc = y1 + jnp.concatenate([zrow, y0[:, :H - 1, :]], axis=1)
        acc = acc + jnp.concatenate([y2[:, 1:, :], zrow], axis=1)
        return jnp.maximum(acc + b_ref[...].reshape(1, 1, n_out), 0.0)

    # ---- conv1 + ReLU: 3 lane-dense matmuls (K = W*C_IN = 128), no im2col ----
    x2d = x_ref[...].reshape(M, W * C_IN)
    h1 = conv3x3(x2d, w1_ref, b1_ref, W * C1)          # (BT, H, W*C1) f32

    # ---- conv2 + ReLU: bf16 only at the matmul operand boundary ----
    h1_2d = h1.astype(jnp.bfloat16).reshape(M, W * C1)
    h2 = conv3x3(h1_2d, w2_ref, b2_ref, W * C2)        # (BT, H, W*C2) f32

    # ---- AdaptiveAvgPool2d(1) + fc: pool over H first, then weighted reduce ----
    s = jnp.sum(h2, axis=1)                            # (BT, W*C2)
    conv_term = jnp.sum(s * fwc_ref[...], axis=1, keepdims=True)   # (BT, 1)
    o_ref[...] = conv_term + sz_ref[...] * fws_ref[0, 0] + fb_ref[0, 0]


def _band_weights(w_hwio, width):
    """(3,3,Cin,Cout) -> (3, width*Cin, width*Cout) banded per-kh weights.

    band[kh][(w+kw-1)*Cin + ci, w*Cout + co] = w_hwio[kh, kw, ci, co];
    taps falling outside [0,width) are dropped == SAME zero padding in W.
    """
    eyes = jnp.stack([jnp.eye(width, k=1 - kw, dtype=w_hwio.dtype)
                      for kw in range(KW)])                        # (3, W, W)
    band = jnp.einsum("qhw,kqio->khiwo", eyes, w_hwio)
    cin, cout = w_hwio.shape[2], w_hwio.shape[3]
    return band.reshape(KH, width * cin, width * cout)


def cost_net_forward(x_nchw, sz, params):
    """Layout glue + weight prep in JAX; one gridded pallas_call for the math."""
    B, C, H, W = x_nchw.shape
    assert C == C_IN
    # Batch tile: whole batch if small, else 8 per grid step (bounds VMEM per
    # step and shards the batch across TensorCores on v7x).
    if B <= 8:
        BT = B
    else:
        assert B % 8 == 0, "pad the batch to a multiple of 8"
        BT = 8

    # NCHW -> (B, H, W*C) with bf16 cast (single small fused XLA pass).
    # TODO(synk): fold this transpose into the kernel via strided reads if this
    # extra HBM pass ever matters for large inputs.
    x_r = jnp.transpose(x_nchw, (0, 2, 3, 1)).reshape(B, H, W * C_IN)
    x_r = x_r.astype(jnp.bfloat16)

    # Banded conv weights / tiled biases / tiled + prescaled fc weights.
    # (One-time weight prep; hoist out of the step function in real use.)
    w1b = _band_weights(params["w1"], W).astype(jnp.bfloat16)   # (3, W*8,  W*32)
    w2b = _band_weights(params["w2"], W).astype(jnp.bfloat16)   # (3, W*32, W*64)
    b1r = jnp.tile(params["b1"].reshape(1, C1), (1, W))         # (1, W*32)
    b2r = jnp.tile(params["b2"].reshape(1, C2), (1, W))         # (1, W*64)
    fwcr = jnp.tile(params["fcw_conv"].reshape(1, C2), (1, W)) * (1.0 / (H * W))

    smem = pl.BlockSpec(memory_space=pltpu.MemorySpace.SMEM)

    return pl.pallas_call(
        functools.partial(cost_net_kernel, BT=BT, H=H, W=W),
        out_shape=jax.ShapeDtypeStruct((B, 1), jnp.float32),
        grid=(B // BT,),
        in_specs=[
            pl.BlockSpec((BT, H, W * C_IN), lambda i: (i, 0, 0)),      # x
            pl.BlockSpec((BT, 1), lambda i: (i, 0)),                   # sz
            pl.BlockSpec((KH, W * C_IN, W * C1), lambda i: (0, 0, 0)),  # w1 band
            pl.BlockSpec((1, W * C1), lambda i: (0, 0)),               # b1 row
            pl.BlockSpec((KH, W * C1, W * C2), lambda i: (0, 0, 0)),   # w2 band
            pl.BlockSpec((1, W * C2), lambda i: (0, 0)),               # b2 row
            pl.BlockSpec((1, W * C2), lambda i: (0, 0)),               # fc conv row
            smem,                                                       # fc sz weight
            smem,                                                       # fc bias
        ],
        out_specs=pl.BlockSpec((BT, 1), lambda i: (i, 0)),
        compiler_params=pltpu.CompilerParams(
            dimension_semantics=("parallel",),
            vmem_limit_bytes=32 * 1024 * 1024),
    )(x_r, sz.astype(jnp.float32), w1b, b1r, w2b, b2r, fwcr,
      params["fcw_sz"], params["fcb"])


def reference_forward(x_nchw, sz, params):
    """Pure-JAX (f32) reference of the PyTorch forward, for validation."""
    x = jnp.transpose(x_nchw, (0, 2, 3, 1)).astype(jnp.float32)
    dn = ("NHWC", "HWIO", "NHWC")
    h = jax.lax.conv_general_dilated(x, params["w1"], (1, 1), "SAME",
                                     dimension_numbers=dn) + params["b1"][0]
    h = jax.nn.relu(h)
    h = jax.lax.conv_general_dilated(h, params["w2"], (1, 1), "SAME",
                                     dimension_numbers=dn) + params["b2"][0]
    h = jax.nn.relu(h)
    pooled = jnp.mean(h, axis=(1, 2))                        # (B, 64)
    feat = jnp.concatenate([pooled, sz], axis=1)             # (B, 65)
    w = jnp.concatenate([params["fcw_conv"], params["fcw_sz"]], axis=1)  # (1, 65)
    return feat @ w.T + params["fcb"][0, 0]


def init_params(key):
    k1, k2, k3, k4, k5, k6 = jax.random.split(key, 6)
    return {
        "w1": jax.random.normal(k1, (3, 3, C_IN, C1), jnp.float32) * 0.05,
        "b1": jax.random.normal(k2, (1, C1), jnp.float32) * 0.05,
        "w2": jax.random.normal(k3, (3, 3, C1, C2), jnp.float32) * 0.05,
        "b2": jax.random.normal(k4, (1, C2), jnp.float32) * 0.05,
        "fcw_conv": jax.random.normal(k5, (1, C2), jnp.float32) * 0.05,
        "fcw_sz": jax.random.normal(k6, (1, 1), jnp.float32) * 0.05,
        "fcb": jnp.full((1, 1), 0.01, jnp.float32),
    }


if __name__ == "__main__":
    key = jax.random.PRNGKey(0)
    kx, ks, kp = jax.random.split(key, 3)

    B, H, W = 2, 16, 16
    x = jax.random.normal(kx, (B, C_IN, H, W), jnp.float32)   # NCHW like PyTorch
    sz = jax.random.normal(ks, (B, 1), jnp.float32)
    params = init_params(kp)

    fwd = jax.jit(cost_net_forward)
    out = jax.block_until_ready(fwd(x, sz, params))
    ref = jax.block_until_ready(reference_forward(x, sz, params))

    assert out.shape == (B, 1)
    # bf16 matmul operands with f32 accumulation -> slightly looser tolerance.
    np.testing.assert_allclose(np.asarray(out), np.asarray(ref),
                               rtol=2e-2, atol=2e-2)
    print("KERNEL_OK")
</pallas_src>

<mosaic_0001>
module attributes {stable_mosaic.version = 11 : i64} {
  func.func @cost_net_kernel(%arg0: i32, %arg1: memref<2x16x128xbf16, #tpu.memory_space<vmem>>, %arg2: memref<2x1xf32, #tpu.memory_space<vmem>>, %arg3: memref<3x128x512xbf16, #tpu.memory_space<vmem>>, %arg4: memref<1x512xf32, #tpu.memory_space<vmem>>, %arg5: memref<3x512x1024xbf16, #tpu.memory_space<vmem>>, %arg6: memref<1x1024xf32, #tpu.memory_space<vmem>>, %arg7: memref<1x1024xf32, #tpu.memory_space<vmem>>, %arg8: memref<1x1xf32, #tpu.memory_space<smem>>, %arg9: memref<1x1xf32, #tpu.memory_space<smem>>, %arg10: memref<2x1xf32, #tpu.memory_space<vmem>>) attributes {dimension_semantics = [#tpu.dimension_semantics<parallel>], iteration_bounds = array<i64: 1>, scalar_prefetch = 0 : i64, scratch_operands = 0 : i64, tpu.core_type = #tpu.core_type<tc>, window_params = [{transform_indices = @transform_0, window_bounds = array<i64: 2, 16, 128>}, {transform_indices = @transform_1, window_bounds = array<i64: 2, 1>}, {pipeline_mode = #tpu.pipeline_mode<synchronous>, transform_indices = @transform_2, window_bounds = array<i64: 3, 128, 512>}, {pipeline_mode = #tpu.pipeline_mode<synchronous>, transform_indices = @transform_3, window_bounds = array<i64: 1, 512>}, {pipeline_mode = #tpu.pipeline_mode<synchronous>, transform_indices = @transform_4, window_bounds = array<i64: 3, 512, 1024>}, {pipeline_mode = #tpu.pipeline_mode<synchronous>, transform_indices = @transform_5, window_bounds = array<i64: 1, 1024>}, {pipeline_mode = #tpu.pipeline_mode<synchronous>, transform_indices = @transform_6, window_bounds = array<i64: 1, 1024>}, {transform_indices = @transform_7, window_bounds = array<i64: 1, 1>}, {transform_indices = @transform_8, window_bounds = array<i64: 1, 1>}, {transform_indices = @transform_9, window_bounds = array<i64: 2, 1>}]} {
    %c0 = arith.constant 0 : index
    %c0_0 = arith.constant 0 : index
    %c0_1 = arith.constant 0 : index
    %0 = vector.load %arg1[%c0, %c0_0, %c0_1] : memref<2x16x128xbf16, #tpu.memory_space<vmem>>, vector<2x16x128xbf16>
    %1 = vector.shape_cast %0 : vector<2x16x128xbf16> to vector<32x128xbf16>
    %c0_2 = arith.constant 0 : index
    %c0_3 = arith.constant 0 : index
    %c0_4 = arith.constant 0 : index
    %2 = vector.load %arg3[%c0_2, %c0_3, %c0_4] : memref<3x128x512xbf16, #tpu.memory_space<vmem>>, vector<1x128x512xbf16>
    %3 = vector.shape_cast %2 : vector<1x128x512xbf16> to vector<128x512xbf16>
    %cst = arith.constant dense<0.000000e+00> : vector<32x512xf32>
    %4 = tpu.matmul %1, %3, %cst {dimension_numbers = #tpu.dot_dimension_numbers<[1], [0], [0], [1], [0, 0, 1, 1], [], []>} : vector<32x128xbf16>, vector<128x512xbf16>, vector<32x512xf32> -> vector<32x512xf32>
    %c1 = arith.constant 1 : index
    %c0_5 = arith.constant 0 : index
    %c0_6 = arith.constant 0 : index
    %5 = vector.load %arg3[%c1, %c0_5, %c0_6] : memref<3x128x512xbf16, #tpu.memory_space<vmem>>, vector<1x128x512xbf16>
    %6 = vector.shape_cast %5 : vector<1x128x512xbf16> to vector<128x512xbf16>
    %cst_7 = arith.constant dense<0.000000e+00> : vector<32x512xf32>
    %7 = tpu.matmul %1, %6, %cst_7 {dimension_numbers = #tpu.dot_dimension_numbers<[1], [0], [0], [1], [0, 0, 1, 1], [], []>} : vector<32x128xbf16>, vector<128x512xbf16>, vector<32x512xf32> -> vector<32x512xf32>
    %c2 = arith.constant 2 : index
    %c0_8 = arith.constant 0 : index
    %c0_9 = arith.constant 0 : index
    %8 = vector.load %arg3[%c2, %c0_8, %c0_9] : memref<3x128x512xbf16, #tpu.memory_space<vmem>>, vector<1x128x512xbf16>
    %9 = vector.shape_cast %8 : vector<1x128x512xbf16> to vector<128x512xbf16>
    %cst_10 = arith.constant dense<0.000000e+00> : vector<32x512xf32>
    %10 = tpu.matmul %1, %9, %cst_10 {dimension_numbers = #tpu.dot_dimension_numbers<[1], [0], [0], [1], [0, 0, 1, 1], [], []>} : vector<32x128xbf16>, vector<128x512xbf16>, vector<32x512xf32> -> vector<32x512xf32>
    %11 = vector.shape_cast %4 : vector<32x512xf32> to vector<2x16x512xf32>
    %12 = vector.shape_cast %7 : vector<32x512xf32> to vector<2x16x512xf32>
    %13 = vector.shape_cast %10 : vector<32x512xf32> to vector<2x16x512xf32>
    %cst_11 = arith.constant 0.000000e+00 : f32
    %14 = vector.broadcast %cst_11 : f32 to vector<2x1x512xf32>
    %15 = vector.extract_strided_slice %11 {offsets = [0, 0, 0], sizes = [2, 15, 512], strides = [1, 1, 1]} : vector<2x16x512xf32> to vector<2x15x512xf32>
    %16 = tpu.concatenate %14, %15 in 1 : vector<2x1x512xf32>, vector<2x15x512xf32> -> vector<2x16x512xf32>
    %17 = arith.addf %12, %16 : vector<2x16x512xf32>
    %18 = vector.extract_strided_slice %13 {offsets = [0, 1, 0], sizes = [2, 15, 512], strides = [1, 1, 1]} : vector<2x16x512xf32> to vector<2x15x512xf32>
    %19 = tpu.concatenate %18, %14 in 1 : vector<2x15x512xf32>, vector<2x1x512xf32> -> vector<2x16x512xf32>
    %20 = arith.addf %17, %19 : vector<2x16x512xf32>
    %c0_12 = arith.constant 0 : index
    %c0_13 = arith.constant 0 : index
    %21 = vector.load %arg4[%c0_12, %c0_13] : memref<1x512xf32, #tpu.memory_space<vmem>>, vector<1x512xf32>
    %22 = vector.shape_cast %21 : vector<1x512xf32> to vector<1x1x512xf32>
    %23 = vector.broadcast %22 : vector<1x1x512xf32> to vector<2x16x512xf32>
    %24 = arith.addf %20, %23 : vector<2x16x512xf32>
    %cst_14 = arith.constant 0.000000e+00 : f32
    %25 = vector.broadcast %cst_14 : f32 to vector<2x16x512xf32>
    %26 = arith.maximumf %24, %25 : vector<2x16x512xf32>
    %27 = arith.truncf %26 : vector<2x16x512xf32> to vector<2x16x512xbf16>
    %28 = vector.shape_cast %27 : vector<2x16x512xbf16> to vector<32x512xbf16>
    %c0_15 = arith.constant 0 : index
    %c0_16 = arith.constant 0 : index
    %c0_17 = arith.constant 0 : index
    %29 = vector.load %arg5[%c0_15, %c0_16, %c0_17] : memref<3x512x1024xbf16, #tpu.memory_space<vmem>>, vector<1x512x1024xbf16>
    %30 = vector.shape_cast %29 : vector<1x512x1024xbf16> to vector<512x1024xbf16>
    %cst_18 = arith.constant dense<0.000000e+00> : vector<32x1024xf32>
    %31 = tpu.matmul %28, %30, %cst_18 {dimension_numbers = #tpu.dot_dimension_numbers<[1], [0], [0], [1], [0, 0, 1, 1], [], []>} : vector<32x512xbf16>, vector<512x1024xbf16>, vector<32x1024xf32> -> vector<32x1024xf32>
    %c1_19 = arith.constant 1 : index
    %c0_20 = arith.constant 0 : index
    %c0_21 = arith.constant 0 : index
    %32 = vector.load %arg5[%c1_19, %c0_20, %c0_21] : memref<3x512x1024xbf16, #tpu.memory_space<vmem>>, vector<1x512x1024xbf16>
    %33 = vector.shape_cast %32 : vector<1x512x1024xbf16> to vector<512x1024xbf16>
    %cst_22 = arith.constant dense<0.000000e+00> : vector<32x1024xf32>
    %34 = tpu.matmul %28, %33, %cst_22 {dimension_numbers = #tpu.dot_dimension_numbers<[1], [0], [0], [1], [0, 0, 1, 1], [], []>} : vector<32x512xbf16>, vector<512x1024xbf16>, vector<32x1024xf32> -> vector<32x1024xf32>
    %c2_23 = arith.constant 2 : index
    %c0_24 = arith.constant 0 : index
    %c0_25 = arith.constant 0 : index
    %35 = vector.load %arg5[%c2_23, %c0_24, %c0_25] : memref<3x512x1024xbf16, #tpu.memory_space<vmem>>, vector<1x512x1024xbf16>
    %36 = vector.shape_cast %35 : vector<1x512x1024xbf16> to vector<512x1024xbf16>
    %cst_26 = arith.constant dense<0.000000e+00> : vector<32x1024xf32>
    %37 = tpu.matmul %28, %36, %cst_26 {dimension_numbers = #tpu.dot_dimension_numbers<[1], [0], [0], [1], [0, 0, 1, 1], [], []>} : vector<32x512xbf16>, vector<512x1024xbf16>, vector<32x1024xf32> -> vector<32x1024xf32>
    %38 = vector.shape_cast %31 : vector<32x1024xf32> to vector<2x16x1024xf32>
    %39 = vector.shape_cast %34 : vector<32x1024xf32> to vector<2x16x1024xf32>
    %40 = vector.shape_cast %37 : vector<32x1024xf32> to vector<2x16x1024xf32>
    %cst_27 = arith.constant 0.000000e+00 : f32
    %41 = vector.broadcast %cst_27 : f32 to vector<2x1x1024xf32>
    %42 = vector.extract_strided_slice %38 {offsets = [0, 0, 0], sizes = [2, 15, 1024], strides = [1, 1, 1]} : vector<2x16x1024xf32> to vector<2x15x1024xf32>
    %43 = tpu.concatenate %41, %42 in 1 : vector<2x1x1024xf32>, vector<2x15x1024xf32> -> vector<2x16x1024xf32>
    %44 = arith.addf %39, %43 : vector<2x16x1024xf32>
    %45 = vector.extract_strided_slice %40 {offsets = [0, 1, 0], sizes = [2, 15, 1024], strides = [1, 1, 1]} : vector<2x16x1024xf32> to vector<2x15x1024xf32>
    %46 = tpu.concatenate %45, %41 in 1 : vector<2x15x1024xf32>, vector<2x1x1024xf32> -> vector<2x16x1024xf32>
    %47 = arith.addf %44, %46 : vector<2x16x1024xf32>
    %c0_28 = arith.constant 0 : index
    %c0_29 = arith.constant 0 : index
    %48 = vector.load %arg6[%c0_28, %c0_29] : memref<1x1024xf32, #tpu.memory_space<vmem>>, vector<1x1024xf32>
    %49 = vector.shape_cast %48 : vector<1x1024xf32> to vector<1x1x1024xf32>
    %50 = vector.broadcast %49 : vector<1x1x1024xf32> to vector<2x16x1024xf32>
    %51 = arith.addf %47, %50 : vector<2x16x1024xf32>
    %cst_30 = arith.constant 0.000000e+00 : f32
    %52 = vector.broadcast %cst_30 : f32 to vector<2x16x1024xf32>
    %53 = arith.maximumf %51, %52 : vector<2x16x1024xf32>
    %cst_31 = arith.constant dense<0.000000e+00> : vector<2x1024xf32>
    %54 = vector.multi_reduction <add>, %53, %cst_31 [1] : vector<2x16x1024xf32> to vector<2x1024xf32>
    %c0_32 = arith.constant 0 : index
    %c0_33 = arith.constant 0 : index
    %55 = vector.load %arg7[%c0_32, %c0_33] : memref<1x1024xf32, #tpu.memory_space<vmem>>, vector<1x1024xf32>
    %56 = vector.broadcast %55 : vector<1x1024xf32> to vector<2x1024xf32>
    %57 = arith.mulf %54, %56 : vector<2x1024xf32>
    %cst_34 = arith.constant dense<0.000000e+00> : vector<2xf32>
    %58 = vector.multi_reduction <add>, %57, %cst_34 [1] : vector<2x1024xf32> to vector<2xf32>
    %59 = vector.shape_cast %58 : vector<2xf32> to vector<2x1xf32>
    %c0_35 = arith.constant 0 : index
    %c0_36 = arith.constant 0 : index
    %60 = vector.load %arg2[%c0_35, %c0_36] : memref<2x1xf32, #tpu.memory_space<vmem>>, vector<2x1xf32>
    %c0_37 = arith.constant 0 : index
    %c0_38 = arith.constant 0 : index
    %61 = memref.load %arg8[%c0_37, %c0_38] : memref<1x1xf32, #tpu.memory_space<smem>>
    %62 = vector.broadcast %61 : f32 to vector<2x1xf32>
    %63 = arith.mulf %60, %62 : vector<2x1xf32>
    %64 = arith.addf %59, %63 : vector<2x1xf32>
    %c0_39 = arith.constant 0 : index
    %c0_40 = arith.constant 0 : index
    %65 = memref.load %arg9[%c0_39, %c0_40] : memref<1x1xf32, #tpu.memory_space<smem>>
    %66 = vector.broadcast %65 : f32 to vector<2x1xf32>
    %67 = arith.addf %64, %66 : vector<2x1xf32>
    %c0_41 = arith.constant 0 : index
    %c0_42 = arith.constant 0 : index
    %68 = vector.load %arg10[%c0_41, %c0_42] : memref<2x1xf32, #tpu.memory_space<vmem>>, vector<2x1xf32>
    tpu.vector_store %arg10[%c0_41, %c0_42], %67 {strides = array<i32>} : memref<2x1xf32, #tpu.memory_space<vmem>>, vector<2x1xf32>,
    return
  }
  func.func @transform_0(%arg0: i32) -> (i32, i32, i32) {
    %c0_i32 = arith.constant 0 : i32
    %c0_i32_0 = arith.constant 0 : i32
    %c0_i32_1 = arith.constant 0 : i32
    return %arg0, %c0_i32, %c0_i32_0 : i32, i32, i32
  }
  func.func @transform_1(%arg0: i32) -> (i32, i32) {
    %c0_i32 = arith.constant 0 : i32
    %c0_i32_0 = arith.constant 0 : i32
    return %arg0, %c0_i32 : i32, i32
  }
  func.func @transform_2(%arg0: i32) -> (i32, i32, i32) {
    %c0_i32 = arith.constant 0 : i32
    %c0_i32_0 = arith.constant 0 : i32
    %c0_i32_1 = arith.constant 0 : i32
    %c0_i32_2 = arith.constant 0 : i32
    return %c0_i32, %c0_i32_0, %c0_i32_1 : i32, i32, i32
  }
  func.func @transform_3(%arg0: i32) -> (i32, i32) {
    %c0_i32 = arith.constant 0 : i32
    %c0_i32_0 = arith.constant 0 : i32
    %c0_i32_1 = arith.constant 0 : i32
    return %c0_i32, %c0_i32_0 : i32, i32
  }
  func.func @transform_4(%arg0: i32) -> (i32, i32, i32) {
    %c0_i32 = arith.constant 0 : i32
    %c0_i32_0 = arith.constant 0 : i32
    %c0_i32_1 = arith.constant 0 : i32
    %c0_i32_2 = arith.constant 0 : i32
    return %c0_i32, %c0_i32_0, %c0_i32_1 : i32, i32, i32
  }
  func.func @transform_5(%arg0: i32) -> (i32, i32) {
    %c0_i32 = arith.constant 0 : i32
    %c0_i32_0 = arith.constant 0 : i32
    %c0_i32_1 = arith.constant 0 : i32
    return %c0_i32, %c0_i32_0 : i32, i32
  }
  func.func @transform_6(%arg0: i32) -> (i32, i32) {
    %c0_i32 = arith.constant 0 : i32
    %c0_i32_0 = arith.constant 0 : i32
    %c0_i32_1 = arith.constant 0 : i32
    return %c0_i32, %c0_i32_0 : i32, i32
  }
  func.func @transform_7(%arg0: i32) -> (i32, i32) {
    %c0_i32 = arith.constant 0 : i32
    %c0_i32_0 = arith.constant 0 : i32
    %c0_i32_1 = arith.constant 0 : i32
    return %c0_i32, %c0_i32_0 : i32, i32
  }
  func.func @transform_8(%arg0: i32) -> (i32, i32) {
    %c0_i32 = arith.constant 0 : i32
    %c0_i32_0 = arith.constant 0 : i32
    %c0_i32_1 = arith.constant 0 : i32
    return %c0_i32, %c0_i32_0 : i32, i32
  }
  func.func @transform_9(%arg0: i32) -> (i32, i32) {
    %c0_i32 = arith.constant 0 : i32
    %c0_i32_0 = arith.constant 0 : i32
    return %arg0, %c0_i32 : i32, i32
  }
}

</mosaic_0001>

<bundles_post_ra>
// kernel: cost_net_forward.1
= control target key start
LH: loop header
LB: loop body
LE: loop exit
PB: predicated region body
PF: predicated region fallthrough
CT: control target
= control target key end

     0   :  { %v9311_v1 = vmov 0   ;;  %vm963_vm0 = vcmask 1040384   ;;  %vm1044_vm1 = vcmask 1046528   ;;  %vm7666_vm2 = vcmask 1041409   ;;  %s12760_s2 = inlined_call_operand.vmem [shape: bf16[3,128,512], index: 2, kind: input, shape index: {}]   ;;  %s12761_s0 = inlined_call_operand.vmem [shape: bf16[2,16,128], index: 0, kind: input, shape index: {}]   ;;  %s12762_s4 = inlined_call_operand.vmem [shape: bf16[3,512,1024], index: 4, kind: input, shape index: {}]   ;;  %s12763_s3 = inlined_call_operand.vmem [shape: f32[1,512], index: 3, kind: input, shape index: {}]   ;;  %s12764_s5 = inlined_call_operand.vmem [shape: f32[1,1024], index: 5, kind: input, shape index: {}]   ;;  %s12765_s6 = inlined_call_operand.vmem [shape: f32[1,1024], index: 6, kind: input, shape index: {}]   ;;  %s12766_s1 = inlined_call_operand.vmem [shape: f32[2,1], index: 1, kind: input, shape index: {}]   ;;  %s12767_s7 = inlined_call_operand.<no memory space> [shape: f32[1,1], index: 7, kind: input, shape index: {}]   ;;  %s12768_s8 = inlined_call_operand.<no memory space> [shape: f32[1,1], index: 8, kind: input, shape index: {}]   ;;  %s12769_s9 = inlined_call_operand.vmem [shape: f32[2,1], index: 9, kind: output, shape index: {}]  }
   0x1   :  { %v9165_v0 = vld [vmem:[%s12760_s2 + $0xe4] ss:$16 sps:$4 sm:$0xff]   ;;  %275 = vmatprep.mubr.bf16.mxu0 %v9311_v1  ;;  %328 = vmatprep.mubr.bf16.mxu1 %v9311_v1  ;;  %v9167_v2 = vld [vmem:[%s12760_s2 + $0xec] ss:$16 sps:$4 sm:$0xff]   ;;  %v9169_v3 = vld [vmem:[%s12760_s2 + $0xe0] ss:$16 sps:$4 sm:$0xff]  }
   0x2   :  { %243 = vmatprep.subr.bf16.mxu0 %v9165_v0  ;;  %v9170_v4 = vld [vmem:[%s12760_s2 + $0xe8] ss:$16 sps:$4 sm:$0xff]   ;;  %296 = vmatprep.subr.bf16.mxu1 %v9167_v2  ;;  %v9171_v5 = vld [vmem:[%s12760_s2 + $0xc4] ss:$16 sps:$4 sm:$0xff]   ;;  %v9173_v6 = vld [vmem:[%s12760_s2 + $0xcc] ss:$16 sps:$4 sm:$0xff]  }
   0x3   :  { %244 = vmatpush1.bf16.msra.mxu0 %v9169_v3  ;;  %297 = vmatpush1.bf16.msra.mxu1 %v9170_v4  ;;  %v9175_v7 = vld [vmem:[%s12760_s2 + $0xc0] ss:$16 sps:$4 sm:$0xff]   ;;  %v9176_v8 = vld [vmem:[%s12760_s2 + $0xc8] ss:$16 sps:$4 sm:$0xff]   ;;  %v9177_v9 = vld [vmem:[%s12760_s2 + $0xa4] ss:$16 sps:$4 sm:$0xff]  }
   0x4   :  { %245 = vmatprep.subr.bf16.mxu0 %v9171_v5  ;;  %298 = vmatprep.subr.bf16.mxu1 %v9173_v6  ;;  %v9179_v10 = vld [vmem:[%s12760_s2 + $0xac] ss:$16 sps:$4 sm:$0xff]   ;;  %v9181_v11 = vld [vmem:[%s12760_s2 + $0xa0] ss:$16 sps:$4 sm:$0xff]   ;;  %v9182_v12 = vld [vmem:[%s12760_s2 + $0xa8] ss:$16 sps:$4 sm:$0xff]  }
   0x5   :  { %v9183_v13 = vld [vmem:[%s12760_s2 + $0x84] ss:$16 sps:$4 sm:$0xff]   ;;  %v9185_v14 = vld [vmem:[%s12760_s2 + $0x8c] ss:$16 sps:$4 sm:$0xff]   ;;  %v9187_v15 = vld [vmem:[%s12760_s2 + $0x80] ss:$16 sps:$4 sm:$0xff]  }
   0x6   :  { %v9188_v16 = vld [vmem:[%s12760_s2 + $0x88] ss:$16 sps:$4 sm:$0xff]   ;;  %v9189_v17 = vld [vmem:[%s12760_s2 + $0x64] ss:$16 sps:$4 sm:$0xff]   ;;  %v9191_v18 = vld [vmem:[%s12760_s2 + $0x6c] ss:$16 sps:$4 sm:$0xff]  }
   0x7   :  { %246 = vmatpush1.bf16.msra.mxu0 %v9175_v7  ;;  %299 = vmatpush1.bf16.msra.mxu1 %v9176_v8  ;;  %v9193_v19 = vld [vmem:[%s12760_s2 + $0x60] ss:$16 sps:$4 sm:$0xff]   ;;  %v9194_v20 = vld [vmem:[%s12760_s2 + $0x68] ss:$16 sps:$4 sm:$0xff]   ;;  %v9195_v21 = vld [vmem:[%s12760_s2 + $0x44] ss:$16 sps:$4 sm:$0xff]  }
   0x8   :  { %247 = vmatprep.subr.bf16.mxu0 %v9177_v9  ;;  %300 = vmatprep.subr.bf16.mxu1 %v9179_v10  ;;  %v9197_v22 = vld [vmem:[%s12760_s2 + $0x4c] ss:$16 sps:$4 sm:$0xff]   ;;  %v9199_v23 = vld [vmem:[%s12760_s2 + $0x40] ss:$16 sps:$4 sm:$0xff]   ;;  %v9200_v24 = vld [vmem:[%s12760_s2 + $0x48] ss:$16 sps:$4 sm:$0xff]  }
   0x9   :  { %v9201_v25 = vld [vmem:[%s12760_s2 + $0x24] ss:$16 sps:$4 sm:$0xff]   ;;  %v9203_v26 = vld [vmem:[%s12760_s2 + $0x2c] ss:$16 sps:$4 sm:$0xff]   ;;  %v9205_v27 = vld [vmem:[%s12760_s2 + $0x20] ss:$16 sps:$4 sm:$0xff]  }
   0xa   :  { %v9206_v28 = vld [vmem:[%s12760_s2 + $0x28] ss:$16 sps:$4 sm:$0xff]   ;;  %v9207_v29 = vld [vmem:[%s12760_s2 + $0x4] ss:$16 sps:$4 sm:$0xff]   ;;  %v9209_v30 = vld [vmem:[%s12760_s2 + $0xc] ss:$16 sps:$4 sm:$0xff]  }
   0xb   :  { %248 = vmatpush1.bf16.msra.mxu0 %v9181_v11  ;;  %301 = vmatpush1.bf16.msra.mxu1 %v9182_v12  ;;  %v9211_v31 = vld [vmem:[%s12760_s2] ss:$16 sps:$4 sm:$0xff]   ;;  %v9212_v32 = vld [vmem:[%s12760_s2 + $0x8] ss:$16 sps:$4 sm:$0xff]   ;;  %v9216_v33 = vld [vmem:[%s12760_s2 + $0x1e4] ss:$16 sps:$4 sm:$0xff]  }
   0xc   :  { %249 = vmatprep.subr.bf16.mxu0 %v9183_v13  ;;  %302 = vmatprep.subr.bf16.mxu1 %v9185_v14  ;;  %v9219_v34 = vld [vmem:[%s12760_s2 + $0x1ec] ss:$16 sps:$4 sm:$0xff]   ;;  %v9469_v35 = vld [vmem:[%s12761_s0] sm:$0xff]   ;;  %v9217_v37 = vld [vmem:[%s12760_s2 + $0x1e8] ss:$16 sps:$4 sm:$0xff]   ;;  %vm7690_vm3 = vcmask 1041408  }
   0xd   :  { %v9214_v36 = vld [vmem:[%s12760_s2 + $0x1e0] ss:$16 sps:$4 sm:$0xff]   ;;  %v9222_v38 = vld [vmem:[%s12760_s2 + $0x1c4] ss:$16 sps:$4 sm:$0xff]   ;;  %v9225_v39 = vld [vmem:[%s12760_s2 + $0x1cc] ss:$16 sps:$4 sm:$0xff]  }
   0xe   :  { %v9220_v40 = vld [vmem:[%s12760_s2 + $0x1c0] ss:$16 sps:$4 sm:$0xff]   ;;  %v9223_v41 = vld [vmem:[%s12760_s2 + $0x1c8] ss:$16 sps:$4 sm:$0xff]   ;;  %v9228_v42 = vld [vmem:[%s12760_s2 + $0x1a4] ss:$16 sps:$4 sm:$0xff]  }
   0xf   :  { %250 = vmatpush1.bf16.msra.mxu0 %v9187_v15  ;;  %303 = vmatpush1.bf16.msra.mxu1 %v9188_v16  ;;  %v9231_v43 = vld [vmem:[%s12760_s2 + $0x1ac] ss:$16 sps:$4 sm:$0xff]   ;;  %v9226_v45 = vld [vmem:[%s12760_s2 + $0x1a0] ss:$16 sps:$4 sm:$0xff]   ;;  %v9229_v46 = vld [vmem:[%s12760_s2 + $0x1a8] ss:$16 sps:$4 sm:$0xff]  }
  0x10   :  { %251 = vmatprep.subr.bf16.mxu0 %v9189_v17  ;;  %304 = vmatprep.subr.bf16.mxu1 %v9191_v18  ;;  %v9502_v44 = vld [vmem:[%s12761_s0 + $0x8] sm:$0xff]   ;;  %v9234_v47 = vld [vmem:[%s12760_s2 + $0x184] ss:$16 sps:$4 sm:$0xff]   ;;  %v9232_v49 = vld [vmem:[%s12760_s2 + $0x180] ss:$16 sps:$4 sm:$0xff]   ;;  %vm7716_vm4 = vcmask 1024  }
  0x11   :  { %v9237_v48 = vld [vmem:[%s12760_s2 + $0x18c] ss:$16 sps:$4 sm:$0xff]   ;;  %v9235_v50 = vld [vmem:[%s12760_s2 + $0x188] ss:$16 sps:$4 sm:$0xff]   ;;  %v9240_v51 = vld [vmem:[%s12760_s2 + $0x164] ss:$16 sps:$4 sm:$0xff]  }
  0x12   :  { %v9243_v52 = vld [vmem:[%s12760_s2 + $0x16c] ss:$16 sps:$4 sm:$0xff]   ;;  %v9238_v53 = vld [vmem:[%s12760_s2 + $0x160] ss:$16 sps:$4 sm:$0xff]   ;;  %v9241_v54 = vld [vmem:[%s12760_s2 + $0x168] ss:$16 sps:$4 sm:$0xff]  }
  0x13   :  { %252 = vmatpush1.bf16.msra.mxu0 %v9193_v19  ;;  %305 = vmatpush1.bf16.msra.mxu1 %v9194_v20  ;;  %v9247_v55 = vld [vmem:[%s12760_s2 + $0x144] ss:$16 sps:$4 sm:$0xff]   ;;  %v9250_v56 = vld [vmem:[%s12760_s2 + $0x14c] ss:$16 sps:$4 sm:$0xff]   ;;  %v9245_v57 = vld [vmem:[%s12760_s2 + $0x140] ss:$16 sps:$4 sm:$0xff]  }
  0x14   :  { %253 = vmatprep.subr.bf16.mxu0 %v9195_v21  ;;  %306 = vmatprep.subr.bf16.mxu1 %v9197_v22  ;;  %v9248_v58 = vld [vmem:[%s12760_s2 + $0x148] ss:$16 sps:$4 sm:$0xff]   ;;  %v9253_v59 = vld [vmem:[%s12760_s2 + $0x124] ss:$16 sps:$4 sm:$0xff]   ;;  %v9256_v60 = vld [vmem:[%s12760_s2 + $0x12c] ss:$16 sps:$4 sm:$0xff]  }
  0x15   :  { %v9251_v61 = vld [vmem:[%s12760_s2 + $0x120] ss:$16 sps:$4 sm:$0xff]   ;;  %v9254_v62 = vld [vmem:[%s12760_s2 + $0x128] ss:$16 sps:$4 sm:$0xff]   ;;  %v9259_v63 = vld [vmem:[%s12760_s2 + $0x104] ss:$16 sps:$4 sm:$0xff]  }
  0x16   :  { %v9262_v0 = vld [vmem:[%s12760_s2 + $0x10c] ss:$16 sps:$4 sm:$0xff]   ;;  %v9257_v2 = vld [vmem:[%s12760_s2 + $0x100] ss:$16 sps:$4 sm:$0xff]   ;;  %v9260_v3 = vld [vmem:[%s12760_s2 + $0x108] ss:$16 sps:$4 sm:$0xff]  }
  0x17   :  { %254 = vmatpush1.bf16.msra.mxu0 %v9199_v23  ;;  %307 = vmatpush1.bf16.msra.mxu1 %v9200_v24  ;;  %v9265_v4 = vld [vmem:[%s12760_s2 + $0x2e4] ss:$16 sps:$4 sm:$0xff]   ;;  %v9268_v5 = vld [vmem:[%s12760_s2 + $0x2ec] ss:$16 sps:$4 sm:$0xff]   ;;  %v9263_v6 = vld [vmem:[%s12760_s2 + $0x2e0] ss:$16 sps:$4 sm:$0xff]  }
  0x18   :  { %255 = vmatprep.subr.bf16.mxu0 %v9201_v25  ;;  %308 = vmatprep.subr.bf16.mxu1 %v9203_v26  ;;  %v9266_v7 = vld [vmem:[%s12760_s2 + $0x2e8] ss:$16 sps:$4 sm:$0xff]   ;;  %v9271_v8 = vld [vmem:[%s12760_s2 + $0x2c4] ss:$16 sps:$4 sm:$0xff]   ;;  %v9274_v9 = vld [vmem:[%s12760_s2 + $0x2cc] ss:$16 sps:$4 sm:$0xff]  }
  0x19   :  { %v9269_v10 = vld [vmem:[%s12760_s2 + $0x2c0] ss:$16 sps:$4 sm:$0xff]   ;;  %v9272_v11 = vld [vmem:[%s12760_s2 + $0x2c8] ss:$16 sps:$4 sm:$0xff]   ;;  %v9277_v12 = vld [vmem:[%s12760_s2 + $0x2a4] ss:$16 sps:$4 sm:$0xff]  }
  0x1a   :  { %v9280_v13 = vld [vmem:[%s12760_s2 + $0x2ac] ss:$16 sps:$4 sm:$0xff]   ;;  %v9275_v14 = vld [vmem:[%s12760_s2 + $0x2a0] ss:$16 sps:$4 sm:$0xff]   ;;  %v9278_v15 = vld [vmem:[%s12760_s2 + $0x2a8] ss:$16 sps:$4 sm:$0xff]  }
  0x1b   :  { %256 = vmatpush1.bf16.msra.mxu0 %v9205_v27  ;;  %309 = vmatpush1.bf16.msra.mxu1 %v9206_v28  ;;  %v9283_v16 = vld [vmem:[%s12760_s2 + $0x284] ss:$16 sps:$4 sm:$0xff]   ;;  %v9286_v17 = vld [vmem:[%s12760_s2 + $0x28c] ss:$16 sps:$4 sm:$0xff]   ;;  %v9281_v18 = vld [vmem:[%s12760_s2 + $0x280] ss:$16 sps:$4 sm:$0xff]  }
  0x1c   :  { %257 = vmatprep.subr.bf16.mxu0 %v9207_v29  ;;  %310 = vmatprep.subr.bf16.mxu1 %v9209_v30  ;;  %v9284_v19 = vld [vmem:[%s12760_s2 + $0x288] ss:$16 sps:$4 sm:$0xff]   ;;  %v9289_v20 = vld [vmem:[%s12760_s2 + $0x264] ss:$16 sps:$4 sm:$0xff]   ;;  %v9292_v21 = vld [vmem:[%s12760_s2 + $0x26c] ss:$16 sps:$4 sm:$0xff]  }
  0x1d   :  { %v9287_v22 = vld [vmem:[%s12760_s2 + $0x260] ss:$16 sps:$4 sm:$0xff]   ;;  %v9290_v23 = vld [vmem:[%s12760_s2 + $0x268] ss:$16 sps:$4 sm:$0xff]   ;;  %v9295_v24 = vld [vmem:[%s12760_s2 + $0x244] ss:$16 sps:$4 sm:$0xff]  }
  0x1e   :  { %v9298_v25 = vld [vmem:[%s12760_s2 + $0x24c] ss:$16 sps:$4 sm:$0xff]   ;;  %v9293_v26 = vld [vmem:[%s12760_s2 + $0x240] ss:$16 sps:$4 sm:$0xff]   ;;  %v9296_v27 = vld [vmem:[%s12760_s2 + $0x248] ss:$16 sps:$4 sm:$0xff]  }
  0x1f   :  { %258 = vmatpush1.bf16.msra.mxu0 %v9211_v31  ;;  %311 = vmatpush1.bf16.msra.mxu1 %v9212_v32  ;;  %v9301_v28 = vld [vmem:[%s12760_s2 + $0x224] ss:$16 sps:$4 sm:$0xff]   ;;  %v9304_v29 = vld [vmem:[%s12760_s2 + $0x22c] ss:$16 sps:$4 sm:$0xff]   ;;  %v9299_v30 = vld [vmem:[%s12760_s2 + $0x220] ss:$16 sps:$4 sm:$0xff]  }
  0x20   :  { %542 = vmatprep.subr.bf16.mxu0 %v9216_v33  ;;  %595 = vmatprep.subr.bf16.mxu1 %v9219_v34  ;;  %v9302_v31 = vld [vmem:[%s12760_s2 + $0x228] ss:$16 sps:$4 sm:$0xff]   ;;  %v9307_v32 = vld [vmem:[%s12760_s2 + $0x204] ss:$16 sps:$4 sm:$0xff]   ;;  %v9310_v33 = vld [vmem:[%s12760_s2 + $0x20c] ss:$16 sps:$4 sm:$0xff]  }
  0x21   :  { %v9305_v34 = vld [vmem:[%s12760_s2 + $0x200] ss:$16 sps:$4 sm:$0xff]  }
  0x22   :  { %276 = vmatmul.mubr.bf16.vlgmr.msra.gmra.mxu0 %v9469_v35  ;;  %329 = vmatmul.mubr.bf16.vlgmr.msra.gmra.mxu1 %v9469_v35 }
  0x23   :  { %543 = vmatpush1.bf16.msra.mxu0 %v9214_v36  ;;  %596 = vmatpush1.bf16.msra.mxu1 %v9217_v37  ;;  %v9308_v36 = vld [vmem:[%s12760_s2 + $0x208] ss:$16 sps:$4 sm:$0xff]   ;;  %v1227_v37 = vld [vmem:[%s12762_s4 + $0x1c0] sm:$0xff] }
  0x24   :  { %544 = vmatprep.subr.bf16.mxu0 %v9222_v38  ;;  %597 = vmatprep.subr.bf16.mxu1 %v9225_v39  ;;  %v1231_v38 = vld [vmem:[%s12762_s4 + $0x1e0] sm:$0xff] }
  0x25   :  { %285 = vmatprep.mubr.bf16.mxu0 %v9311_v1  ;;  %338 = vmatprep.mubr.bf16.mxu1 %v9311_v1  ;;  %v7940_v39 = vcombine.low %v1227_v37, %v1231_v38 }
  0x27   :  { %545 = vmatpush1.bf16.msra.mxu0 %v9220_v40  ;;  %598 = vmatpush1.bf16.msra.mxu1 %v9223_v41  ;;  %v7941_v40 = vcombine.high %v1227_v37, %v1231_v38  ;;  %v1291_v37 = vld [vmem:[%s12762_s4 + $0x3c0] sm:$0xff] }
  0x28   :  { %546 = vmatprep.subr.bf16.mxu0 %v9228_v42  ;;  %599 = vmatprep.subr.bf16.mxu1 %v9231_v43  ;;  %v1219_v43 = vld [vmem:[%s12762_s4 + $0x180] sm:$0xff] }
  0x29   :  { %v1295_v38 = vld [vmem:[%s12762_s4 + $0x3e0] sm:$0xff] }
  0x2a   :  { %286 = vmatmul.mubr.bf16.gmra.mxu0 %v9502_v44  ;;  %339 = vmatmul.mubr.bf16.gmra.mxu1 %v9502_v44 }
  0x2b   :  { %547 = vmatpush1.bf16.msra.mxu0 %v9226_v45  ;;  %600 = vmatpush1.bf16.msra.mxu1 %v9229_v46  ;;  %v1347_v45 = vld [vmem:[%s12762_s4 + $0x580] sm:$0xff] }
  0x2c   :  { %548 = vmatprep.subr.bf16.mxu0 %v9234_v47  ;;  %601 = vmatprep.subr.bf16.mxu1 %v9237_v48  ;;  %v1351_v48 = vld [vmem:[%s12762_s4 + $0x5a0] sm:$0xff] }
  0x2d   :  { %574 = vmatprep.mubr.bf16.mxu0 %v9311_v1  ;;  %627 = vmatprep.mubr.bf16.mxu1 %v9311_v1 }
  0x2f   :  { %549 = vmatpush1.bf16.msra.mxu0 %v9232_v49  ;;  %602 = vmatpush1.bf16.msra.mxu1 %v9235_v50  ;;  %v8060_v49 = vcombine.low %v1347_v45, %v1351_v48  ;;  %v8061_v50 = vcombine.high %v1347_v45, %v1351_v48  ;;  %v1275_v48 = vld [vmem:[%s12762_s4 + $0x340] sm:$0xff] }
  0x30   :  { %550 = vmatprep.subr.bf16.mxu0 %v9240_v51  ;;  %603 = vmatprep.subr.bf16.mxu1 %v9243_v52  ;;  %v1211_v51 = vld [vmem:[%s12762_s4 + $0x140] sm:$0xff] }
  0x31   :  { %v1215_v52 = vld [vmem:[%s12762_s4 + $0x160] sm:$0xff] }
  0x33   :  { %551 = vmatpush1.bf16.msra.mxu0 %v9238_v53  ;;  %604 = vmatpush1.bf16.msra.mxu1 %v9241_v54  ;;  %v1339_v53 = vld [vmem:[%s12762_s4 + $0x540] sm:$0xff]  ;;  %v7924_v54 = vcombine.low %v1211_v51, %v1215_v52 }
  0x34   :  { %552 = vmatprep.subr.bf16.mxu0 %v9247_v55  ;;  %605 = vmatprep.subr.bf16.mxu1 %v9250_v56  ;;  %v7925_v55 = vcombine.high %v1211_v51, %v1215_v52  ;;  %v1343_v56 = vld [vmem:[%s12762_s4 + $0x560] sm:$0xff] }
  0x35   :  { %v1403_v51 = vld [vmem:[%s12762_s4 + $0x740] sm:$0xff] }
  0x36   :  { %v1407_v52 = vld [vmem:[%s12762_s4 + $0x760] sm:$0xff] }
  0x37   :  { %553 = vmatpush1.bf16.msra.mxu0 %v9245_v57  ;;  %606 = vmatpush1.bf16.msra.mxu1 %v9248_v58  ;;  %v1203_v57 = vld [vmem:[%s12762_s4 + $0x100] sm:$0xff] }
  0x38   :  { %554 = vmatprep.subr.bf16.mxu0 %v9253_v59  ;;  %607 = vmatprep.subr.bf16.mxu1 %v9256_v60  ;;  %v1207_v58 = vld [vmem:[%s12762_s4 + $0x120] sm:$0xff]  ;;  %v8052_v59 = vcombine.low %v1339_v53, %v1343_v56  ;;  %v8053_v60 = vcombine.high %v1339_v53, %v1343_v56  ;;  %v8117_v56 = vcombine.high %v1403_v51, %v1407_v52 }
  0x3b   :  { %555 = vmatpush1.bf16.msra.mxu0 %v9251_v61  ;;  %608 = vmatpush1.bf16.msra.mxu1 %v9254_v62  ;;  %v7917_v61 = vcombine.high %v1203_v57, %v1207_v58  ;;  %v1331_v62 = vld [vmem:[%s12762_s4 + $0x500] sm:$0xff] }
  0x3c   :  { %556 = vmatprep.subr.bf16.mxu0 %v9259_v63  ;;  %609 = vmatprep.subr.bf16.mxu1 %v9262_v0  ;;  %v1335_v63 = vld [vmem:[%s12762_s4 + $0x520] sm:$0xff] }
  0x3d   :  { %v8045_v0 = vcombine.high %v1331_v62, %v1335_v63 }
  0x3f   :  { %557 = vmatpush1.bf16.msra.mxu0 %v9257_v2  ;;  %610 = vmatpush1.bf16.msra.mxu1 %v9260_v3  ;;  %v7916_v2 = vcombine.low %v1203_v57, %v1207_v58  ;;  %v8044_v3 = vcombine.low %v1331_v62, %v1335_v63  ;;  %v1267_v57 = vld [vmem:[%s12762_s4 + $0x300] sm:$0xff]  ;;  %v8116_v62 = vcombine.low %v1403_v51, %v1407_v52 }
  0x40   :  { %841 = vmatprep.subr.bf16.mxu0 %v9265_v4  ;;  %894 = vmatprep.subr.bf16.mxu1 %v9268_v5  ;;  %v1195_v4 = vld [vmem:[%s12762_s4 + $0xc0] sm:$0xff] }
  0x41   :  { %v1199_v5 = vld [vmem:[%s12762_s4 + $0xe0] sm:$0xff] }
  0x42   :  { %575 = vmatmul.mubr.bf16.vlgmr.msra.gmra.mxu0 %v9469_v35  ;;  %628 = vmatmul.mubr.bf16.vlgmr.msra.gmra.mxu1 %v9469_v35  ;;  %v1271_v58 = vld [vmem:[%s12762_s4 + $0x320] sm:$0xff] }
  0x43   :  { %842 = vmatpush1.bf16.msra.mxu0 %v9263_v6  ;;  %895 = vmatpush1.bf16.msra.mxu1 %v9266_v7  ;;  %v1323_v6 = vld [vmem:[%s12762_s4 + $0x4c0] sm:$0xff]  ;;  %v7909_v7 = vcombine.high %v1195_v4, %v1199_v5  ;;  %v7981_v63 = vcombine.high %v1267_v57, %v1271_v58 }
  0x44   :  { %843 = vmatprep.subr.bf16.mxu0 %v9271_v8  ;;  %896 = vmatprep.subr.bf16.mxu1 %v9274_v9  ;;  %v1327_v8 = vld [vmem:[%s12762_s4 + $0x4e0] sm:$0xff]  ;;  %v7908_v9 = vcombine.low %v1195_v4, %v1199_v5 }
  0x45   :  { %584 = vmatprep.mubr.bf16.mxu0 %v9311_v1  ;;  %637 = vmatprep.mubr.bf16.mxu1 %v9311_v1  ;;  %v1259_v4 = vld [vmem:[%s12762_s4 + $0x2c0] sm:$0xff] }
  0x46   :  { %v1263_v5 = vld [vmem:[%s12762_s4 + $0x2e0] sm:$0xff] }
  0x47   :  { %844 = vmatpush1.bf16.msra.mxu0 %v9269_v10  ;;  %897 = vmatpush1.bf16.msra.mxu1 %v9272_v11  ;;  %v8036_v10 = vcombine.low %v1323_v6, %v1327_v8  ;;  %v8037_v11 = vcombine.high %v1323_v6, %v1327_v8  ;;  %v1387_v6 = vld [vmem:[%s12762_s4 + $0x6c0] sm:$0xff] }
  0x48   :  { %845 = vmatprep.subr.bf16.mxu0 %v9277_v12  ;;  %898 = vmatprep.subr.bf16.mxu1 %v9280_v13  ;;  %v1187_v12 = vld [vmem:[%s12762_s4 + $0x80] sm:$0xff] }
  0x49   :  { %v1191_v13 = vld [vmem:[%s12762_s4 + $0xa0] sm:$0xff] }
  0x4a   :  { %585 = vmatmul.mubr.bf16.gmra.mxu0 %v9502_v44  ;;  %638 = vmatmul.mubr.bf16.gmra.mxu1 %v9502_v44  ;;  %v1391_v8 = vld [vmem:[%s12762_s4 + $0x6e0] sm:$0xff] }
  0x4b   :  { %846 = vmatpush1.bf16.msra.mxu0 %v9275_v14  ;;  %899 = vmatpush1.bf16.msra.mxu1 %v9278_v15  ;;  %v1315_v14 = vld [vmem:[%s12762_s4 + $0x480] sm:$0xff]  ;;  %v7901_v15 = vcombine.high %v1187_v12, %v1191_v13 }
  0x4c   :  { %847 = vmatprep.subr.bf16.mxu0 %v9283_v16  ;;  %900 = vmatprep.subr.bf16.mxu1 %v9286_v17  ;;  %v1319_v16 = vld [vmem:[%s12762_s4 + $0x4a0] sm:$0xff]  ;;  %v7900_v17 = vcombine.low %v1187_v12, %v1191_v13 }
  0x4d   :  { %873 = vmatprep.mubr.bf16.mxu0 %v9311_v1  ;;  %926 = vmatprep.mubr.bf16.mxu1 %v9311_v1  ;;  %v1251_v12 = vld [vmem:[%s12762_s4 + $0x280] sm:$0xff] }
  0x4e   :  { %v1255_v13 = vld [vmem:[%s12762_s4 + $0x2a0] sm:$0xff] }
  0x4f   :  { %848 = vmatpush1.bf16.msra.mxu0 %v9281_v18  ;;  %901 = vmatpush1.bf16.msra.mxu1 %v9284_v19  ;;  %v8028_v18 = vcombine.low %v1315_v14, %v1319_v16  ;;  %v8029_v19 = vcombine.high %v1315_v14, %v1319_v16  ;;  %v1379_v14 = vld [vmem:[%s12762_s4 + $0x680] sm:$0xff] }
  0x50   :  { %849 = vmatprep.subr.bf16.mxu0 %v9289_v20  ;;  %902 = vmatprep.subr.bf16.mxu1 %v9292_v21  ;;  %v1179_v20 = vld [vmem:[%s12762_s4 + $0x40] sm:$0xff] }
  0x51   :  { %v1183_v21 = vld [vmem:[%s12762_s4 + $0x60] sm:$0xff] }
  0x52   :  { %v1383_v16 = vld [vmem:[%s12762_s4 + $0x6a0] sm:$0xff] }
  0x53   :  { %850 = vmatpush1.bf16.msra.mxu0 %v9287_v22  ;;  %903 = vmatpush1.bf16.msra.mxu1 %v9290_v23  ;;  %v1307_v22 = vld [vmem:[%s12762_s4 + $0x440] sm:$0xff]  ;;  %v7893_v23 = vcombine.high %v1179_v20, %v1183_v21 }
  0x54   :  { %851 = vmatprep.subr.bf16.mxu0 %v9295_v24  ;;  %904 = vmatprep.subr.bf16.mxu1 %v9298_v25  ;;  %v1311_v24 = vld [vmem:[%s12762_s4 + $0x460] sm:$0xff]  ;;  %v7892_v25 = vcombine.low %v1179_v20, %v1183_v21 }
  0x55   :  { %v1243_v20 = vld [vmem:[%s12762_s4 + $0x240] sm:$0xff] }
  0x56   :  { %v1247_v21 = vld [vmem:[%s12762_s4 + $0x260] sm:$0xff] }
  0x57   :  { %852 = vmatpush1.bf16.msra.mxu0 %v9293_v26  ;;  %905 = vmatpush1.bf16.msra.mxu1 %v9296_v27  ;;  %v8020_v26 = vcombine.low %v1307_v22, %v1311_v24  ;;  %v8021_v27 = vcombine.high %v1307_v22, %v1311_v24  ;;  %v1371_v22 = vld [vmem:[%s12762_s4 + $0x640] sm:$0xff] }
  0x58   :  { %853 = vmatprep.subr.bf16.mxu0 %v9301_v28  ;;  %906 = vmatprep.subr.bf16.mxu1 %v9304_v29  ;;  %v1171_v28 = vld [vmem:[%s12762_s4] sm:$0xff] }
  0x59   :  { %v1175_v29 = vld [vmem:[%s12762_s4 + $0x20] sm:$0xff] }
  0x5a   :  { %v1375_v24 = vld [vmem:[%s12762_s4 + $0x660] sm:$0xff] }
  0x5b   :  { %854 = vmatpush1.bf16.msra.mxu0 %v9299_v30  ;;  %907 = vmatpush1.bf16.msra.mxu1 %v9302_v31  ;;  %v1299_v30 = vld [vmem:[%s12762_s4 + $0x400] sm:$0xff]  ;;  %v7885_v31 = vcombine.high %v1171_v28, %v1175_v29 }
  0x5c   :  { %855 = vmatprep.subr.bf16.mxu0 %v9307_v32  ;;  %908 = vmatprep.subr.bf16.mxu1 %v9310_v33  ;;  %v1303_v32 = vld [vmem:[%s12762_s4 + $0x420] sm:$0xff]  ;;  %v7884_v33 = vcombine.low %v1171_v28, %v1175_v29 }
  0x5d   :  { %v1235_v28 = vld [vmem:[%s12762_s4 + $0x200] sm:$0xff] }
  0x5e   :  { %v1239_v29 = vld [vmem:[%s12762_s4 + $0x220] sm:$0xff] }
  0x5f   :  { %856 = vmatpush1.bf16.msra.mxu0 %v9305_v34  ;;  %909 = vmatpush1.bf16.msra.mxu1 %v9308_v36  ;;  %v8012_v34 = vcombine.low %v1299_v30, %v1303_v32  ;;  %v8013_v36 = vcombine.high %v1299_v30, %v1303_v32  ;;  %v1363_v30 = vld [vmem:[%s12762_s4 + $0x600] sm:$0xff] }
  0x60   :  { %2707 = vmatprep.subr.bf16.mxu0 %v7941_v40  ;;  %v8005_v40 = vcombine.high %v1291_v37, %v1295_v38  ;;  %v1367_v32 = vld [vmem:[%s12762_s4 + $0x620] sm:$0xff] }
  0x62   :  { %874 = vmatmul.mubr.bf16.vlgmr.msra.gmra.mxu0 %v9469_v35  ;;  %927 = vmatmul.mubr.bf16.vlgmr.msra.gmra.mxu1 %v9469_v35  ;;  %v1355_v35 = vld [vmem:[%s12762_s4 + $0x5c0] sm:$0xff] }
  0x63   :  { %883 = vmatprep.mubr.bf16.mxu0 %v9311_v1  ;;  %936 = vmatprep.mubr.bf16.mxu1 %v9311_v1  ;;  %v1359_v1 = vld [vmem:[%s12762_s4 + $0x5e0] sm:$0xff] }
  0x64   :  { %v8068_v41 = vcombine.low %v1355_v35, %v1359_v1  ;;  %v8069_v42 = vcombine.high %v1355_v35, %v1359_v1  ;;  %2708 = vmatpush1.bf16.msra.mxu0 %v7940_v39  ;;  %v1419_v35 = vld [vmem:[%s12762_s4 + $0x7c0] sm:$0xff]  ;;  %v8004_v39 = vcombine.low %v1291_v37, %v1295_v38  ;;  %v9879_v37 = vld [vmem:[%s12762_s4 + $0x1c8] sm:$0xff] }
  0x65   :  { %v1423_v1 = vld [vmem:[%s12762_s4 + $0x7e0] sm:$0xff]  ;;  %v9884_v38 = vld [vmem:[%s12762_s4 + $0x1e8] sm:$0xff] }
  0x66   :  { %2760 = vmatprep.subr.bf16.mxu1 %v8069_v42  ;;  %v1287_v42 = vld [vmem:[%s12762_s4 + $0x3a0] sm:$0xff] }
  0x67   :  { %2761 = vmatpush1.bf16.msra.mxu1 %v8068_v41  ;;  %v1283_v41 = vld [vmem:[%s12762_s4 + $0x380] sm:$0xff] }
  0x68   :  { %2762 = vmatprep.subr.bf16.mxu1 %v8061_v50  ;;  %v7997_v45 = vcombine.high %v1283_v41, %v1287_v42  ;;  %v1279_v50 = vld [vmem:[%s12762_s4 + $0x360] sm:$0xff]  ;;  %v7996_v53 = vcombine.low %v1283_v41, %v1287_v42 }
  0x6a   :  { %884 = vmatmul.mubr.bf16.gmra.mxu0 %v9502_v44  ;;  %937 = vmatmul.mubr.bf16.gmra.mxu1 %v9502_v44  ;;  %v1223_v44 = vld [vmem:[%s12762_s4 + $0x1a0] sm:$0xff] }
  0x6b   :  { %v7932_v46 = vcombine.low %v1219_v43, %v1223_v44  ;;  %v7933_v47 = vcombine.high %v1219_v43, %v1223_v44  ;;  %2763 = vmatpush1.bf16.msra.mxu1 %v8060_v49  ;;  %v8132_v43 = vcombine.low %v1419_v35, %v1423_v1  ;;  %v8133_v44 = vcombine.high %v1419_v35, %v1423_v1  ;;  %v9889_v35 = vld [vmem:[%s12762_s4 + $0x5c8] sm:$0xff] }
  0x6c   :  { %2764 = vmatprep.subr.bf16.mxu1 %v8053_v60  ;;  %v1399_v60 = vld [vmem:[%s12762_s4 + $0x720] sm:$0xff] }
  0x6d   :  { %2709 = vmatprep.subr.bf16.mxu0 %v7933_v47  ;;  %v1415_v47 = vld [vmem:[%s12762_s4 + $0x7a0] sm:$0xff] }
  0x6e   :  { %2710 = vmatpush1.bf16.msra.mxu0 %v7932_v46  ;;  %v1411_v46 = vld [vmem:[%s12762_s4 + $0x780] sm:$0xff] }
  0x6f   :  { %2711 = vmatprep.subr.bf16.mxu0 %v7925_v55  ;;  %2765 = vmatpush1.bf16.msra.mxu1 %v8052_v59  ;;  %v8125_v49 = vcombine.high %v1411_v46, %v1415_v47  ;;  %v7989_v55 = vcombine.high %v1275_v48, %v1279_v50  ;;  %v1395_v59 = vld [vmem:[%s12762_s4 + $0x700] sm:$0xff] }
  0x70   :  { %2766 = vmatprep.subr.bf16.mxu1 %v8045_v0  ;;  %v8109_v0 = vcombine.high %v1395_v59, %v1399_v60 }
  0x72   :  { %2712 = vmatpush1.bf16.msra.mxu0 %v7924_v54  ;;  %v8124_v54 = vcombine.low %v1411_v46, %v1415_v47 }
  0x73   :  { %2713 = vmatprep.subr.bf16.mxu0 %v7917_v61  ;;  %2767 = vmatpush1.bf16.msra.mxu1 %v8044_v3  ;;  %v7988_v61 = vcombine.low %v1275_v48, %v1279_v50  ;;  %v8108_v3 = vcombine.low %v1395_v59, %v1399_v60 }
  0x74   :  { %2768 = vmatprep.subr.bf16.mxu1 %v8037_v11  ;;  %v8101_v11 = vcombine.high %v1387_v6, %v1391_v8 }
  0x76   :  { %2714 = vmatpush1.bf16.msra.mxu0 %v7916_v2  ;;  %v7980_v2 = vcombine.low %v1267_v57, %v1271_v58 }
  0x77   :  { %2715 = vmatprep.subr.bf16.mxu0 %v7909_v7  ;;  %2769 = vmatpush1.bf16.msra.mxu1 %v8036_v10  ;;  %v7973_v7 = vcombine.high %v1259_v4, %v1263_v5  ;;  %v8100_v10 = vcombine.low %v1387_v6, %v1391_v8 }
  0x78   :  { %2770 = vmatprep.subr.bf16.mxu1 %v8029_v19  ;;  %v8093_v19 = vcombine.high %v1379_v14, %v1383_v16 }
  0x7a   :  { %2716 = vmatpush1.bf16.msra.mxu0 %v7908_v9  ;;  %v7972_v9 = vcombine.low %v1259_v4, %v1263_v5 }
  0x7b   :  { %2717 = vmatprep.subr.bf16.mxu0 %v7901_v15  ;;  %2771 = vmatpush1.bf16.msra.mxu1 %v8028_v18  ;;  %v7965_v15 = vcombine.high %v1251_v12, %v1255_v13  ;;  %v8092_v18 = vcombine.low %v1379_v14, %v1383_v16  ;;  %v9981_v14 = vld [vmem:[%s12762_s4 + $0x1a8] sm:$0xff] }
  0x7c   :  { %2772 = vmatprep.subr.bf16.mxu1 %v8021_v27  ;;  %v8085_v27 = vcombine.high %v1371_v22, %v1375_v24 }
  0x7e   :  { %2718 = vmatpush1.bf16.msra.mxu0 %v7900_v17  ;;  %v7964_v17 = vcombine.low %v1251_v12, %v1255_v13  ;;  %v9976_v13 = vld [vmem:[%s12762_s4 + $0x188] sm:$0xff] }
  0x7f   :  { %2719 = vmatprep.subr.bf16.mxu0 %v7893_v23  ;;  %2773 = vmatpush1.bf16.msra.mxu1 %v8020_v26  ;;  %v7957_v23 = vcombine.high %v1243_v20, %v1247_v21  ;;  %v8084_v26 = vcombine.low %v1371_v22, %v1375_v24 }
  0x80   :  { %2774 = vmatprep.subr.bf16.mxu1 %v8013_v36  ;;  %v8077_v36 = vcombine.high %v1363_v30, %v1367_v32 }
  0x82   :  { %2720 = vmatpush1.bf16.msra.mxu0 %v7892_v25  ;;  %v7956_v25 = vcombine.low %v1243_v20, %v1247_v21  ;;  %v10005_v20 = vld [vmem:[%s12762_s4 + $0x168] sm:$0xff] }
  0x83   :  { %2721 = vmatprep.subr.bf16.mxu0 %v7885_v31  ;;  %2775 = vmatpush1.bf16.msra.mxu1 %v8012_v34  ;;  %v7949_v31 = vcombine.high %v1235_v28, %v1239_v29  ;;  %v8076_v34 = vcombine.low %v1363_v30, %v1367_v32 }
  0x84   :  { %2776 = vmatprep.subr.bf16.mxu1 %v8133_v44 }
  0x86   :  { %2722 = vmatpush1.bf16.msra.mxu0 %v7884_v33  ;;  %v7948_v33 = vcombine.low %v1235_v28, %v1239_v29 }
  0x87   :  { %2723 = vmatprep.subr.bf16.mxu0 %v8005_v40  ;;  %2777 = vmatpush2.bf16.msra.mxu1 %v8132_v43  ;;  %v9896_v40 = vld [vmem:[%s12762_s4 + $0x5e8] sm:$0xff] }
  0x88   :  { %2778 = vmatprep.subr.bf16.mxu1 %v8125_v49  ;;  %v8071_v42 = vcombine.high %v9889_v35, %v9896_v40 }
  0x8a   :  { %2724 = vmatpush2.bf16.msra.mxu0 %v8004_v39  ;;  %v7943_v39 = vcombine.high %v9879_v37, %v9884_v38 }
  0x8b   :  { %2725 = vmatprep.subr.bf16.mxu0 %v7997_v45  ;;  %2779 = vmatpush2.bf16.msra.mxu1 %v8124_v54 }
  0x8c   :  { %2780 = vmatprep.subr.bf16.mxu1 %v8117_v56 }
  0x8e   :  { %2726 = vmatpush2.bf16.msra.mxu0 %v7996_v53 }
  0x8f   :  { %2727 = vmatprep.subr.bf16.mxu0 %v7989_v55  ;;  %2781 = vmatpush2.bf16.msra.mxu1 %v8116_v62 }
  0x90   :  { %2782 = vmatprep.subr.bf16.mxu1 %v8109_v0 }
  0x92   :  { %2728 = vmatpush2.bf16.msra.mxu0 %v7988_v61 }
  0x93   :  { %2729 = vmatprep.subr.bf16.mxu0 %v7981_v63  ;;  %2783 = vmatpush2.bf16.msra.mxu1 %v8108_v3 }
  0x94   :  { %2784 = vmatprep.subr.bf16.mxu1 %v8101_v11 }
  0x96   :  { %2730 = vmatpush2.bf16.msra.mxu0 %v7980_v2  ;;  %v1111_v2 = vlaneseq }
  0x97   :  { %2731 = vmatprep.subr.bf16.mxu0 %v7973_v7  ;;  %2785 = vmatpush2.bf16.msra.mxu1 %v8100_v10  ;;  %v1109_v10 = vld [vmem:[%s12763_s3] sm:$0xf] }
  0x98   :  { %2786 = vmatprep.subr.bf16.mxu1 %v8093_v19  ;;  %v9952_v5 = vshrl.u32 %v1111_v2, 7  ;;  %v10000_v19 = vld [vmem:[%s12762_s4 + $0x148] sm:$0xff] }
  0x9a   :  { %2732 = vmatpush2.bf16.msra.mxu0 %v7972_v9  ;;  %12796 = vst [vmem:[#allocation4_spill] sm:$0xff] %v9952_v5  ;;  %v9959_v8 = vsub.s32 0, %v9952_v5  ;;  %v9962_v9 = vsub.s32 2, %v9952_v5  ;;  %v9968_v11 = vsub.s32 1, %v9952_v5  ;;  %v9971_v12 = vsub.s32 3, %v9952_v5 }
  0x9b   :  { %2733 = vmatprep.subr.bf16.mxu0 %v7965_v15  ;;  %2787 = vmatpush2.bf16.msra.mxu1 %v8092_v18  ;;  %v9986_v15 = vld [vmem:[%s12762_s4 + $0x588] sm:$0xff] }
  0x9c   :  { %2788 = vmatprep.subr.bf16.mxu1 %v8085_v27  ;;  %12797 = vst [vmem:[#allocation5_spill] sm:$0xff] %v9959_v8  ;;  %12798 = vst [vmem:[#allocation6_spill] sm:$0xff] %v9962_v9  ;;  %v9995_v18 = vld [vmem:[%s12762_s4 + $0x5a8] sm:$0xff]  ;;  %v10008_v21 = vrot.slane %v1109_v10, %v9959_v8  ;;  %v10011_v22 = vrot.slane %v1109_v10, %v9962_v9  ;;  %v10017_v24 = vrot.slane %v1109_v10, %v9971_v12 }
  0x9d   :  { %12799 = vst [vmem:[#allocation7_spill] sm:$0xff] %v9968_v11  ;;  %12800 = vst [vmem:[#allocation8_spill] sm:$0xff] %v9971_v12 }
  0x9e   :  { %2734 = vmatpush2.bf16.msra.mxu0 %v7964_v17 }
  0x9f   :  { %2735 = vmatprep.subr.bf16.mxu0 %v7957_v23  ;;  %2789 = vmatpush2.bf16.msra.mxu1 %v8084_v26  ;;  %v10014_v23 = vrot.slane %v1109_v10, %v9968_v11 }
  0xa0   :  { %2790 = vmatprep.subr.bf16.mxu1 %v8077_v36 }
  0xa2   :  { %2736 = vmatpush2.bf16.msra.mxu0 %v7956_v25 }
  0xa3   :  { %2737 = vmatprep.subr.bf16.mxu0 %v7949_v31  ;;  %2791 = vmatpush2.bf16.msra.mxu1 %v8076_v34 }
  0xa4   :  { %2866 = vmatprep.subr.bf16.mxu1 %v8071_v42 }
  0xa6   :  { %2738 = vmatpush2.bf16.msra.mxu0 %v7948_v33 }
  0xa7   :  { %2813 = vmatprep.subr.bf16.mxu0 %v7943_v39 }
  0xe2   :  { %v9904_v43 = vpop.f32.mrf.mxu0  ;;  %v9906_v44 = vpop.f32.mrf.mxu1 }
  0xe3   :  { %v964_v27 = vrot.slane %v9904_v43, 7  ;;  %v966_v31 = vrot.slane %v9906_v44, 7 }
  0xe4   :  { %v9908_v45 = vpop.f32.mrf.mxu0  ;;  %v9910_v46 = vpop.f32.mrf.mxu1 }
  0xe5   :  { %v965_v32 = vrot.slane %v9908_v45, 7  ;;  %v967_v33 = vrot.slane %v9910_v46, 7 }
  0xe6   :  { %v9912_v47 = vpop.f32.mrf.mxu0  ;;  %v9914_v48 = vpop.f32.mrf.mxu1 }
  0xe7   :  { %v968_v34 = vrot.slane %v9912_v47, 7  ;;  %v972_v42 = vrot.slane %v9914_v48, 7 }
  0xe8   :  { %v9916_v49 = vpop.f32.mrf.mxu0  ;;  %v9918_v50 = vpop.f32.mrf.mxu1 }
  0xe9   :  { %v970_v43 = vrot.slane %v9916_v49, 7  ;;  %v974_v2 = vrot.slane %v9918_v50, 7  ;;  %v1004_v49 = vsel %vm963_vm0, 0.0, %v964_v27  ;;  %v1006_v50 = vsel %vm963_vm0, 0.0, %v966_v31 }
  0xea   :  { %v9920_v51 = vpop.f32.mrf.mxu0  ;;  %v9922_v52 = vpop.f32.mrf.mxu1 }
  0xeb   :  { %v976_v10 = vrot.slane %v9920_v51, 7  ;;  %v978_v30 = vrot.slane %v9922_v52, 7  ;;  %v1005_v51 = vsel %vm963_vm0, 0.0, %v965_v32  ;;  %v1007_v52 = vsel %vm963_vm0, 0.0, %v967_v33 }
  0xec   :  { %v9924_v53 = vpop.f32.mrf.mxu0  ;;  %v9926_v54 = vpop.f32.mrf.mxu1 }
  0xed   :  { %v977_v44 = vrot.slane %v9924_v53, 7  ;;  %v979_v45 = vrot.slane %v9926_v54, 7  ;;  %v969_v53 = vsel %vm963_vm0, %v964_v27, %v968_v34  ;;  %v1010_v29 = vsel %vm963_vm0, 0.0, %v978_v30 }
  0xee   :  { %v9928_v55 = vpop.f32.mrf.mxu0  ;;  %v9930_v56 = vpop.f32.mrf.mxu1 }
  0xef   :  { %v980_v46 = vrot.slane %v9928_v55, 7  ;;  %v984_v47 = vrot.slane %v9930_v56, 7  ;;  %v973_v55 = vsel %vm963_vm0, %v966_v31, %v972_v42  ;;  %v971_v56 = vsel %vm963_vm0, %v965_v32, %v970_v43 }
  0xf0   :  { %v9932_v57 = vpop.f32.mrf.mxu0  ;;  %v9934_v58 = vpop.f32.mrf.mxu1  ;;  %v1009_v26 = vsel %vm963_vm0, 0.0, %v977_v44  ;;  %v1011_v41 = vsel %vm963_vm0, 0.0, %v979_v45 }
  0xf1   :  { %v982_v28 = vrot.slane %v9932_v57, 7  ;;  %v986_v48 = vrot.slane %v9934_v58, 7  ;;  %v975_v57 = vsel %vm963_vm0, %v967_v33, %v974_v2  ;;  %v1008_v58 = vsel %vm963_vm0, 0.0, %v976_v10 }
  0xf2   :  { %v981_v1 = vsel %vm963_vm0, %v976_v10, %v980_v46  ;;  %v985_v31 = vsel %vm963_vm0, %v978_v30, %v984_v47 }
  0xf3   :  { %v983_v32 = vsel %vm963_vm0, %v977_v44, %v982_v28  ;;  %v10064_v33 = vsel %vm963_vm0, %v979_v45, %v986_v48 }
 0x102   :  { %v9936_v59 = vpop.f32.mrf.mxu0  ;;  %v9938_v60 = vpop.f32.mrf.mxu1 }
 0x103   :  { %v1012_v5 = vadd.f32 %v1004_v49, %v9936_v59  ;;  %v1014_v42 = vadd.f32 %v1006_v50, %v9938_v60 }
 0x104   :  { %v9940_v61 = vpop.f32.mrf.mxu0  ;;  %v9942_v62 = vpop.f32.mrf.mxu1 }
 0x105   :  { %v1013_v43 = vadd.f32 %v1005_v51, %v9940_v61  ;;  %v1015_v2 = vadd.f32 %v1007_v52, %v9942_v62 }
 0x106   :  { %v9944_v63 = vpop.f32.mrf.mxu0  ;;  %v9946_v0 = vpop.f32.mrf.mxu1 }
 0x107   :  { %v1016_v12 = vadd.f32 %v969_v53, %v9944_v63  ;;  %v1018_v9 = vadd.f32 %v973_v55, %v9946_v0 }
 0x108   :  { %v9948_v3 = vpop.f32.mrf.mxu0  ;;  %v9950_v4 = vpop.f32.mrf.mxu1 }
 0x109   :  { %v1017_v59 = vadd.f32 %v971_v56, %v9948_v3  ;;  %v1019_v30 = vadd.f32 %v975_v57, %v9950_v4 }
 0x10a   :  { %v9954_v6 = vpop.f32.mrf.mxu0  ;;  %v9956_v7 = vpop.f32.mrf.mxu1 }
 0x10b   :  { %v10074_v28 = vadd.f32 %v1008_v58, %v9954_v6  ;;  %v10077_v44 = vadd.f32 %v1010_v29, %v9956_v7 }
 0x10c   :  { %v9988_v16 = vpop.f32.mrf.mxu0  ;;  %v9990_v17 = vpop.f32.mrf.mxu1 }
 0x10d   :  { %v10080_v60 = vadd.f32 %v1009_v26, %v9988_v16  ;;  %v10083_v61 = vadd.f32 %v1011_v41, %v9990_v17 }
 0x10e   :  { %v590_v36 = vpop.f32.mrf.mxu0  ;;  %v643_v39 = vpop.f32.mrf.mxu1 }
 0x10f   :  { %v10085_v62 = vadd.f32 %v981_v1, %v590_v36  ;;  %v10087_v48 = vadd.f32 %v985_v31, %v643_v39 }
 0x110   :  { %v592_v54 = vpop.f32.mrf.mxu0  ;;  %v10050_v25 = vpop.f32.mrf.mxu1 }
 0x111   :  { %v10089_v6 = vadd.f32 %v983_v32, %v592_v54 }
 0x122   :  { %v875_v27 = vpop.f32.mrf.mxu0  ;;  %v928_v34 = vpop.f32.mrf.mxu1 }
 0x123   :  { %v1045_v45 = vrot.slane %v875_v27, 1  ;;  %v1051_v3 = vrot.slane %v928_v34, 1 }
 0x124   :  { %v877_v10 = vpop.f32.mrf.mxu0  ;;  %v930_v46 = vpop.f32.mrf.mxu1 }
 0x125   :  { %v1048_v7 = vrot.slane %v877_v10, 1  ;;  %v1054_v29 = vrot.slane %v930_v46, 1 }
 0x126   :  { %v879_v63 = vpop.f32.mrf.mxu0  ;;  %v932_v0 = vpop.f32.mrf.mxu1 }
 0x127   :  { %v1046_v47 = vrot.slane %v879_v63, 1  ;;  %v1052_v4 = vrot.slane %v932_v0, 1 }
 0x128   :  { %v881_v49 = vpop.f32.mrf.mxu0  ;;  %v934_v16 = vpop.f32.mrf.mxu1 }
 0x129   :  { %v1047_v26 = vsel %vm1044_vm1, %v1045_v45, %v1046_v47  ;;  %v1085_v41 = vsel %vm1044_vm1, %v1046_v47, 0.0  ;;  %v1053_v1 = vsel %vm1044_vm1, %v1051_v3, %v1052_v4  ;;  %v1087_v17 = vsel %vm1044_vm1, %v1052_v4, 0.0 }
 0x12a   :  { %v1093_v36 = vadd.f32 %v1047_v26, %v1012_v5  ;;  %v1097_v50 = vadd.f32 %v1085_v41, %v1016_v12  ;;  %v1095_v51 = vadd.f32 %v1053_v1, %v1014_v42  ;;  %v1099_v52 = vadd.f32 %v1087_v17, %v1018_v9  ;;  %v885_v39 = vpop.f32.mrf.mxu0  ;;  %v938_v53 = vpop.f32.mrf.mxu1 }
 0x12b   :  { %v1049_v54 = vrot.slane %v881_v49, 1  ;;  %v1055_v55 = vrot.slane %v934_v16, 1  ;;  %v1057_v56 = vrot.slane %v885_v39, 1  ;;  %v1063_v57 = vrot.slane %v938_v53, 1 }
 0x12c   :  { %v1131_v58 = vadd.f32 %v10008_v21, %v1093_v36  ;;  %v1135_v27 = vadd.f32 %v10008_v21, %v1097_v50  ;;  %v1133_v34 = vadd.f32 %v10011_v22, %v1095_v51  ;;  %v1137_v31 = vadd.f32 %v10011_v22, %v1099_v52  ;;  %v887_v32 = vpop.f32.mrf.mxu0  ;;  %v940_v10 = vpop.f32.mrf.mxu1 }
 0x12d   :  { %v1050_v5 = vsel %vm1044_vm1, %v1048_v7, %v1049_v54  ;;  %v1086_v9 = vsel %vm1044_vm1, %v1049_v54, 0.0  ;;  %v1056_v12 = vsel %vm1044_vm1, %v1054_v29, %v1055_v55  ;;  %v1088_v42 = vsel %vm1044_vm1, %v1055_v55, 0.0 }
 0x12e   :  { %v1147_v46 = vmax.f32 %v1131_v58, 0.0  ;;  %v1151_v63 = vmax.f32 %v1135_v27, 0.0  ;;  %v1149_v0 = vmax.f32 %v1133_v34, 0.0  ;;  %v1153_v45 = vmax.f32 %v1137_v31, 0.0  ;;  %v889_v3 = vpop.f32.mrf.mxu0  ;;  %v942_v47 = vpop.f32.mrf.mxu1 }
 0x12f   :  { %v1094_v4 = vadd.f32 %v1050_v5, %v1013_v43  ;;  %v1098_v49 = vadd.f32 %v1086_v9, %v1017_v59  ;;  %v1096_v16 = vadd.f32 %v1056_v12, %v1015_v2  ;;  %v1100_v26 = vadd.f32 %v1088_v42, %v1019_v30 }
 0x130   :  { %v10103_v41 = vpack.c.bf16 %v1151_v63, %v1147_v46  ;;  %v10105_v1 = vpack.c.bf16 %v1153_v45, %v1149_v0  ;;  %v1060_v7 = vrot.slane %v887_v32, 1  ;;  %v1066_v17 = vrot.slane %v940_v10, 1  ;;  %v891_v36 = vpop.f32.mrf.mxu0  ;;  %v944_v29 = vpop.f32.mrf.mxu1 }
 0x131   :  { %v1132_v50 = vadd.f32 %v10014_v23, %v1094_v4  ;;  %v1136_v51 = vadd.f32 %v10014_v23, %v1098_v49  ;;  %v1134_v52 = vadd.f32 %v10017_v24, %v1096_v16  ;;  %v1138_v39 = vadd.f32 %v10017_v24, %v1100_v26 }
 0x132   :  { %v1058_v43 = vrot.slane %v889_v3, 1  ;;  %v1064_v59 = vrot.slane %v942_v47, 1  ;;  %v1061_v2 = vrot.slane %v891_v36, 1  ;;  %v1067_v30 = vrot.slane %v944_v29, 1 }
 0x133   :  { %v1148_v53 = vmax.f32 %v1132_v50, 0.0  ;;  %v1152_v54 = vmax.f32 %v1136_v51, 0.0  ;;  %v1150_v55 = vmax.f32 %v1134_v52, 0.0  ;;  %v1154_v58 = vmax.f32 %v1138_v39, 0.0 }
 0x134   :  { %v1059_v27 = vsel %vm1044_vm1, %v1057_v56, %v1058_v43  ;;  %v1089_v34 = vsel %vm1044_vm1, %v1058_v43, 0.0  ;;  %v1065_v31 = vsel %vm1044_vm1, %v1063_v57, %v1064_v59  ;;  %v1091_v32 = vsel %vm1044_vm1, %v1064_v59, 0.0  ;;  %v1336_v43 = vld [vmem:[%s12762_s4 + $0x528] sm:$0xff] }
 0x135   :  { %v10115_v10 = vpack.c.bf16 %v1152_v54, %v1148_v53  ;;  %v10117_v5 = vpack.c.bf16 %v1154_v58, %v1150_v55  ;;  %v1101_v9 = vadd.f32 %v1059_v27, %v10074_v28  ;;  %v1105_v12 = vadd.f32 %v1089_v34, %v10085_v62  ;;  %v1196_v55 = vld [vmem:[%s12762_s4 + $0xc8] sm:$0xff] }
 0x136   :  { %v1103_v42 = vadd.f32 %v1065_v31, %v10077_v44  ;;  %v1107_v46 = vadd.f32 %v1091_v32, %v10087_v48  ;;  %v1062_v56 = vsel %vm1044_vm1, %v1060_v7, %v1061_v2  ;;  %v1090_v63 = vsel %vm1044_vm1, %v1061_v2, 0.0  ;;  %v1200_v58 = vld [vmem:[%s12762_s4 + $0xe8] sm:$0xff] }
 0x137   :  { %v1139_v57 = vadd.f32 %v10008_v21, %v1101_v9  ;;  %v1143_v0 = vadd.f32 %v10008_v21, %v1105_v12  ;;  %v1102_v45 = vadd.f32 %v1062_v56, %v10080_v60  ;;  %v1106_v3 = vadd.f32 %v1090_v63, %v10089_v6  ;;  %2739 = vmatprep.mubr.bf16.mxu0 %v10115_v10  ;;  %v1340_v21 = vld [vmem:[%s12762_s4 + $0x548] sm:$0xff] }
 0x138   :  { %v1027_v28 = vadd.f32 %v10064_v33, %v10050_v25  ;;  %v1141_v44 = vadd.f32 %v10011_v22, %v1103_v42  ;;  %v1068_v62 = vsel %vm1044_vm1, %v1066_v17, %v1067_v30  ;;  %v1092_v48 = vsel %vm1044_vm1, %v1067_v30, 0.0  ;;  %2792 = vmatprep.mubr.bf16.mxu1 %v10117_v5  ;;  %2740 = vmatmul.mubr.bf16.vlgmr.msra.gmra.mxu0 %v10103_v41  ;;  %v1344_v60 = vld [vmem:[%s12762_s4 + $0x568] sm:$0xff] }
 0x139   :  { %v1145_v25 = vadd.f32 %v10011_v22, %v1107_v46  ;;  %v1140_v33 = vadd.f32 %v10014_v23, %v1102_v45  ;;  %v1144_v6 = vadd.f32 %v10014_v23, %v1106_v3  ;;  %2793 = vmatmul.mubr.bf16.vlgmr.msra.gmra.mxu1 %v10105_v1  ;;  %v12801_v47 = vcombine.low %v9879_v37, %v9884_v38  ;;  %v1188_v12 = vld [vmem:[%s12762_s4 + $0x88] sm:$0xff] }
 0x13a   :  { %v1155_v4 = vmax.f32 %v1139_v57, 0.0  ;;  %v1159_v49 = vmax.f32 %v1143_v0, 0.0  ;;  %v1104_v16 = vadd.f32 %v1068_v62, %v10083_v61  ;;  %v1108_v26 = vadd.f32 %v1092_v48, %v1027_v28  ;;  %v1192_v42 = vld [vmem:[%s12762_s4 + $0xa8] sm:$0xff] }
 0x13b   :  { %2814 = vmatpush1.bf16.msra.mxu0 %v12801_v47  ;;  %v12802_v7 = vcombine.low %v9889_v35, %v9896_v40  ;;  %v12803_v22 = vcombine.high %v9976_v13, %v9981_v14  ;;  %v1156_v23 = vmax.f32 %v1140_v33, 0.0  ;;  %v1160_v17 = vmax.f32 %v1144_v6, 0.0  ;;  %v1204_v35 = vld [vmem:[%s12762_s4 + $0x108] sm:$0xff] }
 0x13c   :  { %v12804_v36 = vcombine.high %v9986_v15, %v9995_v18  ;;  %v8055_v37 = vcombine.high %v1340_v21, %v1344_v60  ;;  %v1142_v38 = vadd.f32 %v10017_v24, %v1104_v16  ;;  %v1146_v61 = vadd.f32 %v10017_v24, %v1108_v26  ;;  %v1208_v40 = vld [vmem:[%s12762_s4 + $0x128] sm:$0xff] }
 0x13d   :  { %2867 = vmatpush1.bf16.msra.mxu1 %v12802_v7  ;;  %2815 = vmatprep.subr.bf16.mxu0 %v12803_v22  ;;  %v1157_v29 = vmax.f32 %v1141_v44, 0.0  ;;  %v1161_v50 = vmax.f32 %v1145_v25, 0.0  ;;  %v10168_v51 = vpack.c.bf16 %v1160_v17, %v1156_v23  ;;  %v12805_v52 = vcombine.low %v9976_v13, %v9981_v14  ;;  %v1332_v24 = vld [vmem:[%s12762_s4 + $0x508] sm:$0xff] }
 0x13e   :  { %2868 = vmatprep.subr.bf16.mxu1 %v12804_v36  ;;  %v7926_v39 = vcombine.low %v10000_v19, %v10005_v20  ;;  %v10181_v59 = vpack.c.bf16 %v1159_v49, %v1155_v4  ;;  %v1158_v2 = vmax.f32 %v1142_v38, 0.0  ;;  %v1162_v30 = vmax.f32 %v1146_v61, 0.0  ;;  %v1316_v46 = vld [vmem:[%s12762_s4 + $0x488] sm:$0xff] }
 0x13f   :  { %2816 = vmatpush1.bf16.msra.mxu0 %v12805_v52  ;;  %v12806_v53 = vcombine.low %v9986_v15, %v9995_v18  ;;  %v12807_v13 = vcombine.high %v10000_v19, %v10005_v20  ;;  %v8054_v14 = vcombine.low %v1340_v21, %v1344_v60  ;;  %2749 = vmatprep.mubr.bf16.mxu0 %v10168_v51  ;;  %v1324_v18 = vld [vmem:[%s12762_s4 + $0x4c8] sm:$0xff] }
 0x140   :  { %v7919_v54 = vcombine.high %v1204_v35, %v1208_v40  ;;  %v10196_v27 = vpack.c.bf16 %v1162_v30, %v1158_v2  ;;  %2750 = vmatmul.mubr.bf16.gmra.mxu0 %v10181_v59  ;;  %v8047_v15 = vcombine.high %v1332_v24, %v1336_v43  ;;  %v1328_v19 = vld [vmem:[%s12762_s4 + $0x4e8] sm:$0xff]  ;;  %v10205_v20 = vpack.c.bf16 %v1161_v50, %v1157_v29 }
 0x141   :  { %2869 = vmatpush1.bf16.msra.mxu1 %v12806_v53  ;;  %2817 = vmatprep.subr.bf16.mxu0 %v12807_v13  ;;  %v7918_v34 = vcombine.low %v1204_v35, %v1208_v40  ;;  %v8046_v31 = vcombine.low %v1332_v24, %v1336_v43  ;;  %v7911_v32 = vcombine.high %v1196_v55, %v1200_v58  ;;  %v1320_v56 = vld [vmem:[%s12762_s4 + $0x4a8] sm:$0xff] }
 0x142   :  { %2870 = vmatprep.subr.bf16.mxu1 %v8055_v37  ;;  %2845 = vmatprep.mubr.bf16.mxu0 %v10115_v10  ;;  %v8039_v9 = vcombine.high %v1324_v18, %v1328_v19  ;;  %v7910_v63 = vcombine.low %v1196_v55, %v1200_v58  ;;  %v8038_v57 = vcombine.low %v1324_v18, %v1328_v19  ;;  %v1180_v3 = vld [vmem:[%s12762_s4 + $0x48] sm:$0xff] }
 0x143   :  { %2818 = vmatpush1.bf16.msra.mxu0 %v7926_v39  ;;  %2802 = vmatprep.mubr.bf16.mxu1 %v10196_v27  ;;  %v7903_v0 = vcombine.high %v1188_v12, %v1192_v42  ;;  %v8031_v45 = vcombine.high %v1316_v46, %v1320_v56  ;;  %v1184_v28 = vld [vmem:[%s12762_s4 + $0x68] sm:$0xff]  ;;  %v7902_v48 = vcombine.low %v1188_v12, %v1192_v42 }
 0x144   :  { %2803 = vmatmul.mubr.bf16.gmra.mxu1 %v10205_v20  ;;  %2819 = vmatprep.subr.bf16.mxu0 %v7919_v54  ;;  %v1308_v44 = vld [vmem:[%s12762_s4 + $0x448] sm:$0xff]  ;;  %v8030_v21 = vcombine.low %v1316_v46, %v1320_v56  ;;  %v7895_v60 = vcombine.high %v1180_v3, %v1184_v28  ;;  %v7894_v49 = vcombine.low %v1180_v3, %v1184_v28 }
 0x145   :  { %2871 = vmatpush1.bf16.msra.mxu1 %v8054_v14  ;;  %2898 = vmatprep.mubr.bf16.mxu1 %v10117_v5  ;;  %v1312_v62 = vld [vmem:[%s12762_s4 + $0x468] sm:$0xff] }
 0x146   :  { %2872 = vmatprep.subr.bf16.mxu1 %v8047_v15  ;;  %v8023_v25 = vcombine.high %v1308_v44, %v1312_v62  ;;  %v1172_v33 = vld [vmem:[%s12762_s4 + $0x8] sm:$0xff]  ;;  %v8022_v16 = vcombine.low %v1308_v44, %v1312_v62 }
 0x147   :  { %2820 = vmatpush1.bf16.msra.mxu0 %v7918_v34  ;;  %v1176_v6 = vld [vmem:[%s12762_s4 + $0x28] sm:$0xff] }
 0x148   :  { %2821 = vmatprep.subr.bf16.mxu0 %v7911_v32  ;;  %v1300_v47 = vld [vmem:[%s12762_s4 + $0x408] sm:$0xff]  ;;  %v7887_v26 = vcombine.high %v1172_v33, %v1176_v6  ;;  %v7886_v37 = vcombine.low %v1172_v33, %v1176_v6 }
 0x149   :  { %2873 = vmatpush1.bf16.msra.mxu1 %v8046_v31  ;;  %v1304_v4 = vld [vmem:[%s12762_s4 + $0x428] sm:$0xff] }
 0x14a   :  { %2874 = vmatprep.subr.bf16.mxu1 %v8039_v9  ;;  %v8015_v7 = vcombine.high %v1300_v47, %v1304_v4  ;;  %v1292_v22 = vld [vmem:[%s12762_s4 + $0x3c8] sm:$0xff]  ;;  %v8014_v38 = vcombine.low %v1300_v47, %v1304_v4 }
 0x14b   :  { %2822 = vmatpush1.bf16.msra.mxu0 %v7910_v63  ;;  %v1296_v23 = vld [vmem:[%s12762_s4 + $0x3e8] sm:$0xff] }
 0x14c   :  { %2823 = vmatprep.subr.bf16.mxu0 %v7903_v0  ;;  %v1420_v17 = vld [vmem:[%s12762_s4 + $0x7c8] sm:$0xff]  ;;  %v8007_v61 = vcombine.high %v1292_v22, %v1296_v23  ;;  %v8006_v39 = vcombine.low %v1292_v22, %v1296_v23 }
 0x14d   :  { %2875 = vmatpush1.bf16.msra.mxu1 %v8038_v57  ;;  %v1424_v36 = vld [vmem:[%s12762_s4 + $0x7e8] sm:$0xff] }
 0x14e   :  { %2876 = vmatprep.subr.bf16.mxu1 %v8031_v45  ;;  %v8135_v35 = vcombine.high %v1420_v17, %v1424_v36  ;;  %v1284_v40 = vld [vmem:[%s12762_s4 + $0x388] sm:$0xff]  ;;  %v8134_v24 = vcombine.low %v1420_v17, %v1424_v36 }
 0x14f   :  { %2824 = vmatpush1.bf16.msra.mxu0 %v7902_v48  ;;  %v1288_v29 = vld [vmem:[%s12762_s4 + $0x3a8] sm:$0xff] }
 0x150   :  { %2825 = vmatprep.subr.bf16.mxu0 %v7895_v60  ;;  %v1412_v50 = vld [vmem:[%s12762_s4 + $0x788] sm:$0xff]  ;;  %v7999_v43 = vcombine.high %v1284_v40, %v1288_v29  ;;  %v7998_v54 = vcombine.low %v1284_v40, %v1288_v29 }
 0x151   :  { %2877 = vmatpush1.bf16.msra.mxu1 %v8030_v21  ;;  %v1416_v52 = vld [vmem:[%s12762_s4 + $0x7a8] sm:$0xff] }
 0x152   :  { %2878 = vmatprep.subr.bf16.mxu1 %v8023_v25  ;;  %v8127_v2 = vcombine.high %v1412_v50, %v1416_v52  ;;  %v1276_v30 = vld [vmem:[%s12762_s4 + $0x348] sm:$0xff]  ;;  %v8126_v55 = vcombine.low %v1412_v50, %v1416_v52  ;;  %v1229_v50 = vld [vmem:[%s12762_s4 + $0x1d0] sm:$0xff] }
 0x153   :  { %2826 = vmatpush1.bf16.msra.mxu0 %v7894_v49  ;;  %v1280_v53 = vld [vmem:[%s12762_s4 + $0x368] sm:$0xff]  ;;  %v1233_v52 = vld [vmem:[%s12762_s4 + $0x1f0] sm:$0xff] }
 0x154   :  { %2827 = vmatprep.subr.bf16.mxu0 %v7887_v26  ;;  %v1404_v13 = vld [vmem:[%s12762_s4 + $0x748] sm:$0xff]  ;;  %v7991_v58 = vcombine.high %v1276_v30, %v1280_v53  ;;  %v7990_v32 = vcombine.low %v1276_v30, %v1280_v53  ;;  %v7945_v30 = vcombine.high %v1229_v50, %v1233_v52 }
 0x155   :  { %2879 = vmatpush1.bf16.msra.mxu1 %v8022_v16  ;;  %v1408_v14 = vld [vmem:[%s12762_s4 + $0x768] sm:$0xff] }
 0x156   :  { %2880 = vmatprep.subr.bf16.mxu1 %v8015_v7  ;;  %v8119_v15 = vcombine.high %v1404_v13, %v1408_v14  ;;  %v1268_v18 = vld [vmem:[%s12762_s4 + $0x308] sm:$0xff]  ;;  %v8118_v9 = vcombine.low %v1404_v13, %v1408_v14  ;;  %v1221_v13 = vld [vmem:[%s12762_s4 + $0x190] sm:$0xff] }
 0x157   :  { %2828 = vmatpush1.bf16.msra.mxu0 %v7886_v37  ;;  %v1272_v19 = vld [vmem:[%s12762_s4 + $0x328] sm:$0xff]  ;;  %v1225_v14 = vld [vmem:[%s12762_s4 + $0x1b0] sm:$0xff] }
 0x158   :  { %2829 = vmatprep.subr.bf16.mxu0 %v8007_v61  ;;  %v1396_v34 = vld [vmem:[%s12762_s4 + $0x708] sm:$0xff]  ;;  %v7983_v12 = vcombine.high %v1268_v18, %v1272_v19  ;;  %v7982_v0 = vcombine.low %v1268_v18, %v1272_v19  ;;  %v7937_v18 = vcombine.high %v1221_v13, %v1225_v14 }
 0x159   :  { %2881 = vmatpush1.bf16.msra.mxu1 %v8014_v38  ;;  %v1400_v31 = vld [vmem:[%s12762_s4 + $0x728] sm:$0xff] }
 0x15a   :  { %2882 = vmatprep.subr.bf16.mxu1 %v8135_v35  ;;  %v8111_v42 = vcombine.high %v1396_v34, %v1400_v31  ;;  %v1260_v46 = vld [vmem:[%s12762_s4 + $0x2c8] sm:$0xff]  ;;  %v8110_v45 = vcombine.low %v1396_v34, %v1400_v31  ;;  %v1213_v34 = vld [vmem:[%s12762_s4 + $0x150] sm:$0xff] }
 0x15b   :  { %2830 = vmatpush2.bf16.msra.mxu0 %v8006_v39  ;;  %v1264_v56 = vld [vmem:[%s12762_s4 + $0x2e8] sm:$0xff]  ;;  %v1357_v39 = vld [vmem:[%s12762_s4 + $0x5d0] sm:$0xff] }
 0x15c   :  { %2831 = vmatprep.subr.bf16.mxu0 %v7999_v43  ;;  %v1388_v63 = vld [vmem:[%s12762_s4 + $0x6c8] sm:$0xff]  ;;  %v7975_v3 = vcombine.high %v1260_v46, %v1264_v56  ;;  %v7974_v60 = vcombine.low %v1260_v46, %v1264_v56  ;;  %v1217_v31 = vld [vmem:[%s12762_s4 + $0x170] sm:$0xff] }
 0x15d   :  { %2883 = vmatpush2.bf16.msra.mxu1 %v8134_v24  ;;  %v1392_v57 = vld [vmem:[%s12762_s4 + $0x6e8] sm:$0xff]  ;;  %v1361_v24 = vld [vmem:[%s12762_s4 + $0x5f0] sm:$0xff]  ;;  %v7929_v46 = vcombine.high %v1213_v34, %v1217_v31 }
 0x15e   :  { %2884 = vmatprep.subr.bf16.mxu1 %v8127_v2  ;;  %v8103_v28 = vcombine.high %v1388_v63, %v1392_v57  ;;  %v1252_v44 = vld [vmem:[%s12762_s4 + $0x288] sm:$0xff]  ;;  %v8102_v25 = vcombine.low %v1388_v63, %v1392_v57  ;;  %v8073_v53 = vcombine.high %v1357_v39, %v1361_v24  ;;  %v1205_v63 = vld [vmem:[%s12762_s4 + $0x110] sm:$0xff] }
 0x15f   :  { %2832 = vmatpush2.bf16.msra.mxu0 %v7998_v54  ;;  %v1256_v62 = vld [vmem:[%s12762_s4 + $0x2a8] sm:$0xff]  ;;  %v1349_v54 = vld [vmem:[%s12762_s4 + $0x590] sm:$0xff] }
 0x160   :  { %2833 = vmatprep.subr.bf16.mxu0 %v7991_v58  ;;  %v1380_v48 = vld [vmem:[%s12762_s4 + $0x688] sm:$0xff]  ;;  %v7967_v33 = vcombine.high %v1252_v44, %v1256_v62  ;;  %v7966_v26 = vcombine.low %v1252_v44, %v1256_v62  ;;  %v7944_v58 = vcombine.low %v1229_v50, %v1233_v52  ;;  %v1209_v57 = vld [vmem:[%s12762_s4 + $0x130] sm:$0xff] }
 0x161   :  { %2885 = vmatpush2.bf16.msra.mxu1 %v8126_v55  ;;  %v1384_v21 = vld [vmem:[%s12762_s4 + $0x6a8] sm:$0xff]  ;;  %v1353_v55 = vld [vmem:[%s12762_s4 + $0x5b0] sm:$0xff]  ;;  %v7921_v44 = vcombine.high %v1205_v63, %v1209_v57 }
 0x162   :  { %2886 = vmatprep.subr.bf16.mxu1 %v8119_v15  ;;  %v8095_v6 = vcombine.high %v1380_v48, %v1384_v21  ;;  %v1244_v47 = vld [vmem:[%s12762_s4 + $0x248] sm:$0xff]  ;;  %v8094_v7 = vcombine.low %v1380_v48, %v1384_v21  ;;  %v8072_v15 = vcombine.low %v1357_v39, %v1361_v24  ;;  %v8065_v19 = vcombine.high %v1349_v54, %v1353_v55  ;;  %v1197_v48 = vld [vmem:[%s12762_s4 + $0xd0] sm:$0xff] }
 0x163   :  { %2834 = vmatpush2.bf16.msra.mxu0 %v7990_v32  ;;  %v1248_v4 = vld [vmem:[%s12762_s4 + $0x268] sm:$0xff]  ;;  %v1341_v32 = vld [vmem:[%s12762_s4 + $0x550] sm:$0xff] }
 0x164   :  { %2835 = vmatprep.subr.bf16.mxu0 %v7983_v12  ;;  %v1372_v49 = vld [vmem:[%s12762_s4 + $0x648] sm:$0xff]  ;;  %v7959_v22 = vcombine.high %v1244_v47, %v1248_v4  ;;  %v7958_v61 = vcombine.low %v1244_v47, %v1248_v4  ;;  %v7936_v12 = vcombine.low %v1221_v13, %v1225_v14  ;;  %v1201_v21 = vld [vmem:[%s12762_s4 + $0xf0] sm:$0xff] }
 0x165   :  { %2887 = vmatpush2.bf16.msra.mxu1 %v8118_v9  ;;  %v1376_v16 = vld [vmem:[%s12762_s4 + $0x668] sm:$0xff]  ;;  %v1345_v9 = vld [vmem:[%s12762_s4 + $0x570] sm:$0xff]  ;;  %v7913_v47 = vcombine.high %v1197_v48, %v1201_v21 }
 0x166   :  { %2888 = vmatprep.subr.bf16.mxu1 %v8111_v42  ;;  %v8087_v23 = vcombine.high %v1372_v49, %v1376_v16  ;;  %v1236_v17 = vld [vmem:[%s12762_s4 + $0x208] sm:$0xff]  ;;  %v8086_v35 = vcombine.low %v1372_v49, %v1376_v16  ;;  %v8064_v42 = vcombine.low %v1349_v54, %v1353_v55  ;;  %v8057_v56 = vcombine.high %v1341_v32, %v1345_v9  ;;  %v1189_v49 = vld [vmem:[%s12762_s4 + $0x90] sm:$0xff] }
 0x167   :  { %2836 = vmatpush2.bf16.msra.mxu0 %v7982_v0  ;;  %v1240_v36 = vld [vmem:[%s12762_s4 + $0x228] sm:$0xff]  ;;  %v1333_v0 = vld [vmem:[%s12762_s4 + $0x510] sm:$0xff] }
 0x168   :  { %2837 = vmatprep.subr.bf16.mxu0 %v7975_v3  ;;  %v1364_v37 = vld [vmem:[%s12762_s4 + $0x608] sm:$0xff]  ;;  %v7951_v40 = vcombine.high %v1236_v17, %v1240_v36  ;;  %v7950_v43 = vcombine.low %v1236_v17, %v1240_v36  ;;  %v7928_v3 = vcombine.low %v1213_v34, %v1217_v31  ;;  %v1193_v16 = vld [vmem:[%s12762_s4 + $0xb0] sm:$0xff] }
 0x169   :  { %2889 = vmatpush2.bf16.msra.mxu1 %v8110_v45  ;;  %v1368_v38 = vld [vmem:[%s12762_s4 + $0x628] sm:$0xff]  ;;  %v1337_v45 = vld [vmem:[%s12762_s4 + $0x530] sm:$0xff]  ;;  %v7905_v17 = vcombine.high %v1189_v49, %v1193_v16 }
 0x16a   :  { %2890 = vmatprep.subr.bf16.mxu1 %v8103_v28  ;;  %v8079_v29 = vcombine.high %v1364_v37, %v1368_v38  ;;  %v8078_v2 = vcombine.low %v1364_v37, %v1368_v38  ;;  %v8056_v28 = vcombine.low %v1341_v32, %v1345_v9  ;;  %v8049_v62 = vcombine.high %v1333_v0, %v1337_v45  ;;  %v1181_v37 = vld [vmem:[%s12762_s4 + $0x50] sm:$0xff] }
 0x16b   :  { %2838 = vmatpush2.bf16.msra.mxu0 %v7974_v60  ;;  %v1325_v60 = vld [vmem:[%s12762_s4 + $0x4d0] sm:$0xff] }
 0x16c   :  { %2839 = vmatprep.subr.bf16.mxu0 %v7967_v33  ;;  %v7920_v33 = vcombine.low %v1205_v63, %v1209_v57  ;;  %v1185_v38 = vld [vmem:[%s12762_s4 + $0x70] sm:$0xff] }
 0x16d   :  { %2891 = vmatpush2.bf16.msra.mxu1 %v8102_v25  ;;  %v1329_v25 = vld [vmem:[%s12762_s4 + $0x4f0] sm:$0xff]  ;;  %v7897_v50 = vcombine.high %v1181_v37, %v1185_v38 }
 0x16e   :  { %2892 = vmatprep.subr.bf16.mxu1 %v8095_v6  ;;  %v8048_v6 = vcombine.low %v1333_v0, %v1337_v45  ;;  %v8041_v4 = vcombine.high %v1325_v60, %v1329_v25  ;;  %v1173_v39 = vld [vmem:[%s12762_s4 + $0x10] sm:$0xff] }
 0x16f   :  { %2840 = vmatpush2.bf16.msra.mxu0 %v7966_v26  ;;  %v1317_v26 = vld [vmem:[%s12762_s4 + $0x490] sm:$0xff] }
 0x170   :  { %2841 = vmatprep.subr.bf16.mxu0 %v7959_v22  ;;  %v7912_v22 = vcombine.low %v1197_v48, %v1201_v21  ;;  %v1177_v24 = vld [vmem:[%s12762_s4 + $0x30] sm:$0xff] }
 0x171   :  { %2893 = vmatpush2.bf16.msra.mxu1 %v8094_v7  ;;  %v1321_v7 = vld [vmem:[%s12762_s4 + $0x4b0] sm:$0xff]  ;;  %v7889_v13 = vcombine.high %v1173_v39, %v1177_v24 }
 0x172   :  { %2894 = vmatprep.subr.bf16.mxu1 %v8087_v23  ;;  %v8040_v23 = vcombine.low %v1325_v60, %v1329_v25  ;;  %v8033_v36 = vcombine.high %v1317_v26, %v1321_v7  ;;  %v1293_v54 = vld [vmem:[%s12762_s4 + $0x3d0] sm:$0xff] }
 0x173   :  { %2842 = vmatpush2.bf16.msra.mxu0 %v7958_v61  ;;  %v1309_v61 = vld [vmem:[%s12762_s4 + $0x450] sm:$0xff] }
 0x174   :  { %2843 = vmatprep.subr.bf16.mxu0 %v7951_v40  ;;  %v7904_v40 = vcombine.low %v1189_v49, %v1193_v16  ;;  %v1297_v55 = vld [vmem:[%s12762_s4 + $0x3f0] sm:$0xff] }
 0x175   :  { %2895 = vmatpush2.bf16.msra.mxu1 %v8086_v35  ;;  %v1313_v35 = vld [vmem:[%s12762_s4 + $0x470] sm:$0xff]  ;;  %v8009_v34 = vcombine.high %v1293_v54, %v1297_v55 }
 0x176   :  { %2896 = vmatprep.subr.bf16.mxu1 %v8079_v29  ;;  %v8032_v29 = vcombine.low %v1317_v26, %v1321_v7  ;;  %v8025_v52 = vcombine.high %v1309_v61, %v1313_v35  ;;  %v1285_v32 = vld [vmem:[%s12762_s4 + $0x390] sm:$0xff] }
 0x177   :  { %2844 = vmatpush2.bf16.msra.mxu0 %v7950_v43  ;;  %v1301_v43 = vld [vmem:[%s12762_s4 + $0x410] sm:$0xff] }
 0x178   :  { %2919 = vmatprep.subr.bf16.mxu0 %v7945_v30  ;;  %v7896_v30 = vcombine.low %v1181_v37, %v1185_v38  ;;  %v1289_v9 = vld [vmem:[%s12762_s4 + $0x3b0] sm:$0xff] }
 0x179   :  { %2897 = vmatpush2.bf16.msra.mxu1 %v8078_v2  ;;  %v1305_v2 = vld [vmem:[%s12762_s4 + $0x430] sm:$0xff]  ;;  %v8001_v63 = vcombine.high %v1285_v32, %v1289_v9 }
 0x17a   :  { %2972 = vmatprep.subr.bf16.mxu1 %v8073_v53  ;;  %2846 = vmatmul.mubr.bf16.vlgmr.msra.gmra.mxu0 %v10103_v41  ;;  %v8024_v53 = vcombine.low %v1309_v61, %v1313_v35  ;;  %v8017_v14 = vcombine.high %v1301_v43, %v1305_v2  ;;  %v1277_v0 = vld [vmem:[%s12762_s4 + $0x350] sm:$0xff] }
 0x17b   :  { %2855 = vmatprep.mubr.bf16.mxu0 %v10168_v51  ;;  %2920 = vmatpush1.bf16.msra.mxu0 %v7944_v58  ;;  %v1421_v58 = vld [vmem:[%s12762_s4 + $0x7d0] sm:$0xff] }
 0x17c   :  { %2899 = vmatmul.mubr.bf16.vlgmr.msra.gmra.mxu1 %v10105_v1  ;;  %2921 = vmatprep.subr.bf16.mxu0 %v7937_v18  ;;  %v7888_v18 = vcombine.low %v1173_v39, %v1177_v24  ;;  %v1281_v45 = vld [vmem:[%s12762_s4 + $0x370] sm:$0xff] }
 0x17d   :  { %2908 = vmatprep.mubr.bf16.mxu1 %v10196_v27  ;;  %2973 = vmatpush1.bf16.msra.mxu1 %v8072_v15  ;;  %v1425_v15 = vld [vmem:[%s12762_s4 + $0x7f0] sm:$0xff]  ;;  %v7993_v48 = vcombine.high %v1277_v0, %v1281_v45 }
 0x17e   :  { %2974 = vmatprep.subr.bf16.mxu1 %v8065_v19  ;;  %v8016_v19 = vcombine.low %v1301_v43, %v1305_v2  ;;  %v8137_v31 = vcombine.high %v1421_v58, %v1425_v15  ;;  %v1269_v60 = vld [vmem:[%s12762_s4 + $0x310] sm:$0xff] }
 0x17f   :  { %2922 = vmatpush1.bf16.msra.mxu0 %v7936_v12  ;;  %v1413_v12 = vld [vmem:[%s12762_s4 + $0x790] sm:$0xff] }
 0x180   :  { %2923 = vmatprep.subr.bf16.mxu0 %v7929_v46  ;;  %v8008_v46 = vcombine.low %v1293_v54, %v1297_v55  ;;  %v1273_v25 = vld [vmem:[%s12762_s4 + $0x330] sm:$0xff] }
 0x181   :  { %2975 = vmatpush1.bf16.msra.mxu1 %v8064_v42  ;;  %v1417_v42 = vld [vmem:[%s12762_s4 + $0x7b0] sm:$0xff]  ;;  %v7985_v49 = vcombine.high %v1269_v60, %v1273_v25 }
 0x182   :  { %2856 = vmatmul.mubr.bf16.gmra.mxu0 %v10181_v59  ;;  %2976 = vmatprep.subr.bf16.mxu1 %v8057_v56  ;;  %v8136_v56 = vcombine.low %v1421_v58, %v1425_v15  ;;  %v8129_v57 = vcombine.high %v1413_v12, %v1417_v42  ;;  %v1261_v26 = vld [vmem:[%s12762_s4 + $0x2d0] sm:$0xff] }
 0x183   :  { %2951 = vmatprep.mubr.bf16.mxu0 %v10115_v10  ;;  %2924 = vmatpush1.bf16.msra.mxu0 %v7928_v3  ;;  %v1405_v3 = vld [vmem:[%s12762_s4 + $0x750] sm:$0xff] }
 0x184   :  { %2909 = vmatmul.mubr.bf16.gmra.mxu1 %v10205_v20  ;;  %2925 = vmatprep.subr.bf16.mxu0 %v7921_v44  ;;  %v8000_v44 = vcombine.low %v1285_v32, %v1289_v9  ;;  %v1265_v7 = vld [vmem:[%s12762_s4 + $0x2f0] sm:$0xff] }
 0x185   :  { %3004 = vmatprep.mubr.bf16.mxu1 %v10117_v5  ;;  %2977 = vmatpush1.bf16.msra.mxu1 %v8056_v28  ;;  %v1409_v28 = vld [vmem:[%s12762_s4 + $0x770] sm:$0xff]  ;;  %v7977_v37 = vcombine.high %v1261_v26, %v1265_v7 }
 0x186   :  { %2978 = vmatprep.subr.bf16.mxu1 %v8049_v62  ;;  %v8128_v62 = vcombine.low %v1413_v12, %v1417_v42  ;;  %v8121_v21 = vcombine.high %v1405_v3, %v1409_v28  ;;  %v1253_v61 = vld [vmem:[%s12762_s4 + $0x290] sm:$0xff]  ;;  %v1230_v12 = vld [vmem:[%s12762_s4 + $0x1d8] sm:$0xff] }
 0x187   :  { %2926 = vmatpush1.bf16.msra.mxu0 %v7920_v33  ;;  %v1397_v33 = vld [vmem:[%s12762_s4 + $0x710] sm:$0xff]  ;;  %v1234_v42 = vld [vmem:[%s12762_s4 + $0x1f8] sm:$0xff] }
 0x188   :  { %2927 = vmatprep.subr.bf16.mxu0 %v7913_v47  ;;  %v7992_v47 = vcombine.low %v1277_v0, %v1281_v45  ;;  %v1257_v35 = vld [vmem:[%s12762_s4 + $0x2b0] sm:$0xff]  ;;  %v7947_v0 = vcombine.high %v1230_v12, %v1234_v42 }
 0x189   :  { %2979 = vmatpush1.bf16.msra.mxu1 %v8048_v6  ;;  %v1401_v6 = vld [vmem:[%s12762_s4 + $0x730] sm:$0xff]  ;;  %v7969_v39 = vcombine.high %v1253_v61, %v1257_v35 }
 0x18a   :  { %2980 = vmatprep.subr.bf16.mxu1 %v8041_v4  ;;  %v8120_v4 = vcombine.low %v1405_v3, %v1409_v28  ;;  %v8113_v16 = vcombine.high %v1397_v33, %v1401_v6  ;;  %v1245_v43 = vld [vmem:[%s12762_s4 + $0x250] sm:$0xff]  ;;  %v1222_v3 = vld [vmem:[%s12762_s4 + $0x198] sm:$0xff] }
 0x18b   :  { %2928 = vmatpush1.bf16.msra.mxu0 %v7912_v22  ;;  %v1389_v22 = vld [vmem:[%s12762_s4 + $0x6d0] sm:$0xff]  ;;  %v1226_v28 = vld [vmem:[%s12762_s4 + $0x1b8] sm:$0xff] }
 0x18c   :  { %2929 = vmatprep.subr.bf16.mxu0 %v7905_v17  ;;  %v7984_v17 = vcombine.low %v1269_v60, %v1273_v25  ;;  %v1249_v2 = vld [vmem:[%s12762_s4 + $0x270] sm:$0xff]  ;;  %v7939_v60 = vcombine.high %v1222_v3, %v1226_v28 }
 0x18d   :  { %2981 = vmatpush1.bf16.msra.mxu1 %v8040_v23  ;;  %v1393_v23 = vld [vmem:[%s12762_s4 + $0x6f0] sm:$0xff]  ;;  %v7961_v54 = vcombine.high %v1245_v43, %v1249_v2 }
 0x18e   :  { %2982 = vmatprep.subr.bf16.mxu1 %v8033_v36  ;;  %v8112_v36 = vcombine.low %v1397_v33, %v1401_v6  ;;  %v8105_v38 = vcombine.high %v1389_v22, %v1393_v23  ;;  %v1237_v58 = vld [vmem:[%s12762_s4 + $0x210] sm:$0xff]  ;;  %v1214_v33 = vld [vmem:[%s12762_s4 + $0x158] sm:$0xff] }
 0x18f   :  { %2930 = vmatpush1.bf16.msra.mxu0 %v7904_v40  ;;  %v1381_v40 = vld [vmem:[%s12762_s4 + $0x690] sm:$0xff]  ;;  %v1218_v6 = vld [vmem:[%s12762_s4 + $0x178] sm:$0xff] }
 0x190   :  { %2931 = vmatprep.subr.bf16.mxu0 %v7897_v50  ;;  %v7976_v50 = vcombine.low %v1261_v26, %v1265_v7  ;;  %v1241_v15 = vld [vmem:[%s12762_s4 + $0x230] sm:$0xff]  ;;  %v7931_v26 = vcombine.high %v1214_v33, %v1218_v6 }
 0x191   :  { %2983 = vmatpush1.bf16.msra.mxu1 %v8032_v29  ;;  %v1385_v29 = vld [vmem:[%s12762_s4 + $0x6b0] sm:$0xff]  ;;  %v7953_v32 = vcombine.high %v1237_v58, %v1241_v15 }
 0x192   :  { %2984 = vmatprep.subr.bf16.mxu1 %v8025_v52  ;;  %v8104_v52 = vcombine.low %v1389_v22, %v1393_v23  ;;  %v8097_v24 = vcombine.high %v1381_v40, %v1385_v29  ;;  %v1206_v22 = vld [vmem:[%s12762_s4 + $0x118] sm:$0xff] }
 0x193   :  { %2932 = vmatpush1.bf16.msra.mxu0 %v7896_v30  ;;  %v1373_v30 = vld [vmem:[%s12762_s4 + $0x650] sm:$0xff]  ;;  %v1210_v23 = vld [vmem:[%s12762_s4 + $0x138] sm:$0xff] }
 0x194   :  { %2933 = vmatprep.subr.bf16.mxu0 %v7889_v13  ;;  %v7968_v13 = vcombine.low %v1253_v61, %v1257_v35  ;;  %v7923_v61 = vcombine.high %v1206_v22, %v1210_v23 }
 0x195   :  { %2985 = vmatpush1.bf16.msra.mxu1 %v8024_v53  ;;  %v1377_v53 = vld [vmem:[%s12762_s4 + $0x670] sm:$0xff] }
 0x196   :  { %2986 = vmatprep.subr.bf16.mxu1 %v8017_v14  ;;  %v8096_v14 = vcombine.low %v1381_v40, %v1385_v29  ;;  %v8089_v55 = vcombine.high %v1373_v30, %v1377_v53  ;;  %v1198_v40 = vld [vmem:[%s12762_s4 + $0xd8] sm:$0xff] }
 0x197   :  { %2934 = vmatpush1.bf16.msra.mxu0 %v7888_v18  ;;  %v1365_v18 = vld [vmem:[%s12762_s4 + $0x610] sm:$0xff]  ;;  %v1202_v29 = vld [vmem:[%s12762_s4 + $0xf8] sm:$0xff] }
 0x198   :  { %2935 = vmatprep.subr.bf16.mxu0 %v8009_v34  ;;  %v7960_v34 = vcombine.low %v1245_v43, %v1249_v2  ;;  %v7915_v43 = vcombine.high %v1198_v40, %v1202_v29 }
 0x199   :  { %2987 = vmatpush1.bf16.msra.mxu1 %v8016_v19  ;;  %v1369_v19 = vld [vmem:[%s12762_s4 + $0x630] sm:$0xff] }
 0x19a   :  { %2988 = vmatprep.subr.bf16.mxu1 %v8137_v31  ;;  %v8088_v31 = vcombine.low %v1373_v30, %v1377_v53  ;;  %v8081_v9 = vcombine.high %v1365_v18, %v1369_v19  ;;  %v1190_v30 = vld [vmem:[%s12762_s4 + $0x98] sm:$0xff] }
 0x19b   :  { %2936 = vmatpush2.bf16.msra.mxu0 %v8008_v46  ;;  %v1358_v46 = vld [vmem:[%s12762_s4 + $0x5d8] sm:$0xff] }
 0x19c   :  { %2937 = vmatprep.subr.bf16.mxu0 %v8001_v63  ;;  %v7952_v63 = vcombine.low %v1237_v58, %v1241_v15  ;;  %v1194_v53 = vld [vmem:[%s12762_s4 + $0xb8] sm:$0xff] }
 0x19d   :  { %2989 = vmatpush2.bf16.msra.mxu1 %v8136_v56  ;;  %v1362_v56 = vld [vmem:[%s12762_s4 + $0x5f8] sm:$0xff]  ;;  %v7907_v58 = vcombine.high %v1190_v30, %v1194_v53 }
 0x19e   :  { %2990 = vmatprep.subr.bf16.mxu1 %v8129_v57  ;;  %v8080_v57 = vcombine.low %v1365_v18, %v1369_v19  ;;  %v8075_v45 = vcombine.high %v1358_v46, %v1362_v56  ;;  %v1182_v18 = vld [vmem:[%s12762_s4 + $0x58] sm:$0xff] }
 0x19f   :  { %2938 = vmatpush2.bf16.msra.mxu0 %v8000_v44  ;;  %v1350_v44 = vld [vmem:[%s12762_s4 + $0x598] sm:$0xff] }
 0x1a0   :  { %2939 = vmatprep.subr.bf16.mxu0 %v7993_v48  ;;  %v7946_v48 = vcombine.low %v1230_v12, %v1234_v42  ;;  %v1186_v19 = vld [vmem:[%s12762_s4 + $0x78] sm:$0xff] }
 0x1a1   :  { %2991 = vmatpush2.bf16.msra.mxu1 %v8128_v62  ;;  %v1354_v62 = vld [vmem:[%s12762_s4 + $0x5b8] sm:$0xff]  ;;  %v7899_v12 = vcombine.high %v1182_v18, %v1186_v19 }
 0x1a2   :  { %2992 = vmatprep.subr.bf16.mxu1 %v8121_v21  ;;  %v8074_v21 = vcombine.low %v1358_v46, %v1362_v56  ;;  %v8067_v25 = vcombine.high %v1350_v44, %v1354_v62  ;;  %v1174_v46 = vld [vmem:[%s12762_s4 + $0x18] sm:$0xff] }
 0x1a3   :  { %2940 = vmatpush2.bf16.msra.mxu0 %v7992_v47  ;;  %v1342_v47 = vld [vmem:[%s12762_s4 + $0x558] sm:$0xff] }
 0x1a4   :  { %2941 = vmatprep.subr.bf16.mxu0 %v7985_v49  ;;  %v7938_v49 = vcombine.low %v1222_v3, %v1226_v28  ;;  %v1178_v56 = vld [vmem:[%s12762_s4 + $0x38] sm:$0xff] }
 0x1a5   :  { %2993 = vmatpush2.bf16.msra.mxu1 %v8120_v4  ;;  %v1346_v4 = vld [vmem:[%s12762_s4 + $0x578] sm:$0xff]  ;;  %v7891_v3 = vcombine.high %v1174_v46, %v1178_v56 }
 0x1a6   :  { %2994 = vmatprep.subr.bf16.mxu1 %v8113_v16  ;;  %v8066_v16 = vcombine.low %v1350_v44, %v1354_v62  ;;  %v8059_v7 = vcombine.high %v1342_v47, %v1346_v4  ;;  %v1294_v44 = vld [vmem:[%s12762_s4 + $0x3d8] sm:$0xff] }
 0x1a7   :  { %2942 = vmatpush2.bf16.msra.mxu0 %v7984_v17  ;;  %v1334_v17 = vld [vmem:[%s12762_s4 + $0x518] sm:$0xff] }
 0x1a8   :  { %2943 = vmatprep.subr.bf16.mxu0 %v7977_v37  ;;  %v7930_v37 = vcombine.low %v1214_v33, %v1218_v6  ;;  %v1298_v62 = vld [vmem:[%s12762_s4 + $0x3f8] sm:$0xff] }
 0x1a9   :  { %2995 = vmatpush2.bf16.msra.mxu1 %v8112_v36  ;;  %v1338_v36 = vld [vmem:[%s12762_s4 + $0x538] sm:$0xff]  ;;  %v8011_v33 = vcombine.high %v1294_v44, %v1298_v62 }
 0x1aa   :  { %2996 = vmatprep.subr.bf16.mxu1 %v8105_v38  ;;  %v8058_v38 = vcombine.low %v1342_v47, %v1346_v4  ;;  %v8051_v35 = vcombine.high %v1334_v17, %v1338_v36  ;;  %v1286_v47 = vld [vmem:[%s12762_s4 + $0x398] sm:$0xff] }
 0x1ab   :  { %2944 = vmatpush2.bf16.msra.mxu0 %v7976_v50  ;;  %v1326_v50 = vld [vmem:[%s12762_s4 + $0x4d8] sm:$0xff] }
 0x1ac   :  { %2945 = vmatprep.subr.bf16.mxu0 %v7969_v39  ;;  %v7922_v39 = vcombine.low %v1206_v22, %v1210_v23  ;;  %v1290_v4 = vld [vmem:[%s12762_s4 + $0x3b8] sm:$0xff] }
 0x1ad   :  { %2997 = vmatpush2.bf16.msra.mxu1 %v8104_v52  ;;  %v1330_v52 = vld [vmem:[%s12762_s4 + $0x4f8] sm:$0xff]  ;;  %v8003_v22 = vcombine.high %v1286_v47, %v1290_v4 }
 0x1ae   :  { %2998 = vmatprep.subr.bf16.mxu1 %v8097_v24  ;;  %v8050_v24 = vcombine.low %v1334_v17, %v1338_v36  ;;  %v8043_v2 = vcombine.high %v1326_v50, %v1330_v52  ;;  %v1278_v17 = vld [vmem:[%s12762_s4 + $0x358] sm:$0xff] }
 0x1af   :  { %2946 = vmatpush2.bf16.msra.mxu0 %v7968_v13  ;;  %v1318_v13 = vld [vmem:[%s12762_s4 + $0x498] sm:$0xff] }
 0x1b0   :  { %2947 = vmatprep.subr.bf16.mxu0 %v7961_v54  ;;  %v7914_v54 = vcombine.low %v1198_v40, %v1202_v29  ;;  %v1282_v36 = vld [vmem:[%s12762_s4 + $0x378] sm:$0xff] }
 0x1b1   :  { %2999 = vmatpush2.bf16.msra.mxu1 %v8096_v14  ;;  %v1322_v14 = vld [vmem:[%s12762_s4 + $0x4b8] sm:$0xff]  ;;  %v7995_v40 = vcombine.high %v1278_v17, %v1282_v36 }
 0x1b2   :  { %3000 = vmatprep.subr.bf16.mxu1 %v8089_v55  ;;  %v8042_v55 = vcombine.low %v1326_v50, %v1330_v52  ;;  %v8035_v15 = vcombine.high %v1318_v13, %v1322_v14  ;;  %v1270_v50 = vld [vmem:[%s12762_s4 + $0x318] sm:$0xff] }
 0x1b3   :  { %2948 = vmatpush2.bf16.msra.mxu0 %v7960_v34  ;;  %v1310_v34 = vld [vmem:[%s12762_s4 + $0x458] sm:$0xff] }
 0x1b4   :  { %2949 = vmatprep.subr.bf16.mxu0 %v7953_v32  ;;  %v7906_v32 = vcombine.low %v1190_v30, %v1194_v53  ;;  %v1274_v52 = vld [vmem:[%s12762_s4 + $0x338] sm:$0xff] }
 0x1b5   :  { %3001 = vmatpush2.bf16.msra.mxu1 %v8088_v31  ;;  %v1314_v31 = vld [vmem:[%s12762_s4 + $0x478] sm:$0xff]  ;;  %v7987_v30 = vcombine.high %v1270_v50, %v1274_v52 }
 0x1b6   :  { %3002 = vmatprep.subr.bf16.mxu1 %v8081_v9  ;;  %v8034_v9 = vcombine.low %v1318_v13, %v1322_v14  ;;  %v8027_v42 = vcombine.high %v1310_v34, %v1314_v31  ;;  %v1262_v13 = vld [vmem:[%s12762_s4 + $0x2d8] sm:$0xff] }
 0x1b7   :  { %2950 = vmatpush2.bf16.msra.mxu0 %v7952_v63  ;;  %v1302_v63 = vld [vmem:[%s12762_s4 + $0x418] sm:$0xff] }
 0x1b8   :  { %3025 = vmatprep.subr.bf16.mxu0 %v7947_v0  ;;  %v7898_v0 = vcombine.low %v1182_v18, %v1186_v19  ;;  %v1266_v14 = vld [vmem:[%s12762_s4 + $0x2f8] sm:$0xff] }
 0x1b9   :  { %3003 = vmatpush2.bf16.msra.mxu1 %v8080_v57  ;;  %v1306_v57 = vld [vmem:[%s12762_s4 + $0x438] sm:$0xff]  ;;  %v7979_v18 = vcombine.high %v1262_v13, %v1266_v14 }
 0x1ba   :  { %3078 = vmatprep.subr.bf16.mxu1 %v8075_v45  ;;  %2952 = vmatmul.mubr.bf16.vlgmr.msra.gmra.mxu0 %v10103_v41  ;;  %v8026_v45 = vcombine.low %v1310_v34, %v1314_v31  ;;  %v8019_v28 = vcombine.high %v1302_v63, %v1306_v57  ;;  %v1254_v34 = vld [vmem:[%s12762_s4 + $0x298] sm:$0xff] }
 0x1bb   :  { %2961 = vmatprep.mubr.bf16.mxu0 %v10168_v51  ;;  %3026 = vmatpush1.bf16.msra.mxu0 %v7946_v48  ;;  %v1422_v48 = vld [vmem:[%s12762_s4 + $0x7d8] sm:$0xff] }
 0x1bc   :  { %3005 = vmatmul.mubr.bf16.vlgmr.msra.gmra.mxu1 %v10105_v1  ;;  %3027 = vmatprep.subr.bf16.mxu0 %v7939_v60  ;;  %v7890_v60 = vcombine.low %v1174_v46, %v1178_v56  ;;  %v1258_v31 = vld [vmem:[%s12762_s4 + $0x2b8] sm:$0xff] }
 0x1bd   :  { %3014 = vmatprep.mubr.bf16.mxu1 %v10196_v27  ;;  %3079 = vmatpush1.bf16.msra.mxu1 %v8074_v21  ;;  %v1426_v21 = vld [vmem:[%s12762_s4 + $0x7f8] sm:$0xff]  ;;  %v7971_v46 = vcombine.high %v1254_v34, %v1258_v31 }
 0x1be   :  { %3080 = vmatprep.subr.bf16.mxu1 %v8067_v25  ;;  %v8018_v25 = vcombine.low %v1302_v63, %v1306_v57  ;;  %v8139_v6 = vcombine.high %v1422_v48, %v1426_v21  ;;  %v1246_v63 = vld [vmem:[%s12762_s4 + $0x258] sm:$0xff] }
 0x1bf   :  { %3028 = vmatpush1.bf16.msra.mxu0 %v7938_v49  ;;  %v1414_v49 = vld [vmem:[%s12762_s4 + $0x798] sm:$0xff] }
 0x1c0   :  { %3029 = vmatprep.subr.bf16.mxu0 %v7931_v26  ;;  %v8010_v26 = vcombine.low %v1294_v44, %v1298_v62  ;;  %v1250_v57 = vld [vmem:[%s12762_s4 + $0x278] sm:$0xff] }
 0x1c1   :  { %3081 = vmatpush1.bf16.msra.mxu1 %v8066_v16  ;;  %v1418_v16 = vld [vmem:[%s12762_s4 + $0x7b8] sm:$0xff]  ;;  %v7963_v44 = vcombine.high %v1246_v63, %v1250_v57 }
 0x1c2   :  { %2962 = vmatmul.mubr.bf16.gmra.mxu0 %v10181_v59  ;;  %3082 = vmatprep.subr.bf16.mxu1 %v8059_v7  ;;  %v8138_v7 = vcombine.low %v1422_v48, %v1426_v21  ;;  %v8131_v23 = vcombine.high %v1414_v49, %v1418_v16  ;;  %v1238_v48 = vld [vmem:[%s12762_s4 + $0x218] sm:$0xff] }
 0x1c3   :  { %3057 = vmatprep.mubr.bf16.mxu0 %v10115_v10  ;;  %3030 = vmatpush1.bf16.msra.mxu0 %v7930_v37  ;;  %v1406_v37 = vld [vmem:[%s12762_s4 + $0x758] sm:$0xff] }
 0x1c4   :  { %3015 = vmatmul.mubr.bf16.gmra.mxu1 %v10205_v20  ;;  %3031 = vmatprep.subr.bf16.mxu0 %v7923_v61  ;;  %v8002_v61 = vcombine.low %v1286_v47, %v1290_v4  ;;  %v1242_v21 = vld [vmem:[%s12762_s4 + $0x238] sm:$0xff] }
 0x1c5   :  { %3110 = vmatprep.mubr.bf16.mxu1 %v10117_v5  ;;  %3083 = vmatpush1.bf16.msra.mxu1 %v8058_v38  ;;  %v1410_v38 = vld [vmem:[%s12762_s4 + $0x778] sm:$0xff]  ;;  %v7955_v47 = vcombine.high %v1238_v48, %v1242_v21 }
 0x1c6   :  { %3084 = vmatprep.subr.bf16.mxu1 %v8051_v35  ;;  %v8130_v35 = vcombine.low %v1414_v49, %v1418_v16  ;;  %v8123_v29 = vcombine.high %v1406_v37, %v1410_v38  ;;  %v8196_v49 = vld [vmem:[%s12762_s4 + $0x9c0] sm:$0xff] }
 0x1c7   :  { %3032 = vmatpush1.bf16.msra.mxu0 %v7922_v39  ;;  %v1398_v39 = vld [vmem:[%s12762_s4 + $0x718] sm:$0xff]  ;;  %v8200_v16 = vld [vmem:[%s12762_s4 + $0x9e0] sm:$0xff] }
 0x1c8   :  { %3033 = vmatprep.subr.bf16.mxu0 %v7915_v43  ;;  %v7994_v43 = vcombine.low %v1278_v17, %v1282_v36  ;;  %v8453_v17 = vcombine.high %v8196_v49, %v8200_v16 }
 0x1c9   :  { %3085 = vmatpush1.bf16.msra.mxu1 %v8050_v24  ;;  %v1402_v24 = vld [vmem:[%s12762_s4 + $0x738] sm:$0xff] }
 0x1ca   :  { %3086 = vmatprep.subr.bf16.mxu1 %v8043_v2  ;;  %v8122_v2 = vcombine.low %v1406_v37, %v1410_v38  ;;  %v8115_v53 = vcombine.high %v1398_v39, %v1402_v24  ;;  %v8188_v37 = vld [vmem:[%s12762_s4 + $0x980] sm:$0xff] }
 0x1cb   :  { %3034 = vmatpush1.bf16.msra.mxu0 %v7914_v54  ;;  %v1390_v54 = vld [vmem:[%s12762_s4 + $0x6d8] sm:$0xff]  ;;  %v8192_v38 = vld [vmem:[%s12762_s4 + $0x9a0] sm:$0xff] }
 0x1cc   :  { %3035 = vmatprep.subr.bf16.mxu0 %v7907_v58  ;;  %v7986_v58 = vcombine.low %v1270_v50, %v1274_v52 }
 0x1cd   :  { %3087 = vmatpush1.bf16.msra.mxu1 %v8042_v55  ;;  %v1394_v55 = vld [vmem:[%s12762_s4 + $0x6f8] sm:$0xff] }
 0x1ce   :  { %3088 = vmatprep.subr.bf16.mxu1 %v8035_v15  ;;  %v8114_v15 = vcombine.low %v1398_v39, %v1402_v24  ;;  %v8107_v19 = vcombine.high %v1390_v54, %v1394_v55  ;;  %v8445_v39 = vcombine.high %v8188_v37, %v8192_v38 }
 0x1cf   :  { %3036 = vmatpush1.bf16.msra.mxu0 %v7906_v32  ;;  %v1382_v32 = vld [vmem:[%s12762_s4 + $0x698] sm:$0xff] }
 0x1d0   :  { %3037 = vmatprep.subr.bf16.mxu0 %v7899_v12  ;;  %v7978_v12 = vcombine.low %v1262_v13, %v1266_v14  ;;  %v8308_v14 = vld [vmem:[%s12762_s4 + $0xd40] sm:$0xff] }
 0x1d1   :  { %3089 = vmatpush1.bf16.msra.mxu1 %v8034_v9  ;;  %v1386_v9 = vld [vmem:[%s12762_s4 + $0x6b8] sm:$0xff] }
 0x1d2   :  { %3090 = vmatprep.subr.bf16.mxu1 %v8027_v42  ;;  %v8106_v42 = vcombine.low %v1390_v54, %v1394_v55  ;;  %v8099_v56 = vcombine.high %v1382_v32, %v1386_v9  ;;  %v8312_v54 = vld [vmem:[%s12762_s4 + $0xd60] sm:$0xff] }
 0x1d3   :  { %3038 = vmatpush1.bf16.msra.mxu0 %v7898_v0  ;;  %v1374_v0 = vld [vmem:[%s12762_s4 + $0x658] sm:$0xff] }
 0x1d4   :  { %3039 = vmatprep.subr.bf16.mxu0 %v7891_v3  ;;  %v7970_v3 = vcombine.low %v1254_v34, %v1258_v31 }
 0x1d5   :  { %3091 = vmatpush1.bf16.msra.mxu1 %v8026_v45  ;;  %v1378_v45 = vld [vmem:[%s12762_s4 + $0x678] sm:$0xff] }
 0x1d6   :  { %3092 = vmatprep.subr.bf16.mxu1 %v8019_v28  ;;  %v8098_v28 = vcombine.low %v1382_v32, %v1386_v9  ;;  %v8091_v62 = vcombine.high %v1374_v0, %v1378_v45  ;;  %v8565_v9 = vcombine.high %v8308_v14, %v8312_v54 }
 0x1d7   :  { %3040 = vmatpush1.bf16.msra.mxu0 %v7890_v60  ;;  %v1366_v60 = vld [vmem:[%s12762_s4 + $0x618] sm:$0xff] }
 0x1d8   :  { %3041 = vmatprep.subr.bf16.mxu0 %v8011_v33  ;;  %v7962_v33 = vcombine.low %v1246_v63, %v1250_v57  ;;  %v8304_v63 = vld [vmem:[%s12762_s4 + $0xd20] sm:$0xff] }
 0x1d9   :  { %3093 = vmatpush1.bf16.msra.mxu1 %v8018_v25  ;;  %v1370_v25 = vld [vmem:[%s12762_s4 + $0x638] sm:$0xff] }
 0x1da   :  { %3094 = vmatprep.subr.bf16.mxu1 %v8139_v6  ;;  %v8090_v6 = vcombine.low %v1374_v0, %v1378_v45  ;;  %v8083_v4 = vcombine.high %v1366_v60, %v1370_v25 }
 0x1db   :  { %3042 = vmatpush2.bf16.msra.mxu0 %v8010_v26  ;;  %v8324_v26 = vld [vmem:[%s12762_s4 + $0xdc0] sm:$0xff] }
 0x1dc   :  { %3043 = vmatprep.subr.bf16.mxu0 %v8003_v22  ;;  %v7954_v22 = vcombine.low %v1238_v48, %v1242_v21 }
 0x1dd   :  { %3095 = vmatpush2.bf16.msra.mxu1 %v8138_v7  ;;  %v8328_v7 = vld [vmem:[%s12762_s4 + $0xde0] sm:$0xff] }
 0x1de   :  { %3096 = vmatprep.subr.bf16.mxu1 %v8131_v23  ;;  %v8082_v23 = vcombine.low %v1366_v60, %v1370_v25  ;;  %v8581_v36 = vcombine.high %v8324_v26, %v8328_v7  ;;  %v8580_v50 = vcombine.low %v8324_v26, %v8328_v7 }
 0x1df   :  { %3044 = vmatpush2.bf16.msra.mxu0 %v8002_v61  ;;  %v8316_v61 = vld [vmem:[%s12762_s4 + $0xd80] sm:$0xff] }
 0x1e0   :  { %3045 = vmatprep.subr.bf16.mxu0 %v7995_v40  ;;  %v8452_v40 = vcombine.low %v8196_v49, %v8200_v16  ;;  %v8292_v49 = vld [vmem:[%s12762_s4 + $0xcc0] sm:$0xff] }
 0x1e1   :  { %3097 = vmatpush2.bf16.msra.mxu1 %v8130_v35  ;;  %v8320_v35 = vld [vmem:[%s12762_s4 + $0xda0] sm:$0xff] }
 0x1e2   :  { %3098 = vmatprep.subr.bf16.mxu1 %v8123_v29  ;;  %v8296_v16 = vld [vmem:[%s12762_s4 + $0xce0] sm:$0xff] }
 0x1e3   :  { %3046 = vmatpush2.bf16.msra.mxu0 %v7994_v43 }
 0x1e4   :  { %3047 = vmatprep.subr.bf16.mxu0 %v7987_v30  ;;  %v8180_v30 = vld [vmem:[%s12762_s4 + $0x940] sm:$0xff] }
 0x1e5   :  { %3099 = vmatpush2.bf16.msra.mxu1 %v8122_v2  ;;  %v8573_v2 = vcombine.high %v8316_v61, %v8320_v35 }
 0x1e6   :  { %3100 = vmatprep.subr.bf16.mxu1 %v8115_v53  ;;  %v8184_v53 = vld [vmem:[%s12762_s4 + $0x960] sm:$0xff] }
 0x1e7   :  { %3048 = vmatpush2.bf16.msra.mxu0 %v7986_v58  ;;  %v8444_v58 = vcombine.low %v8188_v37, %v8192_v38  ;;  %v8437_v34 = vcombine.high %v8180_v30, %v8184_v53 }
 0x1e8   :  { %3049 = vmatprep.subr.bf16.mxu0 %v7979_v18  ;;  %v8572_v18 = vcombine.low %v8316_v61, %v8320_v35  ;;  %v8549_v61 = vcombine.high %v8292_v49, %v8296_v16  ;;  %v8156_v35 = vld [vmem:[%s12762_s4 + $0x880] sm:$0xff] }
 0x1e9   :  { %3101 = vmatpush2.bf16.msra.mxu1 %v8114_v15 }
 0x1ea   :  { %3102 = vmatprep.subr.bf16.mxu1 %v8107_v19 }
 0x1eb   :  { %3050 = vmatpush2.bf16.msra.mxu0 %v7978_v12  ;;  %v8172_v12 = vld [vmem:[%s12762_s4 + $0x900] sm:$0xff] }
 0x1ec   :  { %3051 = vmatprep.subr.bf16.mxu0 %v7971_v46 }
 0x1ed   :  { %3103 = vmatpush2.bf16.msra.mxu1 %v8106_v42  ;;  %v8176_v42 = vld [vmem:[%s12762_s4 + $0x920] sm:$0xff] }
 0x1ee   :  { %3104 = vmatprep.subr.bf16.mxu1 %v8099_v56  ;;  %v8300_v56 = vld [vmem:[%s12762_s4 + $0xd00] sm:$0xff]  ;;  %v8428_v7 = vcombine.low %v8172_v12, %v8176_v42 }
 0x1ef   :  { %3052 = vmatpush2.bf16.msra.mxu0 %v7970_v3  ;;  %v8436_v3 = vcombine.low %v8180_v30, %v8184_v53  ;;  %v8557_v25 = vcombine.high %v8300_v56, %v8304_v63  ;;  %v8548_v53 = vcombine.low %v8292_v49, %v8296_v16  ;;  %v8392_v49 = vld [vmem:[%s12762_s4 + $0xfe0] sm:$0xff] }
 0x1f0   :  { %3053 = vmatprep.subr.bf16.mxu0 %v7963_v44  ;;  %v8564_v44 = vcombine.low %v8308_v14, %v8312_v54 }
 0x1f1   :  { %3105 = vmatpush2.bf16.msra.mxu1 %v8098_v28 }
 0x1f2   :  { %3106 = vmatprep.subr.bf16.mxu1 %v8091_v62  ;;  %v8429_v62 = vcombine.high %v8172_v12, %v8176_v42 }
 0x1f3   :  { %3054 = vmatpush2.bf16.msra.mxu0 %v7962_v33  ;;  %v8164_v33 = vld [vmem:[%s12762_s4 + $0x8c0] sm:$0xff] }
 0x1f4   :  { %3055 = vmatprep.subr.bf16.mxu0 %v7955_v47 }
 0x1f5   :  { %3107 = vmatpush2.bf16.msra.mxu1 %v8090_v6  ;;  %v8168_v6 = vld [vmem:[%s12762_s4 + $0x8e0] sm:$0xff] }
 0x1f6   :  { %3108 = vmatprep.subr.bf16.mxu1 %v8083_v4  ;;  %v8421_v37 = vcombine.high %v8164_v33, %v8168_v6 }
 0x1f7   :  { %3056 = vmatpush2.bf16.msra.mxu0 %v7954_v22 }
 0x1f8   :  { %4668 = vmatprep.subr.bf16.mxu0 %v8453_v17  ;;  %v2741_v29 = vpop.f32.mrf.mxu0 }
 0x1f9   :  { %3109 = vmatpush2.bf16.msra.mxu1 %v8082_v23  ;;  %v2794_v52 = vpop.f32.mrf.mxu1 }
 0x1fa   :  { %4721 = vmatprep.subr.bf16.mxu1 %v8581_v36  ;;  %3058 = vmatmul.mubr.bf16.vlgmr.msra.gmra.mxu0 %v10103_v41  ;;  %v10768_v24 = vadd.f32 %v2794_v52, %v2741_v29  ;;  %v2743_v43 = vpop.f32.mrf.mxu0  ;;  %v8556_v36 = vcombine.low %v8300_v56, %v8304_v63  ;;  %v8284_v52 = vld [vmem:[%s12762_s4 + $0xc80] sm:$0xff] }
 0x1fb   :  { %3067 = vmatprep.mubr.bf16.mxu0 %v10168_v51  ;;  %v2796_v13 = vpop.f32.mrf.mxu1  ;;  %4669 = vmatpush1.bf16.msra.mxu0 %v8452_v40  ;;  %v8160_v40 = vld [vmem:[%s12762_s4 + $0x8a0] sm:$0xff] }
 0x1fc   :  { %3111 = vmatmul.mubr.bf16.vlgmr.msra.gmra.mxu1 %v10105_v1  ;;  %v10785_v55 = vadd.f32 %v2796_v13, %v2743_v43  ;;  %v2745_v15 = vpop.f32.mrf.mxu0  ;;  %4670 = vmatprep.subr.bf16.mxu0 %v8445_v39  ;;  %v12788_v57 = vrot.slane %v10768_v24, 7  ;;  %v8288_v39 = vld [vmem:[%s12762_s4 + $0xca0] sm:$0xff]  ;;  %v8413_v13 = vcombine.high %v8156_v35, %v8160_v40  ;;  %v8412_v12 = vcombine.low %v8156_v35, %v8160_v40 }
 0x1fd   :  { %3120 = vmatprep.mubr.bf16.mxu1 %v10196_v27  ;;  %4722 = vmatpush1.bf16.msra.mxu1 %v8580_v50  ;;  %v2798_v19 = vpop.f32.mrf.mxu1  ;;  %v8384_v35 = vld [vmem:[%s12762_s4 + $0xfa0] sm:$0xff] }
 0x1fe   :  { %4723 = vmatprep.subr.bf16.mxu1 %v8573_v2  ;;  %v2799_v31 = vadd.f32 %v2798_v19, %v2745_v15  ;;  %v2747_v32 = vpop.f32.mrf.mxu0  ;;  %v12787_v48 = vrot.slane %v10785_v55, 7  ;;  %v8420_v2 = vcombine.low %v8164_v33, %v8168_v6  ;;  %v8541_v15 = vcombine.high %v8284_v52, %v8288_v39  ;;  %v8152_v19 = vld [vmem:[%s12762_s4 + $0x860] sm:$0xff] }
 0x1ff   :  { %v2800_v46 = vpop.f32.mrf.mxu1  ;;  %4671 = vmatpush1.bf16.msra.mxu0 %v8444_v58  ;;  %v8260_v33 = vld [vmem:[%s12762_s4 + $0xbc0] sm:$0xff] }
 0x200   :  { %v7093_v0 = vrot.slane %v2799_v31, 7  ;;  %v2801_v45 = vadd.f32 %v2800_v46, %v2747_v32  ;;  %v2751_v28 = vpop.f32.mrf.mxu0  ;;  %4672 = vmatprep.subr.bf16.mxu0 %v8437_v34  ;;  %v8276_v34 = vld [vmem:[%s12762_s4 + $0xc40] sm:$0xff]  ;;  %v8540_v46 = vcombine.low %v8284_v52, %v8288_v39 }
 0x201   :  { %4724 = vmatpush1.bf16.msra.mxu1 %v8572_v18  ;;  %v8148_v18 = vld [vmem:[%s12762_s4 + $0x840] sm:$0xff] }
 0x202   :  { %v7095_v21 = vrot.slane %v2801_v45, 7  ;;  %3068 = vmatmul.mubr.bf16.gmra.mxu0 %v10181_v59  ;;  %4725 = vmatprep.subr.bf16.mxu1 %v8565_v9  ;;  %v2753_v60 = vpop.f32.mrf.mxu0  ;;  %v10811_v47 = vsel %vm963_vm0, %v12788_v57, %v7093_v0  ;;  %v8280_v31 = vld [vmem:[%s12762_s4 + $0xc60] sm:$0xff]  ;;  %v8405_v56 = vcombine.high %v8148_v18, %v8152_v19  ;;  %v8159_v57 = vld [vmem:[%s12762_s4 + $0x898] sm:$0xff] }
 0x203   :  { %4700 = vmatprep.mubr.bf16.mxu0 %v10115_v10  ;;  %4673 = vmatpush1.bf16.msra.mxu0 %v8436_v3  ;;  %v8533_v63 = vcombine.high %v8276_v34, %v8280_v31  ;;  %v8140_v0 = vld [vmem:[%s12762_s4 + $0x800] sm:$0xff] }
 0x204   :  { %3121 = vmatmul.mubr.bf16.gmra.mxu1 %v10205_v20  ;;  %v2804_v4 = vpop.f32.mrf.mxu1  ;;  %v2755_v22 = vpop.f32.mrf.mxu0  ;;  %v10827_v23 = vsel %vm963_vm0, %v12787_v48, %v7095_v21  ;;  %4674 = vmatprep.subr.bf16.mxu0 %v8429_v62  ;;  %v8144_v45 = vld [vmem:[%s12762_s4 + $0x820] sm:$0xff]  ;;  %v8404_v62 = vcombine.low %v8148_v18, %v8152_v19  ;;  %v8532_v21 = vcombine.low %v8276_v34, %v8280_v31 }
 0x205   :  { %v10821_v26 = vadd.f32 %v2804_v4, %v2751_v28  ;;  %4753 = vmatprep.mubr.bf16.mxu1 %v10117_v5  ;;  %4726 = vmatpush1.bf16.msra.mxu1 %v8564_v44  ;;  %v8268_v28 = vld [vmem:[%s12762_s4 + $0xc00] sm:$0xff]  ;;  %v8396_v16 = vcombine.low %v8140_v0, %v8144_v45 }
 0x206   :  { %v2806_v17 = vpop.f32.mrf.mxu1  ;;  %4727 = vmatprep.subr.bf16.mxu1 %v8557_v25  ;;  %v2757_v50 = vpop.f32.mrf.mxu0  ;;  %v8272_v44 = vld [vmem:[%s12762_s4 + $0xc20] sm:$0xff] }
 0x207   :  { %v10829_v38 = vadd.f32 %v2806_v17, %v2753_v60  ;;  %4675 = vmatpush1.bf16.msra.mxu0 %v8428_v7  ;;  %v12785_v14 = vrot.slane %v10821_v26, 7  ;;  %v8397_v60 = vcombine.high %v8140_v0, %v8144_v45  ;;  %v8525_v25 = vcombine.high %v8268_v28, %v8272_v44  ;;  %v8264_v6 = vld [vmem:[%s12762_s4 + $0xbe0] sm:$0xff] }
 0x208   :  { %v2808_v29 = vpop.f32.mrf.mxu1  ;;  %4676 = vmatprep.subr.bf16.mxu0 %v8421_v37  ;;  %v8388_v4 = vld [vmem:[%s12762_s4 + $0xfc0] sm:$0xff]  ;;  %v8524_v7 = vcombine.low %v8268_v28, %v8272_v44  ;;  %v8516_v40 = vcombine.low %v8260_v33, %v8264_v6 }
 0x209   :  { %v2809_v43 = vadd.f32 %v2808_v29, %v2755_v22  ;;  %4728 = vmatpush1.bf16.msra.mxu1 %v8556_v36  ;;  %v12784_v32 = vrot.slane %v10829_v38, 7  ;;  %v8517_v22 = vcombine.high %v8260_v33, %v8264_v6  ;;  %v8645_v17 = vcombine.high %v8388_v4, %v8392_v49  ;;  %v8252_v36 = vld [vmem:[%s12762_s4 + $0xb80] sm:$0xff] }
 0x20a   :  { %v2810_v30 = vpop.f32.mrf.mxu1  ;;  %4729 = vmatprep.subr.bf16.mxu1 %v8549_v61  ;;  %v8256_v37 = vld [vmem:[%s12762_s4 + $0xba0] sm:$0xff]  ;;  %v8644_v29 = vcombine.low %v8388_v4, %v8392_v49 }
 0x20b   :  { %v7117_v54 = vrot.slane %v2809_v43, 7  ;;  %v2811_v58 = vadd.f32 %v2810_v30, %v2757_v50  ;;  %4677 = vmatpush1.bf16.msra.mxu0 %v8420_v2  ;;  %v8380_v61 = vld [vmem:[%s12762_s4 + $0xf80] sm:$0xff]  ;;  %v8509_v50 = vcombine.high %v8252_v36, %v8256_v37 }
 0x20c   :  { %4678 = vmatprep.subr.bf16.mxu0 %v8413_v13  ;;  %v8637_v52 = vcombine.high %v8380_v61, %v8384_v35  ;;  %v8244_v39 = vld [vmem:[%s12762_s4 + $0xb40] sm:$0xff]  ;;  %v8636_v13 = vcombine.low %v8380_v61, %v8384_v35 }
 0x20d   :  { %v7119_v9 = vrot.slane %v2811_v58, 7  ;;  %v10860_v42 = vsel %vm963_vm0, %v12785_v14, %v7117_v54  ;;  %4730 = vmatpush1.bf16.msra.mxu1 %v8548_v53  ;;  %v8248_v43 = vld [vmem:[%s12762_s4 + $0xb60] sm:$0xff]  ;;  %v8508_v53 = vcombine.low %v8252_v36, %v8256_v37 }
 0x20e   :  { %4731 = vmatprep.subr.bf16.mxu1 %v8541_v15  ;;  %v8372_v2 = vld [vmem:[%s12762_s4 + $0xf40] sm:$0xff]  ;;  %v8501_v54 = vcombine.high %v8244_v39, %v8248_v43  ;;  %v8500_v31 = vcombine.low %v8244_v39, %v8248_v43 }
 0x20f   :  { %v10871_v3 = vsel %vm963_vm0, %v12784_v32, %v7119_v9  ;;  %4679 = vmatpush1.bf16.msra.mxu0 %v8412_v12  ;;  %v8376_v30 = vld [vmem:[%s12762_s4 + $0xf60] sm:$0xff] }
 0x210   :  { %4680 = vmatprep.subr.bf16.mxu0 %v8405_v56  ;;  %v8629_v58 = vcombine.high %v8372_v2, %v8376_v30  ;;  %v8236_v15 = vld [vmem:[%s12762_s4 + $0xb00] sm:$0xff]  ;;  %v8628_v9 = vcombine.low %v8372_v2, %v8376_v30 }
 0x211   :  { %4732 = vmatpush1.bf16.msra.mxu1 %v8540_v46  ;;  %v8240_v18 = vld [vmem:[%s12762_s4 + $0xb20] sm:$0xff] }
 0x212   :  { %4733 = vmatprep.subr.bf16.mxu1 %v8533_v63  ;;  %v8364_v19 = vld [vmem:[%s12762_s4 + $0xf00] sm:$0xff]  ;;  %v8493_v12 = vcombine.high %v8236_v15, %v8240_v18  ;;  %v8492_v28 = vcombine.low %v8236_v15, %v8240_v18  ;;  %v8325_v15 = vld [vmem:[%s12762_s4 + $0xdc8] sm:$0xff] }
 0x213   :  { %4681 = vmatpush1.bf16.msra.mxu0 %v8404_v62  ;;  %v8368_v34 = vld [vmem:[%s12762_s4 + $0xf20] sm:$0xff]  ;;  %v8329_v18 = vld [vmem:[%s12762_s4 + $0xde8] sm:$0xff] }
 0x214   :  { %4682 = vmatprep.subr.bf16.mxu0 %v8397_v60  ;;  %v8621_v46 = vcombine.high %v8364_v19, %v8368_v34  ;;  %v8228_v56 = vld [vmem:[%s12762_s4 + $0xac0] sm:$0xff]  ;;  %v8620_v44 = vcombine.low %v8364_v19, %v8368_v34 }
 0x215   :  { %4734 = vmatpush1.bf16.msra.mxu1 %v8532_v21  ;;  %v8232_v63 = vld [vmem:[%s12762_s4 + $0xae0] sm:$0xff] }
 0x216   :  { %4735 = vmatprep.subr.bf16.mxu1 %v8525_v25  ;;  %v8356_v0 = vld [vmem:[%s12762_s4 + $0xec0] sm:$0xff]  ;;  %v8485_v62 = vcombine.high %v8228_v56, %v8232_v63  ;;  %v8484_v4 = vcombine.low %v8228_v56, %v8232_v63  ;;  %v8317_v63 = vld [vmem:[%s12762_s4 + $0xd88] sm:$0xff] }
 0x217   :  { %4683 = vmatpush1.bf16.msra.mxu0 %v8396_v16  ;;  %v8360_v45 = vld [vmem:[%s12762_s4 + $0xee0] sm:$0xff] }
 0x218   :  { %4684 = vmatprep.subr.bf16.mxu0 %v8517_v22  ;;  %v8613_v21 = vcombine.high %v8356_v0, %v8360_v45  ;;  %v8220_v60 = vld [vmem:[%s12762_s4 + $0xa80] sm:$0xff]  ;;  %v8612_v49 = vcombine.low %v8356_v0, %v8360_v45  ;;  %v8321_v0 = vld [vmem:[%s12762_s4 + $0xda8] sm:$0xff] }
 0x219   :  { %4736 = vmatpush1.bf16.msra.mxu1 %v8524_v7  ;;  %v8224_v25 = vld [vmem:[%s12762_s4 + $0xaa0] sm:$0xff] }
 0x21a   :  { %4737 = vmatprep.subr.bf16.mxu1 %v8645_v17  ;;  %v8348_v33 = vld [vmem:[%s12762_s4 + $0xe80] sm:$0xff]  ;;  %v8477_v16 = vcombine.high %v8220_v60, %v8224_v25  ;;  %v8476_v61 = vcombine.low %v8220_v60, %v8224_v25 }
 0x21b   :  { %4685 = vmatpush2.bf16.msra.mxu0 %v8516_v40  ;;  %v8352_v6 = vld [vmem:[%s12762_s4 + $0xea0] sm:$0xff] }
 0x21c   :  { %4686 = vmatprep.subr.bf16.mxu0 %v8509_v50  ;;  %v8605_v7 = vcombine.high %v8348_v33, %v8352_v6  ;;  %v8212_v22 = vld [vmem:[%s12762_s4 + $0xa40] sm:$0xff]  ;;  %v8604_v35 = vcombine.low %v8348_v33, %v8352_v6  ;;  %v8575_v33 = vcombine.high %v8317_v63, %v8321_v0  ;;  %v8181_v6 = vld [vmem:[%s12762_s4 + $0x948] sm:$0xff] }
 0x21d   :  { %4738 = vmatpush2.bf16.msra.mxu1 %v8644_v29  ;;  %v8216_v17 = vld [vmem:[%s12762_s4 + $0xa60] sm:$0xff] }
 0x21e   :  { %4739 = vmatprep.subr.bf16.mxu1 %v8637_v52  ;;  %v8340_v36 = vld [vmem:[%s12762_s4 + $0xe40] sm:$0xff]  ;;  %v8469_v40 = vcombine.high %v8212_v22, %v8216_v17  ;;  %v8468_v2 = vcombine.low %v8212_v22, %v8216_v17  ;;  %v8313_v22 = vld [vmem:[%s12762_s4 + $0xd68] sm:$0xff] }
 0x21f   :  { %4687 = vmatpush2.bf16.msra.mxu0 %v8508_v53  ;;  %v8344_v37 = vld [vmem:[%s12762_s4 + $0xe60] sm:$0xff] }
 0x220   :  { %4688 = vmatprep.subr.bf16.mxu0 %v8501_v54  ;;  %v8597_v29 = vcombine.high %v8340_v36, %v8344_v37  ;;  %v8204_v50 = vld [vmem:[%s12762_s4 + $0xa00] sm:$0xff]  ;;  %v8596_v30 = vcombine.low %v8340_v36, %v8344_v37  ;;  %v8197_v54 = vld [vmem:[%s12762_s4 + $0x9c8] sm:$0xff] }
 0x221   :  { %4740 = vmatpush2.bf16.msra.mxu1 %v8636_v13  ;;  %v8208_v52 = vld [vmem:[%s12762_s4 + $0xa20] sm:$0xff] }
 0x222   :  { %4741 = vmatprep.subr.bf16.mxu1 %v8629_v58  ;;  %v8332_v39 = vld [vmem:[%s12762_s4 + $0xe00] sm:$0xff]  ;;  %v8461_v53 = vcombine.high %v8204_v50, %v8208_v52  ;;  %v8201_v58 = vld [vmem:[%s12762_s4 + $0x9e8] sm:$0xff]  ;;  %v8460_v19 = vcombine.low %v8204_v50, %v8208_v52 }
 0x223   :  { %4689 = vmatpush2.bf16.msra.mxu0 %v8500_v31  ;;  %v8336_v43 = vld [vmem:[%s12762_s4 + $0xe20] sm:$0xff]  ;;  %v8455_v31 = vcombine.high %v8197_v54, %v8201_v58  ;;  %v8173_v52 = vld [vmem:[%s12762_s4 + $0x908] sm:$0xff] }
 0x224   :  { %4690 = vmatprep.subr.bf16.mxu0 %v8493_v12  ;;  %v8589_v13 = vcombine.high %v8332_v39, %v8336_v43  ;;  %v8588_v34 = vcombine.low %v8332_v39, %v8336_v43  ;;  %v8189_v12 = vld [vmem:[%s12762_s4 + $0x988] sm:$0xff] }
 0x225   :  { %4742 = vmatpush2.bf16.msra.mxu1 %v8628_v9  ;;  %v8583_v9 = vcombine.high %v8325_v15, %v8329_v18  ;;  %v8177_v39 = vld [vmem:[%s12762_s4 + $0x928] sm:$0xff] }
 0x226   :  { %4743 = vmatprep.subr.bf16.mxu1 %v8621_v46  ;;  %v8193_v46 = vld [vmem:[%s12762_s4 + $0x9a8] sm:$0xff] }
 0x227   :  { %4691 = vmatpush2.bf16.msra.mxu0 %v8492_v28  ;;  %v8454_v28 = vcombine.low %v8197_v54, %v8201_v58  ;;  %v8447_v60 = vcombine.high %v8189_v12, %v8193_v46  ;;  %v8446_v36 = vcombine.low %v8189_v12, %v8193_v46  ;;  %v8431_v12 = vcombine.high %v8173_v52, %v8177_v39 }
 0x228   :  { %4692 = vmatprep.subr.bf16.mxu0 %v8485_v62  ;;  %v8582_v62 = vcombine.low %v8325_v15, %v8329_v18 }
 0x229   :  { %4744 = vmatpush2.bf16.msra.mxu1 %v8620_v44 }
 0x22a   :  { %4745 = vmatprep.subr.bf16.mxu1 %v8613_v21 }
 0x22b   :  { %4693 = vmatpush2.bf16.msra.mxu0 %v8484_v4  ;;  %v8185_v4 = vld [vmem:[%s12762_s4 + $0x968] sm:$0xff] }
 0x22c   :  { %4694 = vmatprep.subr.bf16.mxu0 %v8477_v16  ;;  %v8438_v15 = vcombine.low %v8181_v6, %v8185_v4 }
 0x22d   :  { %4746 = vmatpush2.bf16.msra.mxu1 %v8612_v49 }
 0x22e   :  { %4747 = vmatprep.subr.bf16.mxu1 %v8605_v7  ;;  %v8309_v7 = vld [vmem:[%s12762_s4 + $0xd48] sm:$0xff] }
 0x22f   :  { %4695 = vmatpush2.bf16.msra.mxu0 %v8476_v61  ;;  %v8574_v61 = vcombine.low %v8317_v63, %v8321_v0  ;;  %v8567_v50 = vcombine.high %v8309_v7, %v8313_v22  ;;  %v8566_v18 = vcombine.low %v8309_v7, %v8313_v22  ;;  %v8165_v63 = vld [vmem:[%s12762_s4 + $0x8c8] sm:$0xff] }
 0x230   :  { %4696 = vmatprep.subr.bf16.mxu0 %v8469_v40  ;;  %v8439_v40 = vcombine.high %v8181_v6, %v8185_v4  ;;  %v8169_v0 = vld [vmem:[%s12762_s4 + $0x8e8] sm:$0xff]  ;;  %v8430_v6 = vcombine.low %v8173_v52, %v8177_v39 }
 0x231   :  { %4748 = vmatpush2.bf16.msra.mxu1 %v8604_v35  ;;  %v8423_v22 = vcombine.high %v8165_v63, %v8169_v0  ;;  %v8422_v39 = vcombine.low %v8165_v63, %v8169_v0 }
 0x232   :  { %4749 = vmatprep.subr.bf16.mxu1 %v8597_v29 }
 0x233   :  { %4697 = vmatpush2.bf16.msra.mxu0 %v8468_v2 }
 0x234   :  { %4698 = vmatprep.subr.bf16.mxu0 %v8461_v53  ;;  %v8301_v53 = vld [vmem:[%s12762_s4 + $0xd08] sm:$0xff] }
 0x235   :  { %4750 = vmatpush2.bf16.msra.mxu1 %v8596_v30 }
 0x236   :  { %4751 = vmatprep.subr.bf16.mxu1 %v8589_v13  ;;  %v8305_v13 = vld [vmem:[%s12762_s4 + $0xd28] sm:$0xff] }
 0x237   :  { %4699 = vmatpush2.bf16.msra.mxu0 %v8460_v19 }
 0x238   :  { %4774 = vmatprep.subr.bf16.mxu0 %v8455_v31 }
 0x239   :  { %4752 = vmatpush2.bf16.msra.mxu1 %v8588_v34 }
 0x23a   :  { %v2847_v56 = vpop.f32.mrf.mxu0  ;;  %4827 = vmatprep.subr.bf16.mxu1 %v8583_v9  ;;  %4701 = vmatmul.mubr.bf16.vlgmr.msra.gmra.mxu0 %v10103_v41 }
 0x23b   :  { %4710 = vmatprep.mubr.bf16.mxu0 %v10168_v51  ;;  %4775 = vmatpush1.bf16.msra.mxu0 %v8454_v28 }
 0x23c   :  { %v2900_v45 = vpop.f32.mrf.mxu1  ;;  %v2849_v21 = vpop.f32.mrf.mxu0  ;;  %4754 = vmatmul.mubr.bf16.vlgmr.msra.gmra.mxu1 %v10105_v1  ;;  %4776 = vmatprep.subr.bf16.mxu0 %v8447_v60  ;;  %v8297_v60 = vld [vmem:[%s12762_s4 + $0xce8] sm:$0xff] }
 0x23d   :  { %v10999_v44 = vadd.f32 %v2900_v45, %v2847_v56  ;;  %4763 = vmatprep.mubr.bf16.mxu1 %v10196_v27  ;;  %4828 = vmatpush1.bf16.msra.mxu1 %v8582_v62  ;;  %v8559_v56 = vcombine.high %v8301_v53, %v8305_v13 }
 0x23e   :  { %v2902_v25 = vpop.f32.mrf.mxu1  ;;  %v2851_v16 = vpop.f32.mrf.mxu0  ;;  %4829 = vmatprep.subr.bf16.mxu1 %v8575_v33 }
 0x23f   :  { %v11010_v49 = vadd.f32 %v2902_v25, %v2849_v21  ;;  %v12783_v54 = vrot.slane %v10999_v44, 7  ;;  %4777 = vmatpush1.bf16.msra.mxu0 %v8446_v36  ;;  %v8293_v21 = vld [vmem:[%s12762_s4 + $0xcc8] sm:$0xff] }
 0x240   :  { %v2904_v17 = vpop.f32.mrf.mxu1  ;;  %v2853_v35 = vpop.f32.mrf.mxu0  ;;  %4778 = vmatprep.subr.bf16.mxu0 %v8439_v40  ;;  %v8551_v36 = vcombine.high %v8293_v21, %v8297_v60 }
 0x241   :  { %v2905_v37 = vadd.f32 %v2904_v17, %v2851_v16  ;;  %v12782_v19 = vrot.slane %v11010_v49, 7  ;;  %4830 = vmatpush1.bf16.msra.mxu1 %v8574_v61  ;;  %v8558_v16 = vcombine.low %v8301_v53, %v8305_v13  ;;  %v8161_v61 = vld [vmem:[%s12762_s4 + $0x8a8] sm:$0xff] }
 0x242   :  { %v2906_v29 = vpop.f32.mrf.mxu1  ;;  %v2857_v30 = vpop.f32.mrf.mxu0  ;;  %4711 = vmatmul.mubr.bf16.gmra.mxu0 %v10181_v59  ;;  %4831 = vmatprep.subr.bf16.mxu1 %v8567_v50  ;;  %v8289_v50 = vld [vmem:[%s12762_s4 + $0xca8] sm:$0xff] }
 0x243   :  { %v7097_v43 = vrot.slane %v2905_v37, 7  ;;  %v2907_v2 = vadd.f32 %v2906_v29, %v2853_v35  ;;  %4806 = vmatprep.mubr.bf16.mxu0 %v10115_v10  ;;  %4779 = vmatpush1.bf16.msra.mxu0 %v8438_v15  ;;  %v8157_v37 = vld [vmem:[%s12762_s4 + $0x888] sm:$0xff] }
 0x244   :  { %v2910_v58 = vpop.f32.mrf.mxu1  ;;  %v2859_v9 = vpop.f32.mrf.mxu0  ;;  %4764 = vmatmul.mubr.bf16.gmra.mxu1 %v10205_v20  ;;  %4780 = vmatprep.subr.bf16.mxu0 %v8431_v12  ;;  %v8285_v29 = vld [vmem:[%s12762_s4 + $0xc88] sm:$0xff]  ;;  %v8415_v53 = vcombine.high %v8157_v37, %v8161_v61 }
 0x245   :  { %v7099_v34 = vrot.slane %v2907_v2, 7  ;;  %v11033_v31 = vadd.f32 %v2910_v58, %v2857_v30  ;;  %v11045_v45 = vsel %vm963_vm0, %v12783_v54, %v7097_v43  ;;  %4859 = vmatprep.mubr.bf16.mxu1 %v10117_v5  ;;  %4832 = vmatpush1.bf16.msra.mxu1 %v8566_v18  ;;  %v8550_v30 = vcombine.low %v8293_v21, %v8297_v60  ;;  %v8149_v58 = vld [vmem:[%s12762_s4 + $0x848] sm:$0xff] }
 0x246   :  { %v2912_v46 = vpop.f32.mrf.mxu1  ;;  %v2861_v62 = vpop.f32.mrf.mxu0  ;;  %4833 = vmatprep.subr.bf16.mxu1 %v8559_v56  ;;  %v8543_v13 = vcombine.high %v8285_v29, %v8289_v50  ;;  %v8153_v15 = vld [vmem:[%s12762_s4 + $0x868] sm:$0xff]  ;;  %v8542_v56 = vcombine.low %v8285_v29, %v8289_v50 }
 0x247   :  { %v11049_v28 = vadd.f32 %v2912_v46, %v2859_v9  ;;  %v11060_v25 = vsel %vm963_vm0, %v12782_v19, %v7099_v34  ;;  %v12781_v52 = vrot.slane %v11033_v31, 7  ;;  %4781 = vmatpush1.bf16.msra.mxu0 %v8430_v6  ;;  %v8277_v34 = vld [vmem:[%s12762_s4 + $0xc48] sm:$0xff]  ;;  %v8414_v46 = vcombine.low %v8157_v37, %v8161_v61  ;;  %v8179_v19 = vld [vmem:[%s12762_s4 + $0x938] sm:$0xff] }
 0x248   :  { %v2914_v33 = vpop.f32.mrf.mxu1  ;;  %v2863_v7 = vpop.f32.mrf.mxu0  ;;  %4782 = vmatprep.subr.bf16.mxu0 %v8423_v22  ;;  %v8281_v9 = vld [vmem:[%s12762_s4 + $0xc68] sm:$0xff]  ;;  %v8407_v63 = vcombine.high %v8149_v58, %v8153_v15  ;;  %v8406_v6 = vcombine.low %v8149_v58, %v8153_v15 }
 0x249   :  { %v2915_v4 = vadd.f32 %v2914_v33, %v2861_v62  ;;  %v12780_v43 = vrot.slane %v11049_v28, 7  ;;  %4834 = vmatpush1.bf16.msra.mxu1 %v8558_v16  ;;  %v8535_v0 = vcombine.high %v8277_v34, %v8281_v9  ;;  %v8141_v62 = vld [vmem:[%s12762_s4 + $0x808] sm:$0xff] }
 0x24a   :  { %v2916_v17 = vpop.f32.mrf.mxu1  ;;  %4835 = vmatprep.subr.bf16.mxu1 %v8551_v36  ;;  %v8145_v21 = vld [vmem:[%s12762_s4 + $0x828] sm:$0xff] }
 0x24b   :  { %v7121_v35 = vrot.slane %v2915_v4, 7  ;;  %v2917_v40 = vadd.f32 %v2916_v17, %v2863_v7  ;;  %4783 = vmatpush1.bf16.msra.mxu0 %v8422_v39  ;;  %v8269_v60 = vld [vmem:[%s12762_s4 + $0xc08] sm:$0xff]  ;;  %v8534_v4 = vcombine.low %v8277_v34, %v8281_v9  ;;  %v8399_v16 = vcombine.high %v8141_v62, %v8145_v21 }
 0x24c   :  { %4784 = vmatprep.subr.bf16.mxu0 %v8415_v53  ;;  %v8273_v33 = vld [vmem:[%s12762_s4 + $0xc28] sm:$0xff]  ;;  %v8398_v61 = vcombine.low %v8141_v62, %v8145_v21 }
 0x24d   :  { %v7123_v2 = vrot.slane %v2917_v40, 7  ;;  %v11086_v18 = vsel %vm963_vm0, %v12781_v52, %v7121_v35  ;;  %4836 = vmatpush1.bf16.msra.mxu1 %v8550_v30  ;;  %v8527_v7 = vcombine.high %v8269_v60, %v8273_v33  ;;  %v8261_v22 = vld [vmem:[%s12762_s4 + $0xbc8] sm:$0xff]  ;;  %v8526_v35 = vcombine.low %v8269_v60, %v8273_v33  ;;  %v8175_v52 = vld [vmem:[%s12762_s4 + $0x918] sm:$0xff] }
 0x24e   :  { %4837 = vmatprep.subr.bf16.mxu1 %v8543_v13  ;;  %v8265_v17 = vld [vmem:[%s12762_s4 + $0xbe8] sm:$0xff] }
 0x24f   :  { %v11097_v12 = vsel %vm963_vm0, %v12780_v43, %v7123_v2  ;;  %4785 = vmatpush1.bf16.msra.mxu0 %v8414_v46  ;;  %v8389_v36 = vld [vmem:[%s12762_s4 + $0xfc8] sm:$0xff]  ;;  %v8519_v40 = vcombine.high %v8261_v22, %v8265_v17  ;;  %v8518_v53 = vcombine.low %v8261_v22, %v8265_v17 }
 0x250   :  { %4786 = vmatprep.subr.bf16.mxu0 %v8407_v63  ;;  %v8393_v37 = vld [vmem:[%s12762_s4 + $0xfe8] sm:$0xff] }
 0x251   :  { %4838 = vmatpush1.bf16.msra.mxu1 %v8542_v56  ;;  %v8647_v29 = vcombine.high %v8389_v36, %v8393_v37  ;;  %v8253_v50 = vld [vmem:[%s12762_s4 + $0xb88] sm:$0xff]  ;;  %v8646_v13 = vcombine.low %v8389_v36, %v8393_v37 }
 0x252   :  { %4839 = vmatprep.subr.bf16.mxu1 %v8535_v0  ;;  %v8257_v39 = vld [vmem:[%s12762_s4 + $0xba8] sm:$0xff] }
 0x253   :  { %4787 = vmatpush1.bf16.msra.mxu0 %v8406_v6  ;;  %v8381_v2 = vld [vmem:[%s12762_s4 + $0xf88] sm:$0xff]  ;;  %v8511_v58 = vcombine.high %v8253_v50, %v8257_v39  ;;  %v8510_v63 = vcombine.low %v8253_v50, %v8257_v39 }
 0x254   :  { %4788 = vmatprep.subr.bf16.mxu0 %v8399_v16  ;;  %v8385_v30 = vld [vmem:[%s12762_s4 + $0xfa8] sm:$0xff] }
 0x255   :  { %4840 = vmatpush1.bf16.msra.mxu1 %v8534_v4  ;;  %v8639_v15 = vcombine.high %v8381_v2, %v8385_v30  ;;  %v8245_v34 = vld [vmem:[%s12762_s4 + $0xb48] sm:$0xff]  ;;  %v8638_v0 = vcombine.low %v8381_v2, %v8385_v30 }
 0x256   :  { %4841 = vmatprep.subr.bf16.mxu1 %v8527_v7  ;;  %v8249_v9 = vld [vmem:[%s12762_s4 + $0xb68] sm:$0xff] }
 0x257   :  { %4789 = vmatpush1.bf16.msra.mxu0 %v8398_v61  ;;  %v8373_v46 = vld [vmem:[%s12762_s4 + $0xf48] sm:$0xff]  ;;  %v8503_v62 = vcombine.high %v8245_v34, %v8249_v9  ;;  %v8502_v16 = vcombine.low %v8245_v34, %v8249_v9 }
 0x258   :  { %4790 = vmatprep.subr.bf16.mxu0 %v8519_v40  ;;  %v8377_v56 = vld [vmem:[%s12762_s4 + $0xf68] sm:$0xff] }
 0x259   :  { %4842 = vmatpush1.bf16.msra.mxu1 %v8526_v35  ;;  %v8631_v21 = vcombine.high %v8373_v46, %v8377_v56  ;;  %v8237_v60 = vld [vmem:[%s12762_s4 + $0xb08] sm:$0xff]  ;;  %v8630_v7 = vcombine.low %v8373_v46, %v8377_v56 }
 0x25a   :  { %4843 = vmatprep.subr.bf16.mxu1 %v8647_v29  ;;  %v8241_v33 = vld [vmem:[%s12762_s4 + $0xb28] sm:$0xff] }
 0x25b   :  { %4791 = vmatpush2.bf16.msra.mxu0 %v8518_v53  ;;  %v8365_v6 = vld [vmem:[%s12762_s4 + $0xf08] sm:$0xff]  ;;  %v8495_v22 = vcombine.high %v8237_v60, %v8241_v33  ;;  %v8494_v40 = vcombine.low %v8237_v60, %v8241_v33 }
 0x25c   :  { %4792 = vmatprep.subr.bf16.mxu0 %v8511_v58  ;;  %v8369_v4 = vld [vmem:[%s12762_s4 + $0xf28] sm:$0xff] }
 0x25d   :  { %4844 = vmatpush2.bf16.msra.mxu1 %v8646_v13  ;;  %v8623_v17 = vcombine.high %v8365_v6, %v8369_v4  ;;  %v8229_v36 = vld [vmem:[%s12762_s4 + $0xac8] sm:$0xff]  ;;  %v8622_v29 = vcombine.low %v8365_v6, %v8369_v4 }
 0x25e   :  { %4845 = vmatprep.subr.bf16.mxu1 %v8639_v15  ;;  %v8233_v37 = vld [vmem:[%s12762_s4 + $0xae8] sm:$0xff] }
 0x25f   :  { %4793 = vmatpush2.bf16.msra.mxu0 %v8510_v63  ;;  %v8357_v61 = vld [vmem:[%s12762_s4 + $0xec8] sm:$0xff]  ;;  %v8487_v50 = vcombine.high %v8229_v36, %v8233_v37  ;;  %v8486_v58 = vcombine.low %v8229_v36, %v8233_v37 }
 0x260   :  { %4794 = vmatprep.subr.bf16.mxu0 %v8503_v62  ;;  %v8361_v35 = vld [vmem:[%s12762_s4 + $0xee8] sm:$0xff] }
 0x261   :  { %4846 = vmatpush2.bf16.msra.mxu1 %v8638_v0  ;;  %v8615_v39 = vcombine.high %v8357_v61, %v8361_v35  ;;  %v8221_v2 = vld [vmem:[%s12762_s4 + $0xa88] sm:$0xff]  ;;  %v8614_v15 = vcombine.low %v8357_v61, %v8361_v35  ;;  %v8198_v61 = vld [vmem:[%s12762_s4 + $0x9d0] sm:$0xff] }
 0x262   :  { %4847 = vmatprep.subr.bf16.mxu1 %v8631_v21  ;;  %v8225_v30 = vld [vmem:[%s12762_s4 + $0xaa8] sm:$0xff]  ;;  %v8202_v35 = vld [vmem:[%s12762_s4 + $0x9f0] sm:$0xff] }
 0x263   :  { %4795 = vmatpush2.bf16.msra.mxu0 %v8502_v16  ;;  %v8349_v53 = vld [vmem:[%s12762_s4 + $0xe88] sm:$0xff]  ;;  %v8479_v34 = vcombine.high %v8221_v2, %v8225_v30  ;;  %v8478_v62 = vcombine.low %v8221_v2, %v8225_v30  ;;  %v8457_v2 = vcombine.high %v8198_v61, %v8202_v35 }
 0x264   :  { %4796 = vmatprep.subr.bf16.mxu0 %v8495_v22  ;;  %v8353_v13 = vld [vmem:[%s12762_s4 + $0xea8] sm:$0xff] }
 0x265   :  { %4848 = vmatpush2.bf16.msra.mxu1 %v8630_v7  ;;  %v8607_v9 = vcombine.high %v8349_v53, %v8353_v13  ;;  %v8213_v46 = vld [vmem:[%s12762_s4 + $0xa48] sm:$0xff]  ;;  %v8606_v21 = vcombine.low %v8349_v53, %v8353_v13  ;;  %v8190_v53 = vld [vmem:[%s12762_s4 + $0x990] sm:$0xff] }
 0x266   :  { %4849 = vmatprep.subr.bf16.mxu1 %v8623_v17  ;;  %v8217_v56 = vld [vmem:[%s12762_s4 + $0xa68] sm:$0xff]  ;;  %v8194_v13 = vld [vmem:[%s12762_s4 + $0x9b0] sm:$0xff] }
 0x267   :  { %4797 = vmatpush2.bf16.msra.mxu0 %v8494_v40  ;;  %v8341_v63 = vld [vmem:[%s12762_s4 + $0xe48] sm:$0xff]  ;;  %v8471_v60 = vcombine.high %v8213_v46, %v8217_v56  ;;  %v8470_v22 = vcombine.low %v8213_v46, %v8217_v56  ;;  %v8326_v40 = vld [vmem:[%s12762_s4 + $0xdd0] sm:$0xff]  ;;  %v8456_v46 = vcombine.low %v8198_v61, %v8202_v35 }
 0x268   :  { %4798 = vmatprep.subr.bf16.mxu0 %v8487_v50  ;;  %v8345_v0 = vld [vmem:[%s12762_s4 + $0xe68] sm:$0xff] }
 0x269   :  { %4850 = vmatpush2.bf16.msra.mxu1 %v8622_v29  ;;  %v8599_v33 = vcombine.high %v8341_v63, %v8345_v0  ;;  %v8205_v6 = vld [vmem:[%s12762_s4 + $0xa08] sm:$0xff]  ;;  %v8598_v17 = vcombine.low %v8341_v63, %v8345_v0  ;;  %v8330_v29 = vld [vmem:[%s12762_s4 + $0xdf0] sm:$0xff] }
 0x26a   :  { %4851 = vmatprep.subr.bf16.mxu1 %v8615_v39  ;;  %v8209_v4 = vld [vmem:[%s12762_s4 + $0xa28] sm:$0xff]  ;;  %v8585_v30 = vcombine.high %v8326_v40, %v8330_v29  ;;  %v8584_v63 = vcombine.low %v8326_v40, %v8330_v29 }
 0x26b   :  { %4799 = vmatpush2.bf16.msra.mxu0 %v8486_v58  ;;  %v8333_v16 = vld [vmem:[%s12762_s4 + $0xe08] sm:$0xff]  ;;  %v8463_v36 = vcombine.high %v8205_v6, %v8209_v4  ;;  %v8462_v50 = vcombine.low %v8205_v6, %v8209_v4  ;;  %v8186_v6 = vld [vmem:[%s12762_s4 + $0x970] sm:$0xff] }
 0x26c   :  { %4800 = vmatprep.subr.bf16.mxu0 %v8479_v34  ;;  %v8337_v7 = vld [vmem:[%s12762_s4 + $0xe28] sm:$0xff]  ;;  %v8322_v34 = vld [vmem:[%s12762_s4 + $0xdb0] sm:$0xff] }
 0x26d   :  { %4852 = vmatpush2.bf16.msra.mxu1 %v8614_v15  ;;  %v8591_v37 = vcombine.high %v8333_v16, %v8337_v7  ;;  %v8590_v39 = vcombine.low %v8333_v16, %v8337_v7  ;;  %v8318_v15 = vld [vmem:[%s12762_s4 + $0xd90] sm:$0xff] }
 0x26e   :  { %4853 = vmatprep.subr.bf16.mxu1 %v8607_v9  ;;  %v8310_v7 = vld [vmem:[%s12762_s4 + $0xd50] sm:$0xff]  ;;  %v8576_v61 = vcombine.low %v8318_v15, %v8322_v34 }
 0x26f   :  { %4801 = vmatpush2.bf16.msra.mxu0 %v8478_v62  ;;  %v8449_v62 = vcombine.high %v8190_v53, %v8194_v13 }
 0x270   :  { %4802 = vmatprep.subr.bf16.mxu0 %v8471_v60  ;;  %v8577_v60 = vcombine.high %v8318_v15, %v8322_v34  ;;  %v8306_v15 = vld [vmem:[%s12762_s4 + $0xd30] sm:$0xff] }
 0x271   :  { %4854 = vmatpush2.bf16.msra.mxu1 %v8606_v21 }
 0x272   :  { %4855 = vmatprep.subr.bf16.mxu1 %v8599_v33  ;;  %v8182_v33 = vld [vmem:[%s12762_s4 + $0x950] sm:$0xff] }
 0x273   :  { %4803 = vmatpush2.bf16.msra.mxu0 %v8470_v22  ;;  %v8314_v22 = vld [vmem:[%s12762_s4 + $0xd70] sm:$0xff]  ;;  %v8441_v40 = vcombine.high %v8182_v33, %v8186_v6 }
 0x274   :  { %4804 = vmatprep.subr.bf16.mxu0 %v8463_v36  ;;  %v8448_v36 = vcombine.low %v8190_v53, %v8194_v13  ;;  %v8302_v13 = vld [vmem:[%s12762_s4 + $0xd10] sm:$0xff] }
 0x275   :  { %4856 = vmatpush2.bf16.msra.mxu1 %v8598_v17 }
 0x276   :  { %4857 = vmatprep.subr.bf16.mxu1 %v8591_v37 }
 0x277   :  { %4805 = vmatpush2.bf16.msra.mxu0 %v8462_v50  ;;  %v8569_v50 = vcombine.high %v8310_v7, %v8314_v22 }
 0x278   :  { %4880 = vmatprep.subr.bf16.mxu0 %v8457_v2  ;;  %v8178_v2 = vld [vmem:[%s12762_s4 + $0x930] sm:$0xff] }
 0x279   :  { %4858 = vmatpush2.bf16.msra.mxu1 %v8590_v39  ;;  %v8174_v39 = vld [vmem:[%s12762_s4 + $0x910] sm:$0xff] }
 0x27a   :  { %v2953_v58 = vpop.f32.mrf.mxu0  ;;  %4933 = vmatprep.subr.bf16.mxu1 %v8585_v30  ;;  %4807 = vmatmul.mubr.bf16.vlgmr.msra.gmra.mxu0 %v10103_v41 }
 0x27b   :  { %4816 = vmatprep.mubr.bf16.mxu0 %v10168_v51  ;;  %4881 = vmatpush1.bf16.msra.mxu0 %v8456_v46  ;;  %v8440_v46 = vcombine.low %v8182_v33, %v8186_v6  ;;  %v8170_v33 = vld [vmem:[%s12762_s4 + $0x8f0] sm:$0xff] }
 0x27c   :  { %v3006_v9 = vpop.f32.mrf.mxu1  ;;  %v2955_v0 = vpop.f32.mrf.mxu0  ;;  %4860 = vmatmul.mubr.bf16.vlgmr.msra.gmra.mxu1 %v10105_v1  ;;  %4882 = vmatprep.subr.bf16.mxu0 %v8449_v62 }
 0x27d   :  { %v11231_v56 = vadd.f32 %v3006_v9, %v2953_v58  ;;  %4869 = vmatprep.mubr.bf16.mxu1 %v10196_v27  ;;  %4934 = vmatpush1.bf16.msra.mxu1 %v8584_v63  ;;  %v8568_v63 = vcombine.low %v8310_v7, %v8314_v22 }
 0x27e   :  { %v3008_v21 = vpop.f32.mrf.mxu1  ;;  %v2957_v16 = vpop.f32.mrf.mxu0  ;;  %4935 = vmatprep.subr.bf16.mxu1 %v8577_v60 }
 0x27f   :  { %v11242_v4 = vadd.f32 %v3008_v21, %v2955_v0  ;;  %v12776_v34 = vrot.slane %v11231_v56, 7  ;;  %4883 = vmatpush1.bf16.msra.mxu0 %v8448_v36  ;;  %v8166_v36 = vld [vmem:[%s12762_s4 + $0x8d0] sm:$0xff] }
 0x280   :  { %v3010_v17 = vpop.f32.mrf.mxu1  ;;  %v2959_v35 = vpop.f32.mrf.mxu0  ;;  %4884 = vmatprep.subr.bf16.mxu0 %v8441_v40 }
 0x281   :  { %v3011_v37 = vadd.f32 %v3010_v17, %v2957_v16  ;;  %v12777_v0 = vrot.slane %v11242_v4, 7  ;;  %4936 = vmatpush1.bf16.msra.mxu1 %v8576_v61  ;;  %v8433_v16 = vcombine.high %v8174_v39, %v8178_v2  ;;  %v8294_v61 = vld [vmem:[%s12762_s4 + $0xcd0] sm:$0xff] }
 0x282   :  { %v3012_v29 = vpop.f32.mrf.mxu1  ;;  %v2963_v53 = vpop.f32.mrf.mxu0  ;;  %4817 = vmatmul.mubr.bf16.gmra.mxu0 %v10181_v59  ;;  %4937 = vmatprep.subr.bf16.mxu1 %v8569_v50  ;;  %v8432_v50 = vcombine.low %v8174_v39, %v8178_v2  ;;  %v8286_v39 = vld [vmem:[%s12762_s4 + $0xc90] sm:$0xff] }
 0x283   :  { %v7101_v30 = vrot.slane %v3011_v37, 7  ;;  %v3013_v58 = vadd.f32 %v3012_v29, %v2959_v35  ;;  %v8561_v37 = vcombine.high %v8302_v13, %v8306_v15  ;;  %4912 = vmatprep.mubr.bf16.mxu0 %v10115_v10  ;;  %v8298_v35 = vld [vmem:[%s12762_s4 + $0xcf0] sm:$0xff]  ;;  %4885 = vmatpush1.bf16.msra.mxu0 %v8440_v46 }
 0x284   :  { %v3016_v9 = vpop.f32.mrf.mxu1  ;;  %v2965_v60 = vpop.f32.mrf.mxu0  ;;  %4870 = vmatmul.mubr.bf16.gmra.mxu1 %v10205_v20  ;;  %4886 = vmatprep.subr.bf16.mxu0 %v8433_v16  ;;  %v8162_v46 = vld [vmem:[%s12762_s4 + $0x8b0] sm:$0xff] }
 0x285   :  { %v7103_v62 = vrot.slane %v3013_v58, 7  ;;  %v11265_v21 = vadd.f32 %v3016_v9, %v2963_v53  ;;  %v11277_v6 = vsel %vm963_vm0, %v12776_v34, %v7101_v30  ;;  %4965 = vmatprep.mubr.bf16.mxu1 %v10117_v5  ;;  %4938 = vmatpush1.bf16.msra.mxu1 %v8568_v63  ;;  %v8560_v58 = vcombine.low %v8302_v13, %v8306_v15  ;;  %v8158_v34 = vld [vmem:[%s12762_s4 + $0x890] sm:$0xff] }
 0x286   :  { %v3018_v17 = vpop.f32.mrf.mxu1  ;;  %v2967_v22 = vpop.f32.mrf.mxu0  ;;  %v8425_v9 = vcombine.high %v8166_v36, %v8170_v33  ;;  %4939 = vmatprep.subr.bf16.mxu1 %v8561_v37  ;;  %v8290_v2 = vld [vmem:[%s12762_s4 + $0xcb0] sm:$0xff]  ;;  %v8424_v15 = vcombine.low %v8166_v36, %v8170_v33  ;;  %v8552_v37 = vcombine.low %v8294_v61, %v8298_v35 }
 0x287   :  { %v11281_v7 = vadd.f32 %v3018_v17, %v2965_v60  ;;  %v11292_v40 = vsel %vm963_vm0, %v12777_v0, %v7103_v62  ;;  %v8553_v17 = vcombine.high %v8294_v61, %v8298_v35  ;;  %v12779_v13 = vrot.slane %v11265_v21, 7  ;;  %4887 = vmatpush1.bf16.msra.mxu0 %v8432_v50  ;;  %v8282_v33 = vld [vmem:[%s12762_s4 + $0xc70] sm:$0xff] }
 0x288   :  { %v3020_v29 = vpop.f32.mrf.mxu1  ;;  %v2969_v53 = vpop.f32.mrf.mxu0  ;;  %4888 = vmatprep.subr.bf16.mxu0 %v8425_v9  ;;  %v8416_v35 = vcombine.low %v8158_v34, %v8162_v46  ;;  %v8544_v50 = vcombine.low %v8286_v39, %v8290_v2 }
 0x289   :  { %v3021_v30 = vadd.f32 %v3020_v29, %v2967_v22  ;;  %v12778_v63 = vrot.slane %v11281_v7, 7  ;;  %4940 = vmatpush1.bf16.msra.mxu1 %v8560_v58  ;;  %v8417_v22 = vcombine.high %v8158_v34, %v8162_v46  ;;  %v8545_v29 = vcombine.high %v8286_v39, %v8290_v2  ;;  %v8274_v34 = vld [vmem:[%s12762_s4 + $0xc30] sm:$0xff] }
 0x28a   :  { %v3022_v60 = vpop.f32.mrf.mxu1  ;;  %4941 = vmatprep.subr.bf16.mxu1 %v8553_v17  ;;  %v8146_v17 = vld [vmem:[%s12762_s4 + $0x830] sm:$0xff] }
 0x28b   :  { %v7125_v62 = vrot.slane %v3021_v30, 7  ;;  %v3023_v0 = vadd.f32 %v3022_v60, %v2969_v53  ;;  %v8150_v30 = vld [vmem:[%s12762_s4 + $0x850] sm:$0xff]  ;;  %4889 = vmatpush1.bf16.msra.mxu0 %v8424_v15 }
 0x28c   :  { %v8154_v53 = vld [vmem:[%s12762_s4 + $0x870] sm:$0xff]  ;;  %4890 = vmatprep.subr.bf16.mxu0 %v8417_v22 }
 0x28d   :  { %v7127_v16 = vrot.slane %v3023_v0, 7  ;;  %v11318_v36 = vsel %vm963_vm0, %v12779_v13, %v7125_v62  ;;  %v8278_v0 = vld [vmem:[%s12762_s4 + $0xc50] sm:$0xff]  ;;  %4942 = vmatpush1.bf16.msra.mxu1 %v8552_v37  ;;  %v8409_v58 = vcombine.high %v8150_v30, %v8154_v53  ;;  %v8408_v46 = vcombine.low %v8150_v30, %v8154_v53 }
 0x28e   :  { %4943 = vmatprep.subr.bf16.mxu1 %v8545_v29  ;;  %v8537_v9 = vcombine.high %v8278_v0, %v8282_v33  ;;  %v8142_v60 = vld [vmem:[%s12762_s4 + $0x810] sm:$0xff]  ;;  %v8536_v39 = vcombine.low %v8278_v0, %v8282_v33 }
 0x28f   :  { %v11329_v61 = vsel %vm963_vm0, %v12778_v63, %v7127_v16  ;;  %v8270_v62 = vld [vmem:[%s12762_s4 + $0xc10] sm:$0xff]  ;;  %4891 = vmatpush1.bf16.msra.mxu0 %v8416_v35  ;;  %v8401_v2 = vcombine.high %v8142_v60, %v8146_v17  ;;  %v8400_v30 = vcombine.low %v8142_v60, %v8146_v17  ;;  %v8183_v63 = vld [vmem:[%s12762_s4 + $0x958] sm:$0xff] }
 0x290   :  { %4892 = vmatprep.subr.bf16.mxu0 %v8409_v58  ;;  %v8529_v15 = vcombine.high %v8270_v62, %v8274_v34  ;;  %v8262_v16 = vld [vmem:[%s12762_s4 + $0xbd0] sm:$0xff]  ;;  %v8528_v53 = vcombine.low %v8270_v62, %v8274_v34 }
 0x291   :  { %4944 = vmatpush1.bf16.msra.mxu1 %v8544_v50  ;;  %v8266_v37 = vld [vmem:[%s12762_s4 + $0xbf0] sm:$0xff] }
 0x292   :  { %4945 = vmatprep.subr.bf16.mxu1 %v8537_v9  ;;  %v8390_v22 = vld [vmem:[%s12762_s4 + $0xfd0] sm:$0xff]  ;;  %v8521_v0 = vcombine.high %v8262_v16, %v8266_v37  ;;  %v8520_v60 = vcombine.low %v8262_v16, %v8266_v37 }
 0x293   :  { %v8394_v29 = vld [vmem:[%s12762_s4 + $0xff0] sm:$0xff]  ;;  %4893 = vmatpush1.bf16.msra.mxu0 %v8408_v46 }
 0x294   :  { %4894 = vmatprep.subr.bf16.mxu0 %v8401_v2  ;;  %v8649_v33 = vcombine.high %v8390_v22, %v8394_v29  ;;  %v8254_v35 = vld [vmem:[%s12762_s4 + $0xb90] sm:$0xff]  ;;  %v8648_v17 = vcombine.low %v8390_v22, %v8394_v29 }
 0x295   :  { %4946 = vmatpush1.bf16.msra.mxu1 %v8536_v39  ;;  %v8258_v50 = vld [vmem:[%s12762_s4 + $0xbb0] sm:$0xff] }
 0x296   :  { %4947 = vmatprep.subr.bf16.mxu1 %v8529_v15  ;;  %v8382_v58 = vld [vmem:[%s12762_s4 + $0xf90] sm:$0xff]  ;;  %v8513_v62 = vcombine.high %v8254_v35, %v8258_v50  ;;  %v8512_v16 = vcombine.low %v8254_v35, %v8258_v50 }
 0x297   :  { %v8386_v9 = vld [vmem:[%s12762_s4 + $0xfb0] sm:$0xff]  ;;  %4895 = vmatpush1.bf16.msra.mxu0 %v8400_v30 }
 0x298   :  { %4896 = vmatprep.subr.bf16.mxu0 %v8521_v0  ;;  %v8641_v34 = vcombine.high %v8382_v58, %v8386_v9  ;;  %v8246_v46 = vld [vmem:[%s12762_s4 + $0xb50] sm:$0xff]  ;;  %v8640_v37 = vcombine.low %v8382_v58, %v8386_v9 }
 0x299   :  { %4948 = vmatpush1.bf16.msra.mxu1 %v8528_v53  ;;  %v8250_v39 = vld [vmem:[%s12762_s4 + $0xb70] sm:$0xff] }
 0x29a   :  { %4949 = vmatprep.subr.bf16.mxu1 %v8649_v33  ;;  %v8374_v2 = vld [vmem:[%s12762_s4 + $0xf50] sm:$0xff]  ;;  %v8505_v22 = vcombine.high %v8246_v46, %v8250_v39  ;;  %v8504_v35 = vcombine.low %v8246_v46, %v8250_v39 }
 0x29b   :  { %v8378_v15 = vld [vmem:[%s12762_s4 + $0xf70] sm:$0xff]  ;;  %4897 = vmatpush2.bf16.msra.mxu0 %v8520_v60 }
 0x29c   :  { %4898 = vmatprep.subr.bf16.mxu0 %v8513_v62  ;;  %v8633_v29 = vcombine.high %v8374_v2, %v8378_v15  ;;  %v8238_v30 = vld [vmem:[%s12762_s4 + $0xb10] sm:$0xff]  ;;  %v8632_v50 = vcombine.low %v8374_v2, %v8378_v15 }
 0x29d   :  { %4950 = vmatpush2.bf16.msra.mxu1 %v8648_v17  ;;  %v8242_v53 = vld [vmem:[%s12762_s4 + $0xb30] sm:$0xff] }
 0x29e   :  { %4951 = vmatprep.subr.bf16.mxu1 %v8641_v34  ;;  %v8366_v0 = vld [vmem:[%s12762_s4 + $0xf10] sm:$0xff]  ;;  %v8497_v58 = vcombine.high %v8238_v30, %v8242_v53  ;;  %v8496_v46 = vcombine.low %v8238_v30, %v8242_v53 }
 0x29f   :  { %v8370_v33 = vld [vmem:[%s12762_s4 + $0xf30] sm:$0xff]  ;;  %4899 = vmatpush2.bf16.msra.mxu0 %v8512_v16 }
 0x2a0   :  { %4900 = vmatprep.subr.bf16.mxu0 %v8505_v22  ;;  %v8625_v9 = vcombine.high %v8366_v0, %v8370_v33  ;;  %v8230_v60 = vld [vmem:[%s12762_s4 + $0xad0] sm:$0xff]  ;;  %v8624_v39 = vcombine.low %v8366_v0, %v8370_v33 }
 0x2a1   :  { %4952 = vmatpush2.bf16.msra.mxu1 %v8640_v37  ;;  %v8234_v17 = vld [vmem:[%s12762_s4 + $0xaf0] sm:$0xff] }
 0x2a2   :  { %4953 = vmatprep.subr.bf16.mxu1 %v8633_v29  ;;  %v8358_v62 = vld [vmem:[%s12762_s4 + $0xed0] sm:$0xff]  ;;  %v8489_v2 = vcombine.high %v8230_v60, %v8234_v17  ;;  %v8488_v30 = vcombine.low %v8230_v60, %v8234_v17 }
 0x2a3   :  { %v8362_v34 = vld [vmem:[%s12762_s4 + $0xef0] sm:$0xff]  ;;  %4901 = vmatpush2.bf16.msra.mxu0 %v8504_v35 }
 0x2a4   :  { %4902 = vmatprep.subr.bf16.mxu0 %v8497_v58  ;;  %v8617_v15 = vcombine.high %v8358_v62, %v8362_v34  ;;  %v8222_v16 = vld [vmem:[%s12762_s4 + $0xa90] sm:$0xff]  ;;  %v8616_v53 = vcombine.low %v8358_v62, %v8362_v34 }
 0x2a5   :  { %4954 = vmatpush2.bf16.msra.mxu1 %v8632_v50  ;;  %v8226_v37 = vld [vmem:[%s12762_s4 + $0xab0] sm:$0xff] }
 0x2a6   :  { %4955 = vmatprep.subr.bf16.mxu1 %v8625_v9  ;;  %v8350_v22 = vld [vmem:[%s12762_s4 + $0xe90] sm:$0xff]  ;;  %v8481_v0 = vcombine.high %v8222_v16, %v8226_v37  ;;  %v8480_v60 = vcombine.low %v8222_v16, %v8226_v37 }
 0x2a7   :  { %v8354_v29 = vld [vmem:[%s12762_s4 + $0xeb0] sm:$0xff]  ;;  %4903 = vmatpush2.bf16.msra.mxu0 %v8496_v46 }
 0x2a8   :  { %4904 = vmatprep.subr.bf16.mxu0 %v8489_v2  ;;  %v8609_v33 = vcombine.high %v8350_v22, %v8354_v29  ;;  %v8214_v35 = vld [vmem:[%s12762_s4 + $0xa50] sm:$0xff]  ;;  %v8608_v17 = vcombine.low %v8350_v22, %v8354_v29 }
 0x2a9   :  { %4956 = vmatpush2.bf16.msra.mxu1 %v8624_v39  ;;  %v8218_v50 = vld [vmem:[%s12762_s4 + $0xa70] sm:$0xff] }
 0x2aa   :  { %4957 = vmatprep.subr.bf16.mxu1 %v8617_v15  ;;  %v8342_v58 = vld [vmem:[%s12762_s4 + $0xe50] sm:$0xff]  ;;  %v8473_v62 = vcombine.high %v8214_v35, %v8218_v50  ;;  %v8472_v16 = vcombine.low %v8214_v35, %v8218_v50 }
 0x2ab   :  { %v8346_v9 = vld [vmem:[%s12762_s4 + $0xe70] sm:$0xff]  ;;  %4905 = vmatpush2.bf16.msra.mxu0 %v8488_v30  ;;  %v8199_v30 = vld [vmem:[%s12762_s4 + $0x9d8] sm:$0xff] }
 0x2ac   :  { %4906 = vmatprep.subr.bf16.mxu0 %v8481_v0  ;;  %v8601_v34 = vcombine.high %v8342_v58, %v8346_v9  ;;  %v8206_v46 = vld [vmem:[%s12762_s4 + $0xa10] sm:$0xff]  ;;  %v8600_v37 = vcombine.low %v8342_v58, %v8346_v9  ;;  %v8327_v0 = vld [vmem:[%s12762_s4 + $0xdd8] sm:$0xff] }
 0x2ad   :  { %4958 = vmatpush2.bf16.msra.mxu1 %v8616_v53  ;;  %v8210_v39 = vld [vmem:[%s12762_s4 + $0xa30] sm:$0xff]  ;;  %v8203_v53 = vld [vmem:[%s12762_s4 + $0x9f8] sm:$0xff] }
 0x2ae   :  { %4959 = vmatprep.subr.bf16.mxu1 %v8609_v33  ;;  %v8334_v2 = vld [vmem:[%s12762_s4 + $0xe10] sm:$0xff]  ;;  %v8465_v22 = vcombine.high %v8206_v46, %v8210_v39  ;;  %v8331_v33 = vld [vmem:[%s12762_s4 + $0xdf8] sm:$0xff]  ;;  %v8464_v35 = vcombine.low %v8206_v46, %v8210_v39  ;;  %v8459_v58 = vcombine.high %v8199_v30, %v8203_v53 }
 0x2af   :  { %v8338_v15 = vld [vmem:[%s12762_s4 + $0xe30] sm:$0xff]  ;;  %4907 = vmatpush2.bf16.msra.mxu0 %v8480_v60  ;;  %v8587_v9 = vcombine.high %v8327_v0, %v8331_v33  ;;  %v8191_v60 = vld [vmem:[%s12762_s4 + $0x998] sm:$0xff] }
 0x2b0   :  { %4908 = vmatprep.subr.bf16.mxu0 %v8473_v62  ;;  %v8593_v29 = vcombine.high %v8334_v2, %v8338_v15  ;;  %v8592_v50 = vcombine.low %v8334_v2, %v8338_v15  ;;  %v8323_v46 = vld [vmem:[%s12762_s4 + $0xdb8] sm:$0xff]  ;;  %v8458_v2 = vcombine.low %v8199_v30, %v8203_v53 }
 0x2b1   :  { %4960 = vmatpush2.bf16.msra.mxu1 %v8608_v17  ;;  %v8195_v17 = vld [vmem:[%s12762_s4 + $0x9b8] sm:$0xff] }
 0x2b2   :  { %4961 = vmatprep.subr.bf16.mxu1 %v8601_v34  ;;  %v8319_v34 = vld [vmem:[%s12762_s4 + $0xd98] sm:$0xff] }
 0x2b3   :  { %4909 = vmatpush2.bf16.msra.mxu0 %v8472_v16  ;;  %v8586_v16 = vcombine.low %v8327_v0, %v8331_v33  ;;  %v8311_v0 = vld [vmem:[%s12762_s4 + $0xd58] sm:$0xff] }
 0x2b4   :  { %4910 = vmatprep.subr.bf16.mxu0 %v8465_v22  ;;  %v8451_v22 = vcombine.high %v8191_v60, %v8195_v17  ;;  %v8315_v33 = vld [vmem:[%s12762_s4 + $0xd78] sm:$0xff] }
 0x2b5   :  { %4962 = vmatpush2.bf16.msra.mxu1 %v8600_v37  ;;  %v8571_v43 = vcombine.high %v8311_v0, %v8315_v33 }
 0x2b6   :  { %4963 = vmatprep.subr.bf16.mxu1 %v8593_v29 }
 0x2b7   :  { %4911 = vmatpush2.bf16.msra.mxu0 %v8464_v35  ;;  %v8579_v35 = vcombine.high %v8319_v34, %v8323_v46 }
 0x2b8   :  { %4986 = vmatprep.subr.bf16.mxu0 %v8459_v58 }
 0x2b9   :  { %4964 = vmatpush2.bf16.msra.mxu1 %v8592_v50  ;;  %v8187_v50 = vld [vmem:[%s12762_s4 + $0x978] sm:$0xff] }
 0x2ba   :  { %v3059_v62 = vpop.f32.mrf.mxu0  ;;  %5039 = vmatprep.subr.bf16.mxu1 %v8587_v9  ;;  %4913 = vmatmul.mubr.bf16.vlgmr.msra.gmra.mxu0 %v10103_v41  ;;  %v8450_v9 = vcombine.low %v8191_v60, %v8195_v17  ;;  %v8303_v17 = vld [vmem:[%s12762_s4 + $0xd18] sm:$0xff] }
 0x2bb   :  { %4922 = vmatprep.mubr.bf16.mxu0 %v10168_v51  ;;  %4987 = vmatpush1.bf16.msra.mxu0 %v8458_v2 }
 0x2bc   :  { %v3112_v39 = vpop.f32.mrf.mxu1  ;;  %v3061_v37 = vpop.f32.mrf.mxu0  ;;  %4966 = vmatmul.mubr.bf16.vlgmr.msra.gmra.mxu1 %v10105_v1  ;;  %4988 = vmatprep.subr.bf16.mxu0 %v8451_v22  ;;  %v8442_v22 = vcombine.low %v8183_v63, %v8187_v50 }
 0x2bd   :  { %v11463_v15 = vadd.f32 %v3112_v39, %v3059_v62  ;;  %4975 = vmatprep.mubr.bf16.mxu1 %v10196_v27  ;;  %5040 = vmatpush1.bf16.msra.mxu1 %v8586_v16  ;;  %v8578_v39 = vcombine.low %v8319_v34, %v8323_v46  ;;  %v8307_v34 = vld [vmem:[%s12762_s4 + $0xd38] sm:$0xff] }
 0x2be   :  { %v3114_v29 = vpop.f32.mrf.mxu1  ;;  %v3063_v53 = vpop.f32.mrf.mxu0  ;;  %5041 = vmatprep.subr.bf16.mxu1 %v8579_v35  ;;  %v8570_v35 = vcombine.low %v8311_v0, %v8315_v33  ;;  %v8563_v14 = vcombine.high %v8303_v17, %v8307_v34  ;;  %v8295_v0 = vld [vmem:[%s12762_s4 + $0xcd8] sm:$0xff] }
 0x2bf   :  { %v11474_v30 = vadd.f32 %v3114_v29, %v3061_v37  ;;  %v8443_v29 = vcombine.high %v8183_v63, %v8187_v50  ;;  %v12786_v46 = vrot.slane %v11463_v15, 7  ;;  %4989 = vmatpush1.bf16.msra.mxu0 %v8450_v9  ;;  %v8167_v9 = vld [vmem:[%s12762_s4 + $0x8d8] sm:$0xff] }
 0x2c0   :  { %v3116_v58 = vpop.f32.mrf.mxu1  ;;  %v3065_v37 = vpop.f32.mrf.mxu0  ;;  %v8171_v63 = vld [vmem:[%s12762_s4 + $0x8f8] sm:$0xff] }
 0x2c1   :  { %v3117_v62 = vadd.f32 %v3116_v58, %v3063_v53  ;;  %v12789_v53 = vrot.slane %v11474_v30, 7  ;;  %5042 = vmatpush1.bf16.msra.mxu1 %v8578_v39  ;;  %4990 = vmatprep.subr.bf16.mxu0 %v8443_v29  ;;  %v8299_v33 = vld [vmem:[%s12762_s4 + $0xcf8] sm:$0xff] }
 0x2c2   :  { %v3118_v13 = vpop.f32.mrf.mxu1  ;;  %v3069_v60 = vpop.f32.mrf.mxu0  ;;  %4923 = vmatmul.mubr.bf16.gmra.mxu0 %v10181_v59  ;;  %5043 = vmatprep.subr.bf16.mxu1 %v8571_v43  ;;  %v8555_v48 = vcombine.high %v8295_v0, %v8299_v33 }
 0x2c3   :  { %v7105_v2 = vrot.slane %v3117_v62, 7  ;;  %v3119_v54 = vadd.f32 %v3118_v13, %v3065_v37  ;;  %v8435_v37 = vcombine.high %v8175_v52, %v8179_v19  ;;  %5018 = vmatprep.mubr.bf16.mxu0 %v10115_v10  ;;  %4991 = vmatpush1.bf16.msra.mxu0 %v8442_v22  ;;  %v8163_v22 = vld [vmem:[%s12762_s4 + $0x8b8] sm:$0xff] }
 0x2c4   :  { %v3122_v16 = vpop.f32.mrf.mxu1  ;;  %v3071_v62 = vpop.f32.mrf.mxu0  ;;  %4976 = vmatmul.mubr.bf16.gmra.mxu1 %v10205_v20 }
 0x2c5   :  { %v7107_v58 = vrot.slane %v3119_v54, 7  ;;  %v11497_v13 = vadd.f32 %v3122_v16, %v3069_v60  ;;  %v11509_v54 = vsel %vm963_vm0, %v12786_v46, %v7105_v2  ;;  %5071 = vmatprep.mubr.bf16.mxu1 %v10117_v5  ;;  %5044 = vmatpush1.bf16.msra.mxu1 %v8570_v35  ;;  %v8562_v60 = vcombine.low %v8303_v17, %v8307_v34 }
 0x2c6   :  { %v3124_v32 = vpop.f32.mrf.mxu1  ;;  %v3073_v50 = vpop.f32.mrf.mxu0  ;;  %4992 = vmatprep.subr.bf16.mxu0 %v8435_v37  ;;  %5045 = vmatprep.subr.bf16.mxu1 %v8563_v14  ;;  %v8291_v14 = vld [vmem:[%s12762_s4 + $0xcb8] sm:$0xff]  ;;  %v8426_v17 = vcombine.low %v8167_v9, %v8171_v63  ;;  %v8554_v37 = vcombine.low %v8295_v0, %v8299_v33  ;;  %v8418_v0 = vcombine.low %v8159_v57, %v8163_v22 }
 0x2c7   :  { %v11513_v43 = vadd.f32 %v3124_v32, %v3071_v62  ;;  %v11524_v39 = vsel %vm963_vm0, %v12789_v53, %v7107_v58  ;;  %v8434_v32 = vcombine.low %v8175_v52, %v8179_v19  ;;  %v8427_v62 = vcombine.high %v8167_v9, %v8171_v63  ;;  %v8287_v19 = vld [vmem:[%s12762_s4 + $0xc98] sm:$0xff] }
 0x2c8   :  { %v3126_v29 = vpop.f32.mrf.mxu1  ;;  %v3075_v16 = vpop.f32.mrf.mxu0  ;;  %v12791_v52 = vrot.slane %v11497_v13, 7  ;;  %v8546_v33 = vcombine.low %v8287_v19, %v8291_v14 }
 0x2c9   :  { %v3127_v2 = vadd.f32 %v3126_v29, %v3073_v50  ;;  %4993 = vmatpush1.bf16.msra.mxu0 %v8434_v32  ;;  %v12790_v34 = vrot.slane %v11513_v43, 7  ;;  %5046 = vmatpush1.bf16.msra.mxu1 %v8562_v60  ;;  %v8419_v50 = vcombine.high %v8159_v57, %v8163_v22  ;;  %v8151_v29 = vld [vmem:[%s12762_s4 + $0x858] sm:$0xff] }
 0x2ca   :  { %v3128_v46 = vpop.f32.mrf.mxu1  ;;  %4994 = vmatprep.subr.bf16.mxu0 %v8427_v62  ;;  %5047 = vmatprep.subr.bf16.mxu1 %v8555_v48  ;;  %v8283_v48 = vld [vmem:[%s12762_s4 + $0xc78] sm:$0xff] }
 0x2cb   :  { %v7129_v58 = vrot.slane %v3127_v2, 7  ;;  %v3129_v53 = vadd.f32 %v3128_v46, %v3075_v16  ;;  %v8547_v46 = vcombine.high %v8287_v19, %v8291_v14  ;;  %v8155_v2 = vld [vmem:[%s12762_s4 + $0x878] sm:$0xff] }
 0x2cc   :  { %v8411_v32 = vcombine.high %v8151_v29, %v8155_v2  ;;  %v8143_v16 = vld [vmem:[%s12762_s4 + $0x818] sm:$0xff]  ;;  %v8410_v22 = vcombine.low %v8151_v29, %v8155_v2 }
 0x2cd   :  { %v7131_v35 = vrot.slane %v3129_v53, 7  ;;  %v11550_v9 = vsel %vm963_vm0, %v12791_v52, %v7129_v58  ;;  %v8279_v53 = vld [vmem:[%s12762_s4 + $0xc58] sm:$0xff]  ;;  %4995 = vmatpush1.bf16.msra.mxu0 %v8426_v17  ;;  %5048 = vmatpush1.bf16.msra.mxu1 %v8554_v37 }
 0x2ce   :  { %4996 = vmatprep.subr.bf16.mxu0 %v8419_v50  ;;  %5049 = vmatprep.subr.bf16.mxu1 %v8547_v46  ;;  %v8539_v60 = vcombine.high %v8279_v53, %v8283_v48  ;;  %v8147_v62 = vld [vmem:[%s12762_s4 + $0x838] sm:$0xff]  ;;  %v8538_v19 = vcombine.low %v8279_v53, %v8283_v48 }
 0x2cf   :  { %v11561_v63 = vsel %vm963_vm0, %v12790_v34, %v7131_v35  ;;  %v8271_v58 = vld [vmem:[%s12762_s4 + $0xc18] sm:$0xff]  ;;  %v8403_v14 = vcombine.high %v8143_v16, %v8147_v62  ;;  %v8402_v29 = vcombine.low %v8143_v16, %v8147_v62 }
 0x2d0   :  { %v8275_v57 = vld [vmem:[%s12762_s4 + $0xc38] sm:$0xff] }
 0x2d1   :  { %4997 = vmatpush1.bf16.msra.mxu0 %v8418_v0  ;;  %5050 = vmatpush1.bf16.msra.mxu1 %v8546_v33  ;;  %v8531_v17 = vcombine.high %v8271_v58, %v8275_v57  ;;  %v8263_v35 = vld [vmem:[%s12762_s4 + $0xbd8] sm:$0xff]  ;;  %v8530_v2 = vcombine.low %v8271_v58, %v8275_v57 }
 0x2d2   :  { %4998 = vmatprep.subr.bf16.mxu0 %v8411_v32  ;;  %5051 = vmatprep.subr.bf16.mxu1 %v8539_v60  ;;  %v8267_v37 = vld [vmem:[%s12762_s4 + $0xbf8] sm:$0xff] }
 0x2d3   :  { %v8391_v50 = vld [vmem:[%s12762_s4 + $0xfd8] sm:$0xff]  ;;  %v8523_v53 = vcombine.high %v8263_v35, %v8267_v37  ;;  %v8522_v16 = vcombine.low %v8263_v35, %v8267_v37 }
 0x2d4   :  { %v8395_v46 = vld [vmem:[%s12762_s4 + $0xff8] sm:$0xff] }
 0x2d5   :  { %4999 = vmatpush1.bf16.msra.mxu0 %v8410_v22  ;;  %5052 = vmatpush1.bf16.msra.mxu1 %v8538_v19  ;;  %v8651_v48 = vcombine.high %v8391_v50, %v8395_v46  ;;  %v8255_v0 = vld [vmem:[%s12762_s4 + $0xb98] sm:$0xff]  ;;  %v8650_v62 = vcombine.low %v8391_v50, %v8395_v46 }
 0x2d6   :  { %5000 = vmatprep.subr.bf16.mxu0 %v8403_v14  ;;  %5053 = vmatprep.subr.bf16.mxu1 %v8531_v17  ;;  %v8259_v33 = vld [vmem:[%s12762_s4 + $0xbb8] sm:$0xff] }
 0x2d7   :  { %v8383_v32 = vld [vmem:[%s12762_s4 + $0xf98] sm:$0xff]  ;;  %v8515_v58 = vcombine.high %v8255_v0, %v8259_v33  ;;  %v8514_v35 = vcombine.low %v8255_v0, %v8259_v33 }
 0x2d8   :  { %v8387_v60 = vld [vmem:[%s12762_s4 + $0xfb8] sm:$0xff] }
 0x2d9   :  { %5001 = vmatpush1.bf16.msra.mxu0 %v8402_v29  ;;  %5054 = vmatpush1.bf16.msra.mxu1 %v8530_v2  ;;  %v8643_v57 = vcombine.high %v8383_v32, %v8387_v60  ;;  %v8247_v22 = vld [vmem:[%s12762_s4 + $0xb58] sm:$0xff]  ;;  %v8642_v37 = vcombine.low %v8383_v32, %v8387_v60 }
 0x2da   :  { %5002 = vmatprep.subr.bf16.mxu0 %v8523_v53  ;;  %5055 = vmatprep.subr.bf16.mxu1 %v8651_v48  ;;  %v8251_v19 = vld [vmem:[%s12762_s4 + $0xb78] sm:$0xff] }
 0x2db   :  { %v8375_v14 = vld [vmem:[%s12762_s4 + $0xf58] sm:$0xff]  ;;  %v8507_v50 = vcombine.high %v8247_v22, %v8251_v19  ;;  %v8506_v0 = vcombine.low %v8247_v22, %v8251_v19 }
 0x2dc   :  { %v8379_v17 = vld [vmem:[%s12762_s4 + $0xf78] sm:$0xff] }
 0x2dd   :  { %5003 = vmatpush2.bf16.msra.mxu0 %v8522_v16  ;;  %5056 = vmatpush2.bf16.msra.mxu1 %v8650_v62  ;;  %v8635_v46 = vcombine.high %v8375_v14, %v8379_v17  ;;  %v8239_v29 = vld [vmem:[%s12762_s4 + $0xb18] sm:$0xff]  ;;  %v8634_v33 = vcombine.low %v8375_v14, %v8379_v17 }
 0x2de   :  { %5004 = vmatprep.subr.bf16.mxu0 %v8515_v58  ;;  %5057 = vmatprep.subr.bf16.mxu1 %v8643_v57  ;;  %v8243_v2 = vld [vmem:[%s12762_s4 + $0xb38] sm:$0xff] }
 0x2df   :  { %v8367_v53 = vld [vmem:[%s12762_s4 + $0xf18] sm:$0xff]  ;;  %v8499_v32 = vcombine.high %v8239_v29, %v8243_v2  ;;  %v8498_v22 = vcombine.low %v8239_v29, %v8243_v2 }
 0x2e0   :  { %v8371_v48 = vld [vmem:[%s12762_s4 + $0xf38] sm:$0xff] }
 0x2e1   :  { %5005 = vmatpush2.bf16.msra.mxu0 %v8514_v35  ;;  %5058 = vmatpush2.bf16.msra.mxu1 %v8642_v37  ;;  %v8627_v60 = vcombine.high %v8367_v53, %v8371_v48  ;;  %v8231_v16 = vld [vmem:[%s12762_s4 + $0xad8] sm:$0xff]  ;;  %v8626_v19 = vcombine.low %v8367_v53, %v8371_v48 }
 0x2e2   :  { %5006 = vmatprep.subr.bf16.mxu0 %v8507_v50  ;;  %5059 = vmatprep.subr.bf16.mxu1 %v8635_v46  ;;  %v8235_v62 = vld [vmem:[%s12762_s4 + $0xaf8] sm:$0xff] }
 0x2e3   :  { %v8359_v58 = vld [vmem:[%s12762_s4 + $0xed8] sm:$0xff]  ;;  %v8491_v14 = vcombine.high %v8231_v16, %v8235_v62  ;;  %v8490_v29 = vcombine.low %v8231_v16, %v8235_v62 }
 0x2e4   :  { %v8363_v57 = vld [vmem:[%s12762_s4 + $0xef8] sm:$0xff] }
 0x2e5   :  { %5007 = vmatpush2.bf16.msra.mxu0 %v8506_v0  ;;  %5060 = vmatpush2.bf16.msra.mxu1 %v8634_v33  ;;  %v8619_v17 = vcombine.high %v8359_v58, %v8363_v57  ;;  %v8223_v35 = vld [vmem:[%s12762_s4 + $0xa98] sm:$0xff]  ;;  %v8618_v2 = vcombine.low %v8359_v58, %v8363_v57 }
 0x2e6   :  { %5008 = vmatprep.subr.bf16.mxu0 %v8499_v32  ;;  %5061 = vmatprep.subr.bf16.mxu1 %v8627_v60  ;;  %v8227_v37 = vld [vmem:[%s12762_s4 + $0xab8] sm:$0xff] }
 0x2e7   :  { %v8351_v50 = vld [vmem:[%s12762_s4 + $0xe98] sm:$0xff]  ;;  %v8483_v53 = vcombine.high %v8223_v35, %v8227_v37  ;;  %v8482_v16 = vcombine.low %v8223_v35, %v8227_v37 }
 0x2e8   :  { %v8355_v46 = vld [vmem:[%s12762_s4 + $0xeb8] sm:$0xff] }
 0x2e9   :  { %5009 = vmatpush2.bf16.msra.mxu0 %v8498_v22  ;;  %5062 = vmatpush2.bf16.msra.mxu1 %v8626_v19  ;;  %v8611_v48 = vcombine.high %v8351_v50, %v8355_v46  ;;  %v8215_v0 = vld [vmem:[%s12762_s4 + $0xa58] sm:$0xff]  ;;  %v8610_v62 = vcombine.low %v8351_v50, %v8355_v46 }
 0x2ea   :  { %5010 = vmatprep.subr.bf16.mxu0 %v8491_v14  ;;  %5063 = vmatprep.subr.bf16.mxu1 %v8619_v17  ;;  %v8219_v33 = vld [vmem:[%s12762_s4 + $0xa78] sm:$0xff] }
 0x2eb   :  { %v8343_v32 = vld [vmem:[%s12762_s4 + $0xe58] sm:$0xff]  ;;  %v8475_v58 = vcombine.high %v8215_v0, %v8219_v33  ;;  %v8474_v35 = vcombine.low %v8215_v0, %v8219_v33 }
 0x2ec   :  { %v8347_v60 = vld [vmem:[%s12762_s4 + $0xe78] sm:$0xff] }
 0x2ed   :  { %5011 = vmatpush2.bf16.msra.mxu0 %v8490_v29  ;;  %5064 = vmatpush2.bf16.msra.mxu1 %v8618_v2  ;;  %v8603_v57 = vcombine.high %v8343_v32, %v8347_v60  ;;  %v8207_v22 = vld [vmem:[%s12762_s4 + $0xa18] sm:$0xff]  ;;  %v8602_v37 = vcombine.low %v8343_v32, %v8347_v60  ;;  %v8708_v29 = vld [vmem:[%s12762_s4 + $0x11c0] sm:$0xff] }
 0x2ee   :  { %5012 = vmatprep.subr.bf16.mxu0 %v8483_v53  ;;  %5065 = vmatprep.subr.bf16.mxu1 %v8611_v48  ;;  %v8211_v19 = vld [vmem:[%s12762_s4 + $0xa38] sm:$0xff]  ;;  %v8712_v2 = vld [vmem:[%s12762_s4 + $0x11e0] sm:$0xff] }
 0x2ef   :  { %v8335_v14 = vld [vmem:[%s12762_s4 + $0xe18] sm:$0xff]  ;;  %v8467_v50 = vcombine.high %v8207_v22, %v8211_v19  ;;  %v8836_v53 = vld [vmem:[%s12762_s4 + $0x15c0] sm:$0xff]  ;;  %v8466_v0 = vcombine.low %v8207_v22, %v8211_v19  ;;  %v8965_v32 = vcombine.high %v8708_v29, %v8712_v2 }
 0x2f0   :  { %v8339_v17 = vld [vmem:[%s12762_s4 + $0xe38] sm:$0xff]  ;;  %v8840_v48 = vld [vmem:[%s12762_s4 + $0x15e0] sm:$0xff] }
 0x2f1   :  { %5013 = vmatpush2.bf16.msra.mxu0 %v8482_v16  ;;  %5066 = vmatpush2.bf16.msra.mxu1 %v8610_v62  ;;  %v8595_v46 = vcombine.high %v8335_v14, %v8339_v17  ;;  %v8594_v33 = vcombine.low %v8335_v14, %v8339_v17  ;;  %v9093_v60 = vcombine.high %v8836_v53, %v8840_v48  ;;  %v8700_v16 = vld [vmem:[%s12762_s4 + $0x1180] sm:$0xff] }
 0x2f2   :  { %5014 = vmatprep.subr.bf16.mxu0 %v8475_v58  ;;  %5067 = vmatprep.subr.bf16.mxu1 %v8603_v57  ;;  %v8704_v62 = vld [vmem:[%s12762_s4 + $0x11a0] sm:$0xff]  ;;  %v8964_v14 = vcombine.low %v8708_v29, %v8712_v2 }
 0x2f3   :  { %v8828_v57 = vld [vmem:[%s12762_s4 + $0x1580] sm:$0xff] }
 0x2f4   :  { %v8832_v22 = vld [vmem:[%s12762_s4 + $0x15a0] sm:$0xff] }
 0x2f5   :  { %5015 = vmatpush2.bf16.msra.mxu0 %v8474_v35  ;;  %5068 = vmatpush2.bf16.msra.mxu1 %v8602_v37  ;;  %v9092_v35 = vcombine.low %v8836_v53, %v8840_v48  ;;  %v9085_v52 = vcombine.high %v8828_v57, %v8832_v22  ;;  %v8696_v29 = vld [vmem:[%s12762_s4 + $0x1160] sm:$0xff] }
 0x2f6   :  { %5016 = vmatprep.subr.bf16.mxu0 %v8467_v50  ;;  %5069 = vmatprep.subr.bf16.mxu1 %v8595_v46  ;;  %v8957_v50 = vcombine.high %v8700_v16, %v8704_v62  ;;  %v12808_v46 = vrot.slane %v10768_v24, 7  ;;  %v8820_v48 = vld [vmem:[%s12762_s4 + $0x1540] sm:$0xff] }
 0x2f9   :  { %5017 = vmatpush2.bf16.msra.mxu0 %v8466_v0  ;;  %5070 = vmatpush2.bf16.msra.mxu1 %v8594_v33  ;;  %v7165_v0 = vsel %vm963_vm0, 0.0, %v12808_v46  ;;  %v8692_v33 = vld [vmem:[%s12762_s4 + $0x1140] sm:$0xff]  ;;  %v9084_v46 = vcombine.low %v8828_v57, %v8832_v22 }
 0x2fa   :  { %v4702_v58 = vpop.f32.mrf.mxu0  ;;  %6629 = vmatprep.subr.bf16.mxu0 %v8965_v32  ;;  %6682 = vmatprep.subr.bf16.mxu1 %v9093_v60  ;;  %v8824_v32 = vld [vmem:[%s12762_s4 + $0x1560] sm:$0xff]  ;;  %v12810_v60 = vrot.slane %v10785_v55, 7  ;;  %v8949_v11 = vcombine.high %v8692_v33, %v8696_v29 }
 0x2fb   :  { %v9077_v8 = vcombine.high %v8820_v48, %v8824_v32  ;;  %v8684_v55 = vld [vmem:[%s12762_s4 + $0x1100] sm:$0xff] }
 0x2fc   :  { %v4755_v19 = vpop.f32.mrf.mxu1  ;;  %v4704_v37 = vpop.f32.mrf.mxu0  ;;  %5019 = vmatmul.mubr.bf16.vlgmr.msra.gmra.mxu0 %v10103_v41  ;;  %5072 = vmatmul.mubr.bf16.vlgmr.msra.gmra.mxu1 %v10105_v1  ;;  %v8812_v22 = vld [vmem:[%s12762_s4 + $0x1500] sm:$0xff] }
 0x2fd   :  { %v4756_v17 = vadd.f32 %v4755_v19, %v4702_v58  ;;  %5028 = vmatprep.mubr.bf16.mxu0 %v10168_v51  ;;  %v7166_v58 = vsel %vm963_vm0, 0.0, %v12810_v60  ;;  %5081 = vmatprep.mubr.bf16.mxu1 %v10196_v27 }
 0x2fe   :  { %v4757_v34 = vpop.f32.mrf.mxu1  ;;  %v4706_v53 = vpop.f32.mrf.mxu0  ;;  %6630 = vmatpush1.bf16.msra.mxu0 %v8964_v14  ;;  %6683 = vmatpush1.bf16.msra.mxu1 %v9092_v35  ;;  %v8688_v14 = vld [vmem:[%s12762_s4 + $0x1120] sm:$0xff] }
 0x2ff   :  { %v11705_v2 = vadd.f32 %v7165_v0, %v4756_v17  ;;  %v4758_v24 = vadd.f32 %v4757_v34, %v4704_v37  ;;  %v8956_v17 = vcombine.low %v8700_v16, %v8704_v62  ;;  %6631 = vmatprep.subr.bf16.mxu0 %v8957_v50  ;;  %6684 = vmatprep.subr.bf16.mxu1 %v9085_v52  ;;  %v8816_v52 = vld [vmem:[%s12762_s4 + $0x1520] sm:$0xff] }
 0x300   :  { %v4759_v19 = vpop.f32.mrf.mxu1  ;;  %v4708_v0 = vpop.f32.mrf.mxu0  ;;  %v8948_v50 = vcombine.low %v8692_v33, %v8696_v29  ;;  %v8941_v60 = vcombine.high %v8684_v55, %v8688_v14  ;;  %v8676_v33 = vld [vmem:[%s12762_s4 + $0x10c0] sm:$0xff] }
 0x301   :  { %12809 = vst [vmem:[#allocation9_spill] sm:$0xff] %v11705_v2  ;;  %v11719_v34 = vadd.f32 %v7166_v58, %v4758_v24  ;;  %v4760_v37 = vadd.f32 %v4759_v19, %v4706_v53  ;;  %v9076_v24 = vcombine.low %v8820_v48, %v8824_v32  ;;  %v12811_v58 = vrot.slane %v10821_v26, 7  ;;  %v8808_v48 = vld [vmem:[%s12762_s4 + $0x14e0] sm:$0xff] }
 0x302   :  { %v4761_v2 = vpop.f32.mrf.mxu1  ;;  %v4712_v57 = vpop.f32.mrf.mxu0  ;;  %6632 = vmatpush1.bf16.msra.mxu0 %v8956_v17  ;;  %6685 = vmatpush1.bf16.msra.mxu1 %v9084_v46  ;;  %v9069_v17 = vcombine.high %v8812_v22, %v8816_v52  ;;  %v12812_v32 = vrot.slane %v10829_v38, 7  ;;  %v8668_v38 = vld [vmem:[%s12762_s4 + $0x1080] sm:$0xff] }
 0x303   :  { %v11728_v16 = vadd.f32 %v10811_v47, %v4760_v37  ;;  %v4762_v62 = vadd.f32 %v4761_v2, %v4708_v0  ;;  %6633 = vmatprep.subr.bf16.mxu0 %v8949_v11  ;;  %v7173_v19 = vsel %vm963_vm0, 0.0, %v12811_v58  ;;  %6686 = vmatprep.subr.bf16.mxu1 %v9077_v8  ;;  %v8804_v8 = vld [vmem:[%s12762_s4 + $0x14c0] sm:$0xff] }
 0x304   :  { %v4765_v35 = vpop.f32.mrf.mxu1  ;;  %v4714_v2 = vpop.f32.mrf.mxu0  ;;  %5029 = vmatmul.mubr.bf16.gmra.mxu0 %v10181_v59  ;;  %5082 = vmatmul.mubr.bf16.gmra.mxu1 %v10205_v20  ;;  %v7174_v46 = vsel %vm963_vm0, 0.0, %v12812_v32  ;;  %v8664_v32 = vld [vmem:[%s12762_s4 + $0x1060] sm:$0xff] }
 0x305   :  { %v11737_v53 = vadd.f32 %v10827_v23, %v4762_v62  ;;  %v4766_v47 = vadd.f32 %v4765_v35, %v4712_v57  ;;  %v8680_v23 = vld [vmem:[%s12762_s4 + $0x10e0] sm:$0xff]  ;;  %6661 = vmatprep.mubr.bf16.mxu0 %v10115_v10  ;;  %6714 = vmatprep.mubr.bf16.mxu1 %v10117_v5  ;;  %v8940_v62 = vcombine.low %v8684_v55, %v8688_v14 }
 0x306   :  { %v4767_v37 = vpop.f32.mrf.mxu1  ;;  %v4716_v29 = vpop.f32.mrf.mxu0  ;;  %6634 = vmatpush1.bf16.msra.mxu0 %v8948_v50  ;;  %v9068_v57 = vcombine.low %v8812_v22, %v8816_v52  ;;  %6687 = vmatpush1.bf16.msra.mxu1 %v9076_v24  ;;  %v8933_v58 = vcombine.high %v8676_v33, %v8680_v23  ;;  %v8672_v50 = vld [vmem:[%s12762_s4 + $0x10a0] sm:$0xff]  ;;  %v8932_v24 = vcombine.low %v8676_v33, %v8680_v23 }
 0x307   :  { %v11749_v11 = vadd.f32 %v7173_v19, %v4766_v47  ;;  %v4768_v26 = vadd.f32 %v4767_v37, %v4714_v2  ;;  %6635 = vmatprep.subr.bf16.mxu0 %v8941_v60  ;;  %6688 = vmatprep.subr.bf16.mxu1 %v9069_v17  ;;  %v9061_v37 = vcombine.high %v8804_v8, %v8808_v48  ;;  %v8796_v22 = vld [vmem:[%s12762_s4 + $0x1480] sm:$0xff] }
 0x308   :  { %v4769_v0 = vpop.f32.mrf.mxu1  ;;  %v4718_v2 = vpop.f32.mrf.mxu0  ;;  %v8800_v52 = vld [vmem:[%s12762_s4 + $0x14a0] sm:$0xff]  ;;  %v9060_v17 = vcombine.low %v8804_v8, %v8808_v48  ;;  %v8924_v23 = vcombine.low %v8668_v38, %v8672_v50 }
 0x309   :  { %v11763_v35 = vadd.f32 %v7174_v46, %v4768_v26  ;;  %v4770_v47 = vadd.f32 %v4769_v0, %v4716_v29  ;;  %v8925_v26 = vcombine.high %v8668_v38, %v8672_v50  ;;  %v8660_v29 = vld [vmem:[%s12762_s4 + $0x1040] sm:$0xff]  ;;  %v9052_v8 = vcombine.low %v8796_v22, %v8800_v52 }
 0x30a   :  { %v4771_v19 = vpop.f32.mrf.mxu1  ;;  %6636 = vmatpush1.bf16.msra.mxu0 %v8940_v62  ;;  %6689 = vmatpush1.bf16.msra.mxu1 %v9068_v57  ;;  %v8788_v33 = vld [vmem:[%s12762_s4 + $0x1440] sm:$0xff]  ;;  %v8917_v48 = vcombine.high %v8660_v29, %v8664_v32 }
 0x30b   :  { %v11772_v55 = vadd.f32 %v10860_v42, %v4770_v47  ;;  %v4772_v14 = vadd.f32 %v4771_v19, %v4718_v2  ;;  %6637 = vmatprep.subr.bf16.mxu0 %v8933_v58  ;;  %6690 = vmatprep.subr.bf16.mxu1 %v9061_v37  ;;  %v9053_v42 = vcombine.high %v8796_v22, %v8800_v52  ;;  %v8652_v0 = vld [vmem:[%s12762_s4 + $0x1000] sm:$0xff] }
 0x30c   :  { %v8656_v62 = vld [vmem:[%s12762_s4 + $0x1020] sm:$0xff]  ;;  %v8916_v2 = vcombine.low %v8660_v29, %v8664_v32 }
 0x30d   :  { %v11781_v60 = vadd.f32 %v10871_v3, %v4772_v14  ;;  %v8792_v3 = vld [vmem:[%s12762_s4 + $0x1460] sm:$0xff]  ;;  %v8909_v19 = vcombine.high %v8652_v0, %v8656_v62  ;;  %v8908_v52 = vcombine.low %v8652_v0, %v8656_v62 }
 0x30e   :  { %6638 = vmatpush1.bf16.msra.mxu0 %v8932_v24  ;;  %6691 = vmatpush1.bf16.msra.mxu1 %v9060_v17  ;;  %v9045_v46 = vcombine.high %v8788_v33, %v8792_v3  ;;  %v8780_v57 = vld [vmem:[%s12762_s4 + $0x1400] sm:$0xff]  ;;  %v9044_v58 = vcombine.low %v8788_v33, %v8792_v3 }
 0x30f   :  { %6639 = vmatprep.subr.bf16.mxu0 %v8925_v26  ;;  %6692 = vmatprep.subr.bf16.mxu1 %v9053_v42  ;;  %v8784_v47 = vld [vmem:[%s12762_s4 + $0x1420] sm:$0xff] }
 0x310   :  { %v9037_v37 = vcombine.high %v8780_v57, %v8784_v47  ;;  %v8772_v38 = vld [vmem:[%s12762_s4 + $0x13c0] sm:$0xff]  ;;  %v9036_v24 = vcombine.low %v8780_v57, %v8784_v47 }
 0x311   :  { %v8776_v50 = vld [vmem:[%s12762_s4 + $0x13e0] sm:$0xff] }
 0x312   :  { %6640 = vmatpush1.bf16.msra.mxu0 %v8924_v23  ;;  %6693 = vmatpush1.bf16.msra.mxu1 %v9052_v8  ;;  %v8900_v14 = vld [vmem:[%s12762_s4 + $0x17c0] sm:$0xff]  ;;  %v9029_v17 = vcombine.high %v8772_v38, %v8776_v50  ;;  %v9028_v3 = vcombine.low %v8772_v38, %v8776_v50 }
 0x313   :  { %6641 = vmatprep.subr.bf16.mxu0 %v8917_v48  ;;  %6694 = vmatprep.subr.bf16.mxu1 %v9045_v46  ;;  %v8904_v22 = vld [vmem:[%s12762_s4 + $0x17e0] sm:$0xff] }
 0x314   :  { %v9157_v26 = vcombine.high %v8900_v14, %v8904_v22  ;;  %v8764_v42 = vld [vmem:[%s12762_s4 + $0x1380] sm:$0xff]  ;;  %v9156_v23 = vcombine.low %v8900_v14, %v8904_v22 }
 0x315   :  { %v8768_v29 = vld [vmem:[%s12762_s4 + $0x13a0] sm:$0xff] }
 0x316   :  { %6642 = vmatpush1.bf16.msra.mxu0 %v8916_v2  ;;  %6695 = vmatpush1.bf16.msra.mxu1 %v9044_v58  ;;  %v8892_v32 = vld [vmem:[%s12762_s4 + $0x1780] sm:$0xff]  ;;  %v9021_v8 = vcombine.high %v8764_v42, %v8768_v29  ;;  %v9020_v47 = vcombine.low %v8764_v42, %v8768_v29 }
 0x317   :  { %6643 = vmatprep.subr.bf16.mxu0 %v8909_v19  ;;  %6696 = vmatprep.subr.bf16.mxu1 %v9037_v37  ;;  %v8896_v33 = vld [vmem:[%s12762_s4 + $0x17a0] sm:$0xff] }
 0x318   :  { %v9149_v48 = vcombine.high %v8892_v32, %v8896_v33  ;;  %v8756_v46 = vld [vmem:[%s12762_s4 + $0x1340] sm:$0xff]  ;;  %v9148_v2 = vcombine.low %v8892_v32, %v8896_v33 }
 0x319   :  { %v8760_v0 = vld [vmem:[%s12762_s4 + $0x1360] sm:$0xff] }
 0x31a   :  { %6644 = vmatpush1.bf16.msra.mxu0 %v8908_v52  ;;  %6697 = vmatpush1.bf16.msra.mxu1 %v9036_v24  ;;  %v8884_v62 = vld [vmem:[%s12762_s4 + $0x1740] sm:$0xff]  ;;  %v9013_v58 = vcombine.high %v8756_v46, %v8760_v0  ;;  %v9012_v22 = vcombine.low %v8756_v46, %v8760_v0 }
 0x31b   :  { %6645 = vmatprep.subr.bf16.mxu0 %v9029_v17  ;;  %6698 = vmatprep.subr.bf16.mxu1 %v9157_v26  ;;  %v8888_v57 = vld [vmem:[%s12762_s4 + $0x1760] sm:$0xff] }
 0x31c   :  { %v9141_v19 = vcombine.high %v8884_v62, %v8888_v57  ;;  %v8748_v37 = vld [vmem:[%s12762_s4 + $0x1300] sm:$0xff]  ;;  %v9140_v52 = vcombine.low %v8884_v62, %v8888_v57 }
 0x31d   :  { %v8752_v38 = vld [vmem:[%s12762_s4 + $0x1320] sm:$0xff] }
 0x31e   :  { %6646 = vmatpush2.bf16.msra.mxu0 %v9028_v3  ;;  %6699 = vmatpush2.bf16.msra.mxu1 %v9156_v23  ;;  %v8876_v50 = vld [vmem:[%s12762_s4 + $0x1700] sm:$0xff]  ;;  %v9005_v24 = vcombine.high %v8748_v37, %v8752_v38  ;;  %v9004_v33 = vcombine.low %v8748_v37, %v8752_v38 }
 0x31f   :  { %6647 = vmatprep.subr.bf16.mxu0 %v9021_v8  ;;  %6700 = vmatprep.subr.bf16.mxu1 %v9149_v48  ;;  %v8880_v14 = vld [vmem:[%s12762_s4 + $0x1720] sm:$0xff] }
 0x320   :  { %v9133_v17 = vcombine.high %v8876_v50, %v8880_v14  ;;  %v8740_v26 = vld [vmem:[%s12762_s4 + $0x12c0] sm:$0xff]  ;;  %v9132_v3 = vcombine.low %v8876_v50, %v8880_v14 }
 0x321   :  { %v8744_v42 = vld [vmem:[%s12762_s4 + $0x12e0] sm:$0xff] }
 0x322   :  { %6648 = vmatpush2.bf16.msra.mxu0 %v9020_v47  ;;  %6701 = vmatpush2.bf16.msra.mxu1 %v9148_v2  ;;  %v8868_v29 = vld [vmem:[%s12762_s4 + $0x16c0] sm:$0xff]  ;;  %v8997_v23 = vcombine.high %v8740_v26, %v8744_v42  ;;  %v8996_v57 = vcombine.low %v8740_v26, %v8744_v42 }
 0x323   :  { %6649 = vmatprep.subr.bf16.mxu0 %v9013_v58  ;;  %6702 = vmatprep.subr.bf16.mxu1 %v9141_v19  ;;  %v8872_v32 = vld [vmem:[%s12762_s4 + $0x16e0] sm:$0xff] }
 0x324   :  { %v9125_v8 = vcombine.high %v8868_v29, %v8872_v32  ;;  %v8732_v48 = vld [vmem:[%s12762_s4 + $0x1280] sm:$0xff]  ;;  %v9124_v47 = vcombine.low %v8868_v29, %v8872_v32 }
 0x325   :  { %v8736_v46 = vld [vmem:[%s12762_s4 + $0x12a0] sm:$0xff] }
 0x326   :  { %6650 = vmatpush2.bf16.msra.mxu0 %v9012_v22  ;;  %6703 = vmatpush2.bf16.msra.mxu1 %v9140_v52  ;;  %v8860_v0 = vld [vmem:[%s12762_s4 + $0x1680] sm:$0xff]  ;;  %v8989_v2 = vcombine.high %v8732_v48, %v8736_v46  ;;  %v8988_v14 = vcombine.low %v8732_v48, %v8736_v46  ;;  %v8713_v48 = vld [vmem:[%s12762_s4 + $0x11e8] sm:$0xff] }
 0x327   :  { %6651 = vmatprep.subr.bf16.mxu0 %v9005_v24  ;;  %6704 = vmatprep.subr.bf16.mxu1 %v9133_v17  ;;  %v8864_v62 = vld [vmem:[%s12762_s4 + $0x16a0] sm:$0xff]  ;;  %v8837_v46 = vld [vmem:[%s12762_s4 + $0x15c8] sm:$0xff] }
 0x328   :  { %v9117_v58 = vcombine.high %v8860_v0, %v8864_v62  ;;  %v8724_v19 = vld [vmem:[%s12762_s4 + $0x1240] sm:$0xff]  ;;  %v9116_v22 = vcombine.low %v8860_v0, %v8864_v62  ;;  %v8841_v0 = vld [vmem:[%s12762_s4 + $0x15e8] sm:$0xff] }
 0x329   :  { %v8728_v37 = vld [vmem:[%s12762_s4 + $0x1260] sm:$0xff] }
 0x32a   :  { %6652 = vmatpush2.bf16.msra.mxu0 %v9004_v33  ;;  %6705 = vmatpush2.bf16.msra.mxu1 %v9132_v3  ;;  %v8852_v38 = vld [vmem:[%s12762_s4 + $0x1640] sm:$0xff]  ;;  %v8981_v52 = vcombine.high %v8724_v19, %v8728_v37  ;;  %v8980_v32 = vcombine.low %v8724_v19, %v8728_v37  ;;  %v8705_v19 = vld [vmem:[%s12762_s4 + $0x11a8] sm:$0xff] }
 0x32b   :  { %6653 = vmatprep.subr.bf16.mxu0 %v8997_v23  ;;  %6706 = vmatprep.subr.bf16.mxu1 %v9125_v8  ;;  %v8856_v50 = vld [vmem:[%s12762_s4 + $0x1660] sm:$0xff]  ;;  %v8709_v8 = vld [vmem:[%s12762_s4 + $0x11c8] sm:$0xff] }
 0x32c   :  { %v9109_v24 = vcombine.high %v8852_v38, %v8856_v50  ;;  %v8716_v17 = vld [vmem:[%s12762_s4 + $0x1200] sm:$0xff]  ;;  %v9108_v33 = vcombine.low %v8852_v38, %v8856_v50  ;;  %v8829_v38 = vld [vmem:[%s12762_s4 + $0x1588] sm:$0xff] }
 0x32d   :  { %v8720_v26 = vld [vmem:[%s12762_s4 + $0x1220] sm:$0xff]  ;;  %v8833_v50 = vld [vmem:[%s12762_s4 + $0x15a8] sm:$0xff] }
 0x32e   :  { %6654 = vmatpush2.bf16.msra.mxu0 %v8996_v57  ;;  %6707 = vmatpush2.bf16.msra.mxu1 %v9124_v47  ;;  %v8844_v42 = vld [vmem:[%s12762_s4 + $0x1600] sm:$0xff]  ;;  %v8973_v3 = vcombine.high %v8716_v17, %v8720_v26  ;;  %v8972_v62 = vcombine.low %v8716_v17, %v8720_v26  ;;  %v8967_v47 = vcombine.high %v8709_v8, %v8713_v48 }
 0x32f   :  { %6655 = vmatprep.subr.bf16.mxu0 %v8989_v2  ;;  %6708 = vmatprep.subr.bf16.mxu1 %v9117_v58  ;;  %v8848_v29 = vld [vmem:[%s12762_s4 + $0x1620] sm:$0xff]  ;;  %v9095_v2 = vcombine.high %v8837_v46, %v8841_v0  ;;  %v8701_v58 = vld [vmem:[%s12762_s4 + $0x1188] sm:$0xff] }
 0x330   :  { %v9101_v23 = vcombine.high %v8844_v42, %v8848_v29  ;;  %v9100_v57 = vcombine.low %v8844_v42, %v8848_v29  ;;  %v8959_v26 = vcombine.high %v8701_v58, %v8705_v19  ;;  %v12813_v42 = vrot.slane %v10999_v44, 7 }
 0x332   :  { %6656 = vmatpush2.bf16.msra.mxu0 %v8988_v14  ;;  %6709 = vmatpush2.bf16.msra.mxu1 %v9116_v22  ;;  %v8966_v22 = vcombine.low %v8709_v8, %v8713_v48  ;;  %v7167_v29 = vsel %vm963_vm0, 0.0, %v12813_v42 }
 0x333   :  { %6657 = vmatprep.subr.bf16.mxu0 %v8981_v52  ;;  %6710 = vmatprep.subr.bf16.mxu1 %v9109_v24  ;;  %v9094_v24 = vcombine.low %v8837_v46, %v8841_v0  ;;  %v8821_v46 = vld [vmem:[%s12762_s4 + $0x1548] sm:$0xff] }
 0x334   :  { %v8825_v0 = vld [vmem:[%s12762_s4 + $0x1568] sm:$0xff] }
 0x336   :  { %6658 = vmatpush2.bf16.msra.mxu0 %v8980_v32  ;;  %6711 = vmatpush2.bf16.msra.mxu1 %v9108_v33  ;;  %v9087_v33 = vcombine.high %v8829_v38, %v8833_v50 }
 0x337   :  { %6659 = vmatprep.subr.bf16.mxu0 %v8973_v3  ;;  %6712 = vmatprep.subr.bf16.mxu1 %v9101_v23  ;;  %v8693_v3 = vld [vmem:[%s12762_s4 + $0x1148] sm:$0xff] }
 0x338   :  { %v8697_v23 = vld [vmem:[%s12762_s4 + $0x1168] sm:$0xff] }
 0x339   :  { %v8951_v42 = vcombine.high %v8693_v3, %v8697_v23 }
 0x33a   :  { %6660 = vmatpush2.bf16.msra.mxu0 %v8972_v62  ;;  %v4808_v37 = vpop.f32.mrf.mxu0  ;;  %6713 = vmatpush2.bf16.msra.mxu1 %v9100_v57  ;;  %v12814_v62 = vrot.slane %v11010_v49, 7  ;;  %v8685_v49 = vld [vmem:[%s12762_s4 + $0x1108] sm:$0xff] }
 0x33b   :  { %6735 = vmatprep.subr.bf16.mxu0 %v8967_v47  ;;  %6788 = vmatprep.subr.bf16.mxu1 %v9095_v2  ;;  %v8958_v2 = vcombine.low %v8701_v58, %v8705_v19 }
 0x33c   :  { %v4861_v14 = vpop.f32.mrf.mxu1  ;;  %v4810_v17 = vpop.f32.mrf.mxu0  ;;  %v7168_v57 = vsel %vm963_vm0, 0.0, %v12814_v62 }
 0x33d   :  { %v4862_v52 = vadd.f32 %v4861_v14, %v4808_v37  ;;  %6662 = vmatmul.mubr.bf16.vlgmr.msra.gmra.mxu0 %v10103_v41  ;;  %6715 = vmatmul.mubr.bf16.vlgmr.msra.gmra.mxu1 %v10105_v1  ;;  %v9086_v37 = vcombine.low %v8829_v38, %v8833_v50  ;;  %v8813_v50 = vld [vmem:[%s12762_s4 + $0x1508] sm:$0xff] }
 0x33e   :  { %v4863_v32 = vpop.f32.mrf.mxu1  ;;  %6671 = vmatprep.mubr.bf16.mxu0 %v10168_v51  ;;  %v4812_v48 = vpop.f32.mrf.mxu0  ;;  %6724 = vmatprep.mubr.bf16.mxu1 %v10196_v27 }
 0x33f   :  { %v11937_v8 = vadd.f32 %v7167_v29, %v4862_v52  ;;  %v4864_v44 = vadd.f32 %v4863_v32, %v4810_v17  ;;  %6736 = vmatpush1.bf16.msra.mxu0 %v8966_v22  ;;  %6789 = vmatpush1.bf16.msra.mxu1 %v9094_v24  ;;  %v9079_v32 = vcombine.high %v8821_v46, %v8825_v0  ;;  %v8689_v22 = vld [vmem:[%s12762_s4 + $0x1128] sm:$0xff] }
 0x340   :  { %v4865_v47 = vpop.f32.mrf.mxu1  ;;  %6737 = vmatprep.subr.bf16.mxu0 %v8959_v26  ;;  %v4814_v17 = vpop.f32.mrf.mxu0  ;;  %6790 = vmatprep.subr.bf16.mxu1 %v9087_v33  ;;  %v8817_v24 = vld [vmem:[%s12762_s4 + $0x1528] sm:$0xff]  ;;  %v8950_v33 = vcombine.low %v8693_v3, %v8697_v23 }
 0x341   :  { %v11951_v14 = vadd.f32 %v7168_v57, %v4864_v44  ;;  %v4866_v52 = vadd.f32 %v4865_v47, %v4812_v48  ;;  %v9078_v44 = vcombine.low %v8821_v46, %v8825_v0  ;;  %v8943_v57 = vcombine.high %v8685_v49, %v8689_v22  ;;  %v8677_v3 = vld [vmem:[%s12762_s4 + $0x10c8] sm:$0xff] }
 0x342   :  { %v4867_v29 = vpop.f32.mrf.mxu1  ;;  %v4818_v38 = vpop.f32.mrf.mxu0  ;;  %v12815_v47 = vrot.slane %v11033_v31, 7  ;;  %v8805_v0 = vld [vmem:[%s12762_s4 + $0x14c8] sm:$0xff] }
 0x343   :  { %v11960_v58 = vadd.f32 %v11045_v45, %v4866_v52  ;;  %v4868_v19 = vadd.f32 %v4867_v29, %v4814_v17  ;;  %6738 = vmatpush1.bf16.msra.mxu0 %v8958_v2  ;;  %6791 = vmatpush1.bf16.msra.mxu1 %v9086_v37  ;;  %v9071_v2 = vcombine.high %v8813_v50, %v8817_v24  ;;  %v8809_v37 = vld [vmem:[%s12762_s4 + $0x14e8] sm:$0xff] }
 0x344   :  { %v4871_v26 = vpop.f32.mrf.mxu1  ;;  %6739 = vmatprep.subr.bf16.mxu0 %v8951_v42  ;;  %v4820_v62 = vpop.f32.mrf.mxu0  ;;  %v7175_v52 = vsel %vm963_vm0, 0.0, %v12815_v47  ;;  %6792 = vmatprep.subr.bf16.mxu1 %v9079_v32  ;;  %v12816_v42 = vrot.slane %v11049_v28, 7  ;;  %v8669_v28 = vld [vmem:[%s12762_s4 + $0x1088] sm:$0xff] }
 0x345   :  { %v11969_v48 = vadd.f32 %v11060_v25, %v4868_v19  ;;  %v4872_v45 = vadd.f32 %v4871_v26, %v4818_v38  ;;  %6672 = vmatmul.mubr.bf16.gmra.mxu0 %v10181_v59  ;;  %v8681_v25 = vld [vmem:[%s12762_s4 + $0x10e8] sm:$0xff]  ;;  %6725 = vmatmul.mubr.bf16.gmra.mxu1 %v10205_v20  ;;  %v8942_v19 = vcombine.low %v8685_v49, %v8689_v22 }
 0x346   :  { %v4873_v17 = vpop.f32.mrf.mxu1  ;;  %6767 = vmatprep.mubr.bf16.mxu0 %v10115_v10  ;;  %v4822_v46 = vpop.f32.mrf.mxu0  ;;  %v7176_v29 = vsel %vm963_vm0, 0.0, %v12816_v42  ;;  %6820 = vmatprep.mubr.bf16.mxu1 %v10117_v5  ;;  %v9070_v38 = vcombine.low %v8813_v50, %v8817_v24  ;;  %v8935_v47 = vcombine.high %v8677_v3, %v8681_v25  ;;  %v8797_v50 = vld [vmem:[%s12762_s4 + $0x1488] sm:$0xff] }
 0x347   :  { %v11981_v23 = vadd.f32 %v7175_v52, %v4872_v45  ;;  %v4874_v31 = vadd.f32 %v4873_v17, %v4820_v62  ;;  %6740 = vmatpush1.bf16.msra.mxu0 %v8950_v33  ;;  %6793 = vmatpush1.bf16.msra.mxu1 %v9078_v44  ;;  %v9063_v17 = vcombine.high %v8805_v0, %v8809_v37  ;;  %v8673_v33 = vld [vmem:[%s12762_s4 + $0x10a8] sm:$0xff] }
 0x348   :  { %v4875_v32 = vpop.f32.mrf.mxu1  ;;  %6741 = vmatprep.subr.bf16.mxu0 %v8943_v57  ;;  %v4824_v62 = vpop.f32.mrf.mxu0  ;;  %6794 = vmatprep.subr.bf16.mxu1 %v9071_v2  ;;  %v8801_v24 = vld [vmem:[%s12762_s4 + $0x14a8] sm:$0xff]  ;;  %v8934_v44 = vcombine.low %v8677_v3, %v8681_v25  ;;  %v9062_v2 = vcombine.low %v8805_v0, %v8809_v37  ;;  %v8926_v25 = vcombine.low %v8669_v28, %v8673_v33 }
 0x349   :  { %v11995_v26 = vadd.f32 %v7176_v29, %v4874_v31  ;;  %v4876_v45 = vadd.f32 %v4875_v32, %v4822_v46  ;;  %v8927_v31 = vcombine.high %v8669_v28, %v8673_v33  ;;  %v8661_v46 = vld [vmem:[%s12762_s4 + $0x1048] sm:$0xff]  ;;  %v9054_v0 = vcombine.low %v8797_v50, %v8801_v24 }
 0x34a   :  { %v4877_v52 = vpop.f32.mrf.mxu1  ;;  %v8665_v42 = vld [vmem:[%s12762_s4 + $0x1068] sm:$0xff] }
 0x34b   :  { %v12004_v49 = vadd.f32 %v11086_v18, %v4876_v45  ;;  %v4878_v22 = vadd.f32 %v4877_v52, %v4824_v62  ;;  %6742 = vmatpush1.bf16.msra.mxu0 %v8942_v19  ;;  %6795 = vmatpush1.bf16.msra.mxu1 %v9070_v38  ;;  %v9055_v18 = vcombine.high %v8797_v50, %v8801_v24  ;;  %v8789_v3 = vld [vmem:[%s12762_s4 + $0x1448] sm:$0xff] }
 0x34c   :  { %6743 = vmatprep.subr.bf16.mxu0 %v8935_v47  ;;  %6796 = vmatprep.subr.bf16.mxu1 %v9063_v17  ;;  %v8919_v37 = vcombine.high %v8661_v46, %v8665_v42  ;;  %v8653_v32 = vld [vmem:[%s12762_s4 + $0x1008] sm:$0xff]  ;;  %v8918_v62 = vcombine.low %v8661_v46, %v8665_v42 }
 0x34d   :  { %v12013_v57 = vadd.f32 %v11097_v12, %v4878_v22  ;;  %v8793_v12 = vld [vmem:[%s12762_s4 + $0x1468] sm:$0xff] }
 0x34e   :  { %v9047_v29 = vcombine.high %v8789_v3, %v8793_v12  ;;  %v8657_v19 = vld [vmem:[%s12762_s4 + $0x1028] sm:$0xff]  ;;  %v9046_v47 = vcombine.low %v8789_v3, %v8793_v12 }
 0x34f   :  { %6744 = vmatpush1.bf16.msra.mxu0 %v8934_v44  ;;  %6797 = vmatpush1.bf16.msra.mxu1 %v9062_v2  ;;  %v8781_v38 = vld [vmem:[%s12762_s4 + $0x1408] sm:$0xff]  ;;  %v8911_v52 = vcombine.high %v8653_v32, %v8657_v19  ;;  %v8910_v24 = vcombine.low %v8653_v32, %v8657_v19 }
 0x350   :  { %6745 = vmatprep.subr.bf16.mxu0 %v8927_v31  ;;  %6798 = vmatprep.subr.bf16.mxu1 %v9055_v18  ;;  %v8785_v45 = vld [vmem:[%s12762_s4 + $0x1428] sm:$0xff] }
 0x351   :  { %v9039_v17 = vcombine.high %v8781_v38, %v8785_v45  ;;  %v8773_v28 = vld [vmem:[%s12762_s4 + $0x13c8] sm:$0xff]  ;;  %v9038_v44 = vcombine.low %v8781_v38, %v8785_v45 }
 0x352   :  { %v8777_v33 = vld [vmem:[%s12762_s4 + $0x13e8] sm:$0xff] }
 0x353   :  { %6746 = vmatpush1.bf16.msra.mxu0 %v8926_v25  ;;  %6799 = vmatpush1.bf16.msra.mxu1 %v9054_v0  ;;  %v8901_v22 = vld [vmem:[%s12762_s4 + $0x17c8] sm:$0xff]  ;;  %v9031_v2 = vcombine.high %v8773_v28, %v8777_v33  ;;  %v9030_v12 = vcombine.low %v8773_v28, %v8777_v33 }
 0x354   :  { %6747 = vmatprep.subr.bf16.mxu0 %v8919_v37  ;;  %6800 = vmatprep.subr.bf16.mxu1 %v9047_v29  ;;  %v8905_v50 = vld [vmem:[%s12762_s4 + $0x17e8] sm:$0xff] }
 0x355   :  { %v9159_v31 = vcombine.high %v8901_v22, %v8905_v50  ;;  %v8765_v18 = vld [vmem:[%s12762_s4 + $0x1388] sm:$0xff]  ;;  %v9158_v25 = vcombine.low %v8901_v22, %v8905_v50 }
 0x356   :  { %v8769_v46 = vld [vmem:[%s12762_s4 + $0x13a8] sm:$0xff] }
 0x357   :  { %6748 = vmatpush1.bf16.msra.mxu0 %v8918_v62  ;;  %6801 = vmatpush1.bf16.msra.mxu1 %v9046_v47  ;;  %v8893_v42 = vld [vmem:[%s12762_s4 + $0x1788] sm:$0xff]  ;;  %v9023_v0 = vcombine.high %v8765_v18, %v8769_v46  ;;  %v9022_v45 = vcombine.low %v8765_v18, %v8769_v46 }
 0x358   :  { %6749 = vmatprep.subr.bf16.mxu0 %v8911_v52  ;;  %6802 = vmatprep.subr.bf16.mxu1 %v9039_v17  ;;  %v8897_v3 = vld [vmem:[%s12762_s4 + $0x17a8] sm:$0xff] }
 0x359   :  { %v9151_v37 = vcombine.high %v8893_v42, %v8897_v3  ;;  %v8757_v29 = vld [vmem:[%s12762_s4 + $0x1348] sm:$0xff]  ;;  %v9150_v62 = vcombine.low %v8893_v42, %v8897_v3 }
 0x35a   :  { %v8761_v32 = vld [vmem:[%s12762_s4 + $0x1368] sm:$0xff] }
 0x35b   :  { %6750 = vmatpush1.bf16.msra.mxu0 %v8910_v24  ;;  %6803 = vmatpush1.bf16.msra.mxu1 %v9038_v44  ;;  %v8885_v19 = vld [vmem:[%s12762_s4 + $0x1748] sm:$0xff]  ;;  %v9015_v47 = vcombine.high %v8757_v29, %v8761_v32  ;;  %v9014_v50 = vcombine.low %v8757_v29, %v8761_v32 }
 0x35c   :  { %6751 = vmatprep.subr.bf16.mxu0 %v9031_v2  ;;  %6804 = vmatprep.subr.bf16.mxu1 %v9159_v31  ;;  %v8889_v38 = vld [vmem:[%s12762_s4 + $0x1768] sm:$0xff] }
 0x35d   :  { %v9143_v52 = vcombine.high %v8885_v19, %v8889_v38  ;;  %v8749_v17 = vld [vmem:[%s12762_s4 + $0x1308] sm:$0xff]  ;;  %v9142_v24 = vcombine.low %v8885_v19, %v8889_v38 }
 0x35e   :  { %v8753_v28 = vld [vmem:[%s12762_s4 + $0x1328] sm:$0xff] }
 0x35f   :  { %6752 = vmatpush2.bf16.msra.mxu0 %v9030_v12  ;;  %6805 = vmatpush2.bf16.msra.mxu1 %v9158_v25  ;;  %v8877_v33 = vld [vmem:[%s12762_s4 + $0x1708] sm:$0xff]  ;;  %v9007_v44 = vcombine.high %v8749_v17, %v8753_v28  ;;  %v9006_v3 = vcombine.low %v8749_v17, %v8753_v28 }
 0x360   :  { %6753 = vmatprep.subr.bf16.mxu0 %v9023_v0  ;;  %6806 = vmatprep.subr.bf16.mxu1 %v9151_v37  ;;  %v8881_v22 = vld [vmem:[%s12762_s4 + $0x1728] sm:$0xff] }
 0x361   :  { %v9135_v2 = vcombine.high %v8877_v33, %v8881_v22  ;;  %v8741_v31 = vld [vmem:[%s12762_s4 + $0x12c8] sm:$0xff]  ;;  %v9134_v12 = vcombine.low %v8877_v33, %v8881_v22 }
 0x362   :  { %v8745_v18 = vld [vmem:[%s12762_s4 + $0x12e8] sm:$0xff] }
 0x363   :  { %6754 = vmatpush2.bf16.msra.mxu0 %v9022_v45  ;;  %6807 = vmatpush2.bf16.msra.mxu1 %v9150_v62  ;;  %v8869_v46 = vld [vmem:[%s12762_s4 + $0x16c8] sm:$0xff]  ;;  %v8999_v25 = vcombine.high %v8741_v31, %v8745_v18  ;;  %v8998_v38 = vcombine.low %v8741_v31, %v8745_v18 }
 0x364   :  { %6755 = vmatprep.subr.bf16.mxu0 %v9015_v47  ;;  %6808 = vmatprep.subr.bf16.mxu1 %v9143_v52  ;;  %v8873_v42 = vld [vmem:[%s12762_s4 + $0x16e8] sm:$0xff] }
 0x365   :  { %v9127_v0 = vcombine.high %v8869_v46, %v8873_v42  ;;  %v8733_v37 = vld [vmem:[%s12762_s4 + $0x1288] sm:$0xff]  ;;  %v9126_v45 = vcombine.low %v8869_v46, %v8873_v42 }
 0x366   :  { %v8737_v29 = vld [vmem:[%s12762_s4 + $0x12a8] sm:$0xff] }
 0x367   :  { %6756 = vmatpush2.bf16.msra.mxu0 %v9014_v50  ;;  %6809 = vmatpush2.bf16.msra.mxu1 %v9142_v24  ;;  %v8861_v32 = vld [vmem:[%s12762_s4 + $0x1688] sm:$0xff]  ;;  %v8991_v62 = vcombine.high %v8733_v37, %v8737_v29  ;;  %v8990_v22 = vcombine.low %v8733_v37, %v8737_v29  ;;  %v8714_v37 = vld [vmem:[%s12762_s4 + $0x11f0] sm:$0xff] }
 0x368   :  { %6757 = vmatprep.subr.bf16.mxu0 %v9007_v44  ;;  %6810 = vmatprep.subr.bf16.mxu1 %v9135_v2  ;;  %v8865_v19 = vld [vmem:[%s12762_s4 + $0x16a8] sm:$0xff]  ;;  %v8838_v29 = vld [vmem:[%s12762_s4 + $0x15d0] sm:$0xff] }
 0x369   :  { %v9119_v47 = vcombine.high %v8861_v32, %v8865_v19  ;;  %v8725_v52 = vld [vmem:[%s12762_s4 + $0x1248] sm:$0xff]  ;;  %v9118_v50 = vcombine.low %v8861_v32, %v8865_v19  ;;  %v8842_v32 = vld [vmem:[%s12762_s4 + $0x15f0] sm:$0xff] }
 0x36a   :  { %v8729_v17 = vld [vmem:[%s12762_s4 + $0x1268] sm:$0xff] }
 0x36b   :  { %6758 = vmatpush2.bf16.msra.mxu0 %v9006_v3  ;;  %6811 = vmatpush2.bf16.msra.mxu1 %v9134_v12  ;;  %v8853_v28 = vld [vmem:[%s12762_s4 + $0x1648] sm:$0xff]  ;;  %v8983_v24 = vcombine.high %v8725_v52, %v8729_v17  ;;  %v8982_v42 = vcombine.low %v8725_v52, %v8729_v17  ;;  %v8706_v52 = vld [vmem:[%s12762_s4 + $0x11b0] sm:$0xff] }
 0x36c   :  { %6759 = vmatprep.subr.bf16.mxu0 %v8999_v25  ;;  %6812 = vmatprep.subr.bf16.mxu1 %v9127_v0  ;;  %v8857_v33 = vld [vmem:[%s12762_s4 + $0x1668] sm:$0xff]  ;;  %v8710_v0 = vld [vmem:[%s12762_s4 + $0x11d0] sm:$0xff] }
 0x36d   :  { %v9111_v44 = vcombine.high %v8853_v28, %v8857_v33  ;;  %v8717_v2 = vld [vmem:[%s12762_s4 + $0x1208] sm:$0xff]  ;;  %v9110_v3 = vcombine.low %v8853_v28, %v8857_v33  ;;  %v8830_v28 = vld [vmem:[%s12762_s4 + $0x1590] sm:$0xff] }
 0x36e   :  { %v8721_v31 = vld [vmem:[%s12762_s4 + $0x1228] sm:$0xff]  ;;  %v8834_v33 = vld [vmem:[%s12762_s4 + $0x15b0] sm:$0xff] }
 0x36f   :  { %6760 = vmatpush2.bf16.msra.mxu0 %v8998_v38  ;;  %6813 = vmatpush2.bf16.msra.mxu1 %v9126_v45  ;;  %v8845_v18 = vld [vmem:[%s12762_s4 + $0x1608] sm:$0xff]  ;;  %v8975_v12 = vcombine.high %v8717_v2, %v8721_v31  ;;  %v8974_v19 = vcombine.low %v8717_v2, %v8721_v31  ;;  %v8969_v45 = vcombine.high %v8710_v0, %v8714_v37 }
 0x370   :  { %6761 = vmatprep.subr.bf16.mxu0 %v8991_v62  ;;  %6814 = vmatprep.subr.bf16.mxu1 %v9119_v47  ;;  %v8849_v46 = vld [vmem:[%s12762_s4 + $0x1628] sm:$0xff]  ;;  %v9097_v62 = vcombine.high %v8838_v29, %v8842_v32  ;;  %v8702_v47 = vld [vmem:[%s12762_s4 + $0x1190] sm:$0xff] }
 0x371   :  { %v9103_v25 = vcombine.high %v8845_v18, %v8849_v46  ;;  %v9102_v38 = vcombine.low %v8845_v18, %v8849_v46  ;;  %v8961_v31 = vcombine.high %v8702_v47, %v8706_v52  ;;  %v12817_v18 = vrot.slane %v11231_v56, 7 }
 0x373   :  { %6762 = vmatpush2.bf16.msra.mxu0 %v8990_v22  ;;  %6815 = vmatpush2.bf16.msra.mxu1 %v9118_v50  ;;  %v8968_v50 = vcombine.low %v8710_v0, %v8714_v37  ;;  %v7169_v46 = vsel %vm963_vm0, 0.0, %v12817_v18 }
 0x374   :  { %6763 = vmatprep.subr.bf16.mxu0 %v8983_v24  ;;  %6816 = vmatprep.subr.bf16.mxu1 %v9111_v44  ;;  %v9096_v44 = vcombine.low %v8838_v29, %v8842_v32  ;;  %v8822_v29 = vld [vmem:[%s12762_s4 + $0x1550] sm:$0xff] }
 0x375   :  { %v8826_v32 = vld [vmem:[%s12762_s4 + $0x1570] sm:$0xff] }
 0x377   :  { %6764 = vmatpush2.bf16.msra.mxu0 %v8982_v42  ;;  %6817 = vmatpush2.bf16.msra.mxu1 %v9110_v3  ;;  %v9089_v3 = vcombine.high %v8830_v28, %v8834_v33 }
 0x378   :  { %6765 = vmatprep.subr.bf16.mxu0 %v8975_v12  ;;  %6818 = vmatprep.subr.bf16.mxu1 %v9103_v25  ;;  %v8694_v12 = vld [vmem:[%s12762_s4 + $0x1150] sm:$0xff] }
 0x379   :  { %v8698_v25 = vld [vmem:[%s12762_s4 + $0x1170] sm:$0xff] }
 0x37a   :  { %v4914_v17 = vpop.f32.mrf.mxu0  ;;  %v8953_v18 = vcombine.high %v8694_v12, %v8698_v25 }
 0x37b   :  { %6766 = vmatpush2.bf16.msra.mxu0 %v8974_v19  ;;  %6819 = vmatpush2.bf16.msra.mxu1 %v9102_v38  ;;  %v12818_v19 = vrot.slane %v11242_v4, 7  ;;  %v8686_v4 = vld [vmem:[%s12762_s4 + $0x1110] sm:$0xff] }
 0x37c   :  { %v4967_v22 = vpop.f32.mrf.mxu1  ;;  %6841 = vmatprep.subr.bf16.mxu0 %v8969_v45  ;;  %6894 = vmatprep.subr.bf16.mxu1 %v9097_v62  ;;  %v4916_v2 = vpop.f32.mrf.mxu0  ;;  %v8960_v62 = vcombine.low %v8702_v47, %v8706_v52 }
 0x37d   :  { %v4968_v24 = vadd.f32 %v4967_v22, %v4914_v17  ;;  %v7170_v38 = vsel %vm963_vm0, 0.0, %v12818_v19  ;;  %v9088_v17 = vcombine.low %v8830_v28, %v8834_v33  ;;  %v8814_v33 = vld [vmem:[%s12762_s4 + $0x1510] sm:$0xff] }
 0x37e   :  { %6768 = vmatmul.mubr.bf16.vlgmr.msra.gmra.mxu0 %v10103_v41  ;;  %v4969_v42 = vpop.f32.mrf.mxu1  ;;  %6821 = vmatmul.mubr.bf16.vlgmr.msra.gmra.mxu1 %v10105_v1  ;;  %v4918_v37 = vpop.f32.mrf.mxu0 }
 0x37f   :  { %v12169_v0 = vadd.f32 %v7169_v46, %v4968_v24  ;;  %6777 = vmatprep.mubr.bf16.mxu0 %v10168_v51  ;;  %v4970_v56 = vadd.f32 %v4969_v42, %v4916_v2  ;;  %6830 = vmatprep.mubr.bf16.mxu1 %v10196_v27  ;;  %v9081_v42 = vcombine.high %v8822_v29, %v8826_v32 }
 0x380   :  { %6842 = vmatpush1.bf16.msra.mxu0 %v8968_v50  ;;  %v4971_v45 = vpop.f32.mrf.mxu1  ;;  %6895 = vmatpush1.bf16.msra.mxu1 %v9096_v44  ;;  %v4920_v2 = vpop.f32.mrf.mxu0  ;;  %v8690_v50 = vld [vmem:[%s12762_s4 + $0x1130] sm:$0xff] }
 0x381   :  { %v12183_v22 = vadd.f32 %v7170_v38, %v4970_v56  ;;  %v4972_v24 = vadd.f32 %v4971_v45, %v4918_v37  ;;  %6843 = vmatprep.subr.bf16.mxu0 %v8961_v31  ;;  %6896 = vmatprep.subr.bf16.mxu1 %v9089_v3  ;;  %v8818_v44 = vld [vmem:[%s12762_s4 + $0x1530] sm:$0xff]  ;;  %v8952_v3 = vcombine.low %v8694_v12, %v8698_v25  ;;  %v12819_v45 = vrot.slane %v11265_v21, 7 }
 0x382   :  { %v4973_v46 = vpop.f32.mrf.mxu1  ;;  %v4924_v28 = vpop.f32.mrf.mxu0  ;;  %v9080_v56 = vcombine.low %v8822_v29, %v8826_v32  ;;  %v8945_v38 = vcombine.high %v8686_v4, %v8690_v50  ;;  %v8678_v12 = vld [vmem:[%s12762_s4 + $0x10d0] sm:$0xff] }
 0x383   :  { %v12192_v47 = vadd.f32 %v11277_v6, %v4972_v24  ;;  %v4974_v52 = vadd.f32 %v4973_v46, %v4920_v2  ;;  %v7177_v24 = vsel %vm963_vm0, 0.0, %v12819_v45  ;;  %v8806_v32 = vld [vmem:[%s12762_s4 + $0x14d0] sm:$0xff] }
 0x384   :  { %6844 = vmatpush1.bf16.msra.mxu0 %v8960_v62  ;;  %v4977_v31 = vpop.f32.mrf.mxu1  ;;  %6897 = vmatpush1.bf16.msra.mxu1 %v9088_v17  ;;  %v4926_v19 = vpop.f32.mrf.mxu0  ;;  %v9073_v62 = vcombine.high %v8814_v33, %v8818_v44  ;;  %v8810_v17 = vld [vmem:[%s12762_s4 + $0x14f0] sm:$0xff] }
 0x385   :  { %v12201_v37 = vadd.f32 %v11292_v40, %v4974_v52  ;;  %v4978_v6 = vadd.f32 %v4977_v31, %v4924_v28  ;;  %6845 = vmatprep.subr.bf16.mxu0 %v8953_v18  ;;  %6898 = vmatprep.subr.bf16.mxu1 %v9081_v42  ;;  %v8682_v40 = vld [vmem:[%s12762_s4 + $0x10f0] sm:$0xff]  ;;  %v12820_v18 = vrot.slane %v11281_v7, 7  ;;  %v8944_v52 = vcombine.low %v8686_v4, %v8690_v50 }
 0x386   :  { %6778 = vmatmul.mubr.bf16.gmra.mxu0 %v10181_v59  ;;  %v4979_v2 = vpop.f32.mrf.mxu1  ;;  %6831 = vmatmul.mubr.bf16.gmra.mxu1 %v10205_v20  ;;  %v4928_v29 = vpop.f32.mrf.mxu0  ;;  %v9072_v28 = vcombine.low %v8814_v33, %v8818_v44  ;;  %v8937_v45 = vcombine.high %v8678_v12, %v8682_v40  ;;  %v8670_v7 = vld [vmem:[%s12762_s4 + $0x1090] sm:$0xff] }
 0x387   :  { %v12213_v25 = vadd.f32 %v7177_v24, %v4978_v6  ;;  %6873 = vmatprep.mubr.bf16.mxu0 %v10115_v10  ;;  %v4980_v21 = vadd.f32 %v4979_v2, %v4926_v19  ;;  %v7178_v46 = vsel %vm963_vm0, 0.0, %v12820_v18  ;;  %6926 = vmatprep.mubr.bf16.mxu1 %v10117_v5  ;;  %v9065_v2 = vcombine.high %v8806_v32, %v8810_v17  ;;  %v8798_v33 = vld [vmem:[%s12762_s4 + $0x1490] sm:$0xff] }
 0x388   :  { %6846 = vmatpush1.bf16.msra.mxu0 %v8952_v3  ;;  %v4981_v42 = vpop.f32.mrf.mxu1  ;;  %6899 = vmatpush1.bf16.msra.mxu1 %v9080_v56  ;;  %v4930_v19 = vpop.f32.mrf.mxu0  ;;  %v8674_v3 = vld [vmem:[%s12762_s4 + $0x10b0] sm:$0xff]  ;;  %v8936_v56 = vcombine.low %v8678_v12, %v8682_v40 }
 0x389   :  { %v12227_v31 = vadd.f32 %v7178_v46, %v4980_v21  ;;  %v4982_v6 = vadd.f32 %v4981_v42, %v4928_v29  ;;  %6847 = vmatprep.subr.bf16.mxu0 %v8945_v38  ;;  %6900 = vmatprep.subr.bf16.mxu1 %v9073_v62  ;;  %v8802_v44 = vld [vmem:[%s12762_s4 + $0x14b0] sm:$0xff]  ;;  %v9064_v62 = vcombine.low %v8806_v32, %v8810_v17 }
 0x38a   :  { %v4983_v24 = vpop.f32.mrf.mxu1  ;;  %v8929_v21 = vcombine.high %v8670_v7, %v8674_v3  ;;  %v8662_v29 = vld [vmem:[%s12762_s4 + $0x1050] sm:$0xff]  ;;  %v8928_v40 = vcombine.low %v8670_v7, %v8674_v3  ;;  %v9056_v32 = vcombine.low %v8798_v33, %v8802_v44 }
 0x38b   :  { %v12236_v4 = vadd.f32 %v11318_v36, %v4982_v6  ;;  %v4984_v50 = vadd.f32 %v4983_v24, %v4930_v19  ;;  %v9057_v36 = vcombine.high %v8798_v33, %v8802_v44  ;;  %v8666_v18 = vld [vmem:[%s12762_s4 + $0x1070] sm:$0xff] }
 0x38c   :  { %6848 = vmatpush1.bf16.msra.mxu0 %v8944_v52  ;;  %6901 = vmatpush1.bf16.msra.mxu1 %v9072_v28  ;;  %v8790_v12 = vld [vmem:[%s12762_s4 + $0x1450] sm:$0xff]  ;;  %v8921_v17 = vcombine.high %v8662_v29, %v8666_v18  ;;  %v8920_v19 = vcombine.low %v8662_v29, %v8666_v18 }
 0x38d   :  { %v12245_v38 = vadd.f32 %v11329_v61, %v4984_v50  ;;  %6849 = vmatprep.subr.bf16.mxu0 %v8937_v45  ;;  %6902 = vmatprep.subr.bf16.mxu1 %v9065_v2  ;;  %v8794_v61 = vld [vmem:[%s12762_s4 + $0x1470] sm:$0xff] }
 0x38e   :  { %v9049_v46 = vcombine.high %v8790_v12, %v8794_v61  ;;  %v8654_v42 = vld [vmem:[%s12762_s4 + $0x1010] sm:$0xff]  ;;  %v9048_v45 = vcombine.low %v8790_v12, %v8794_v61 }
 0x38f   :  { %v8658_v52 = vld [vmem:[%s12762_s4 + $0x1030] sm:$0xff] }
 0x390   :  { %6850 = vmatpush1.bf16.msra.mxu0 %v8936_v56  ;;  %6903 = vmatpush1.bf16.msra.mxu1 %v9064_v62  ;;  %v8782_v28 = vld [vmem:[%s12762_s4 + $0x1410] sm:$0xff]  ;;  %v8913_v24 = vcombine.high %v8654_v42, %v8658_v52  ;;  %v8912_v44 = vcombine.low %v8654_v42, %v8658_v52 }
 0x391   :  { %6851 = vmatprep.subr.bf16.mxu0 %v8929_v21  ;;  %6904 = vmatprep.subr.bf16.mxu1 %v9057_v36  ;;  %v8786_v6 = vld [vmem:[%s12762_s4 + $0x1430] sm:$0xff] }
 0x392   :  { %v9041_v2 = vcombine.high %v8782_v28, %v8786_v6  ;;  %v8774_v7 = vld [vmem:[%s12762_s4 + $0x13d0] sm:$0xff]  ;;  %v9040_v56 = vcombine.low %v8782_v28, %v8786_v6 }
 0x393   :  { %v8778_v3 = vld [vmem:[%s12762_s4 + $0x13f0] sm:$0xff] }
 0x394   :  { %6852 = vmatpush1.bf16.msra.mxu0 %v8928_v40  ;;  %6905 = vmatpush1.bf16.msra.mxu1 %v9056_v32  ;;  %v8902_v50 = vld [vmem:[%s12762_s4 + $0x17d0] sm:$0xff]  ;;  %v9033_v62 = vcombine.high %v8774_v7, %v8778_v3  ;;  %v9032_v61 = vcombine.low %v8774_v7, %v8778_v3 }
 0x395   :  { %6853 = vmatprep.subr.bf16.mxu0 %v8921_v17  ;;  %6906 = vmatprep.subr.bf16.mxu1 %v9049_v46  ;;  %v8906_v33 = vld [vmem:[%s12762_s4 + $0x17f0] sm:$0xff] }
 0x396   :  { %v9161_v21 = vcombine.high %v8902_v50, %v8906_v33  ;;  %v8766_v36 = vld [vmem:[%s12762_s4 + $0x1390] sm:$0xff]  ;;  %v9160_v40 = vcombine.low %v8902_v50, %v8906_v33 }
 0x397   :  { %v8770_v29 = vld [vmem:[%s12762_s4 + $0x13b0] sm:$0xff] }
 0x398   :  { %6854 = vmatpush1.bf16.msra.mxu0 %v8920_v19  ;;  %6907 = vmatpush1.bf16.msra.mxu1 %v9048_v45  ;;  %v8894_v18 = vld [vmem:[%s12762_s4 + $0x1790] sm:$0xff]  ;;  %v9025_v32 = vcombine.high %v8766_v36, %v8770_v29  ;;  %v9024_v6 = vcombine.low %v8766_v36, %v8770_v29 }
 0x399   :  { %6855 = vmatprep.subr.bf16.mxu0 %v8913_v24  ;;  %6908 = vmatprep.subr.bf16.mxu1 %v9041_v2  ;;  %v8898_v12 = vld [vmem:[%s12762_s4 + $0x17b0] sm:$0xff] }
 0x39a   :  { %v9153_v17 = vcombine.high %v8894_v18, %v8898_v12  ;;  %v8758_v46 = vld [vmem:[%s12762_s4 + $0x1350] sm:$0xff]  ;;  %v9152_v19 = vcombine.low %v8894_v18, %v8898_v12 }
 0x39b   :  { %v8762_v42 = vld [vmem:[%s12762_s4 + $0x1370] sm:$0xff] }
 0x39c   :  { %6856 = vmatpush1.bf16.msra.mxu0 %v8912_v44  ;;  %6909 = vmatpush1.bf16.msra.mxu1 %v9040_v56  ;;  %v8886_v52 = vld [vmem:[%s12762_s4 + $0x1750] sm:$0xff]  ;;  %v9017_v45 = vcombine.high %v8758_v46, %v8762_v42  ;;  %v9016_v33 = vcombine.low %v8758_v46, %v8762_v42 }
 0x39d   :  { %6857 = vmatprep.subr.bf16.mxu0 %v9033_v62  ;;  %6910 = vmatprep.subr.bf16.mxu1 %v9161_v21  ;;  %v8890_v28 = vld [vmem:[%s12762_s4 + $0x1770] sm:$0xff] }
 0x39e   :  { %v9145_v24 = vcombine.high %v8886_v52, %v8890_v28  ;;  %v8750_v2 = vld [vmem:[%s12762_s4 + $0x1310] sm:$0xff]  ;;  %v9144_v44 = vcombine.low %v8886_v52, %v8890_v28 }
 0x39f   :  { %v8754_v7 = vld [vmem:[%s12762_s4 + $0x1330] sm:$0xff] }
 0x3a0   :  { %6858 = vmatpush2.bf16.msra.mxu0 %v9032_v61  ;;  %6911 = vmatpush2.bf16.msra.mxu1 %v9160_v40  ;;  %v8878_v3 = vld [vmem:[%s12762_s4 + $0x1710] sm:$0xff]  ;;  %v9009_v56 = vcombine.high %v8750_v2, %v8754_v7  ;;  %v9008_v12 = vcombine.low %v8750_v2, %v8754_v7 }
 0x3a1   :  { %6859 = vmatprep.subr.bf16.mxu0 %v9025_v32  ;;  %6912 = vmatprep.subr.bf16.mxu1 %v9153_v17  ;;  %v8882_v50 = vld [vmem:[%s12762_s4 + $0x1730] sm:$0xff] }
 0x3a2   :  { %v9137_v62 = vcombine.high %v8878_v3, %v8882_v50  ;;  %v8742_v21 = vld [vmem:[%s12762_s4 + $0x12d0] sm:$0xff]  ;;  %v9136_v61 = vcombine.low %v8878_v3, %v8882_v50 }
 0x3a3   :  { %v8746_v36 = vld [vmem:[%s12762_s4 + $0x12f0] sm:$0xff] }
 0x3a4   :  { %6860 = vmatpush2.bf16.msra.mxu0 %v9024_v6  ;;  %6913 = vmatpush2.bf16.msra.mxu1 %v9152_v19  ;;  %v8870_v29 = vld [vmem:[%s12762_s4 + $0x16d0] sm:$0xff]  ;;  %v9001_v40 = vcombine.high %v8742_v21, %v8746_v36  ;;  %v9000_v28 = vcombine.low %v8742_v21, %v8746_v36 }
 0x3a5   :  { %6861 = vmatprep.subr.bf16.mxu0 %v9017_v45  ;;  %6914 = vmatprep.subr.bf16.mxu1 %v9145_v24  ;;  %v8874_v18 = vld [vmem:[%s12762_s4 + $0x16f0] sm:$0xff] }
 0x3a6   :  { %v9129_v32 = vcombine.high %v8870_v29, %v8874_v18  ;;  %v8734_v17 = vld [vmem:[%s12762_s4 + $0x1290] sm:$0xff]  ;;  %v9128_v6 = vcombine.low %v8870_v29, %v8874_v18 }
 0x3a7   :  { %v8738_v46 = vld [vmem:[%s12762_s4 + $0x12b0] sm:$0xff] }
 0x3a8   :  { %6862 = vmatpush2.bf16.msra.mxu0 %v9016_v33  ;;  %6915 = vmatpush2.bf16.msra.mxu1 %v9144_v44  ;;  %v8862_v42 = vld [vmem:[%s12762_s4 + $0x1690] sm:$0xff]  ;;  %v8993_v19 = vcombine.high %v8734_v17, %v8738_v46  ;;  %v8992_v50 = vcombine.low %v8734_v17, %v8738_v46  ;;  %v8715_v17 = vld [vmem:[%s12762_s4 + $0x11f8] sm:$0xff] }
 0x3a9   :  { %6863 = vmatprep.subr.bf16.mxu0 %v9009_v56  ;;  %6916 = vmatprep.subr.bf16.mxu1 %v9137_v62  ;;  %v8866_v52 = vld [vmem:[%s12762_s4 + $0x16b0] sm:$0xff]  ;;  %v8839_v46 = vld [vmem:[%s12762_s4 + $0x15d8] sm:$0xff] }
 0x3aa   :  { %v9121_v45 = vcombine.high %v8862_v42, %v8866_v52  ;;  %v8726_v24 = vld [vmem:[%s12762_s4 + $0x1250] sm:$0xff]  ;;  %v9120_v33 = vcombine.low %v8862_v42, %v8866_v52  ;;  %v8843_v42 = vld [vmem:[%s12762_s4 + $0x15f8] sm:$0xff] }
 0x3ab   :  { %v8730_v2 = vld [vmem:[%s12762_s4 + $0x1270] sm:$0xff] }
 0x3ac   :  { %6864 = vmatpush2.bf16.msra.mxu0 %v9008_v12  ;;  %6917 = vmatpush2.bf16.msra.mxu1 %v9136_v61  ;;  %v8854_v7 = vld [vmem:[%s12762_s4 + $0x1650] sm:$0xff]  ;;  %v8985_v44 = vcombine.high %v8726_v24, %v8730_v2  ;;  %v8984_v18 = vcombine.low %v8726_v24, %v8730_v2  ;;  %v8707_v24 = vld [vmem:[%s12762_s4 + $0x11b8] sm:$0xff] }
 0x3ad   :  { %6865 = vmatprep.subr.bf16.mxu0 %v9001_v40  ;;  %6918 = vmatprep.subr.bf16.mxu1 %v9129_v32  ;;  %v8858_v3 = vld [vmem:[%s12762_s4 + $0x1670] sm:$0xff]  ;;  %v8711_v32 = vld [vmem:[%s12762_s4 + $0x11d8] sm:$0xff] }
 0x3ae   :  { %v9113_v56 = vcombine.high %v8854_v7, %v8858_v3  ;;  %v8718_v62 = vld [vmem:[%s12762_s4 + $0x1210] sm:$0xff]  ;;  %v9112_v12 = vcombine.low %v8854_v7, %v8858_v3  ;;  %v8831_v7 = vld [vmem:[%s12762_s4 + $0x1598] sm:$0xff] }
 0x3af   :  { %v8722_v21 = vld [vmem:[%s12762_s4 + $0x1230] sm:$0xff]  ;;  %v8835_v3 = vld [vmem:[%s12762_s4 + $0x15b8] sm:$0xff] }
 0x3b0   :  { %6866 = vmatpush2.bf16.msra.mxu0 %v9000_v28  ;;  %6919 = vmatpush2.bf16.msra.mxu1 %v9128_v6  ;;  %v8846_v36 = vld [vmem:[%s12762_s4 + $0x1610] sm:$0xff]  ;;  %v8977_v61 = vcombine.high %v8718_v62, %v8722_v21  ;;  %v8976_v52 = vcombine.low %v8718_v62, %v8722_v21  ;;  %v8971_v6 = vcombine.high %v8711_v32, %v8715_v17 }
 0x3b1   :  { %6867 = vmatprep.subr.bf16.mxu0 %v8993_v19  ;;  %6920 = vmatprep.subr.bf16.mxu1 %v9121_v45  ;;  %v8850_v29 = vld [vmem:[%s12762_s4 + $0x1630] sm:$0xff]  ;;  %v9099_v19 = vcombine.high %v8839_v46, %v8843_v42  ;;  %v8703_v45 = vld [vmem:[%s12762_s4 + $0x1198] sm:$0xff] }
 0x3b2   :  { %v9105_v40 = vcombine.high %v8846_v36, %v8850_v29  ;;  %v9104_v28 = vcombine.low %v8846_v36, %v8850_v29  ;;  %v8963_v21 = vcombine.high %v8703_v45, %v8707_v24  ;;  %v12821_v36 = vrot.slane %v11463_v15, 7 }
 0x3b4   :  { %6868 = vmatpush2.bf16.msra.mxu0 %v8992_v50  ;;  %6921 = vmatpush2.bf16.msra.mxu1 %v9120_v33  ;;  %v8970_v33 = vcombine.low %v8711_v32, %v8715_v17  ;;  %v7171_v29 = vsel %vm963_vm0, 0.0, %v12821_v36 }
 0x3b5   :  { %6869 = vmatprep.subr.bf16.mxu0 %v8985_v44  ;;  %6922 = vmatprep.subr.bf16.mxu1 %v9113_v56  ;;  %v9098_v56 = vcombine.low %v8839_v46, %v8843_v42  ;;  %v8823_v46 = vld [vmem:[%s12762_s4 + $0x1558] sm:$0xff] }
 0x3b6   :  { %v8827_v42 = vld [vmem:[%s12762_s4 + $0x1578] sm:$0xff] }
 0x3b8   :  { %6870 = vmatpush2.bf16.msra.mxu0 %v8984_v18  ;;  %6923 = vmatpush2.bf16.msra.mxu1 %v9112_v12  ;;  %v9091_v12 = vcombine.high %v8831_v7, %v8835_v3 }
 0x3b9   :  { %6871 = vmatprep.subr.bf16.mxu0 %v8977_v61  ;;  %6924 = vmatprep.subr.bf16.mxu1 %v9105_v40  ;;  %v8695_v61 = vld [vmem:[%s12762_s4 + $0x1158] sm:$0xff] }
 0x3ba   :  { %v8699_v40 = vld [vmem:[%s12762_s4 + $0x1178] sm:$0xff] }
 0x3bb   :  { %v8955_v36 = vcombine.high %v8695_v61, %v8699_v40 }
 0x3bc   :  { %6872 = vmatpush2.bf16.msra.mxu0 %v8976_v52  ;;  %v5020_v2 = vpop.f32.mrf.mxu0  ;;  %6925 = vmatpush2.bf16.msra.mxu1 %v9104_v28  ;;  %v5073_v50 = vpop.f32.mrf.mxu1  ;;  %v12822_v52 = vrot.slane %v11474_v30, 7  ;;  %v8687_v30 = vld [vmem:[%s12762_s4 + $0x1118] sm:$0xff] }
 0x3bd   :  { %6947 = vmatprep.subr.bf16.mxu0 %v8971_v6  ;;  %v5074_v44 = vadd.f32 %v5073_v50, %v5020_v2  ;;  %7000 = vmatprep.subr.bf16.mxu1 %v9099_v19  ;;  %v8962_v19 = vcombine.low %v8703_v45, %v8707_v24  ;;  %v9090_v2 = vcombine.low %v8831_v7, %v8835_v3  ;;  %v8815_v3 = vld [vmem:[%s12762_s4 + $0x1518] sm:$0xff] }
 0x3be   :  { %v5022_v62 = vpop.f32.mrf.mxu0  ;;  %v5075_v18 = vpop.f32.mrf.mxu1  ;;  %v7172_v28 = vsel %vm963_vm0, 0.0, %v12822_v52 }
 0x3bf   :  { %6874 = vmatmul.mubr.bf16.vlgmr.msra.gmra.mxu0 %v10103_v41  ;;  %v12401_v32 = vadd.f32 %v7171_v29, %v5074_v44  ;;  %6927 = vmatmul.mubr.bf16.vlgmr.msra.gmra.mxu1 %v10105_v1  ;;  %v5076_v15 = vadd.f32 %v5075_v18, %v5022_v62  ;;  %v9083_v18 = vcombine.high %v8823_v46, %v8827_v42 }
 0x3c0   :  { %6883 = vmatprep.mubr.bf16.mxu0 %v10168_v51  ;;  %v5024_v17 = vpop.f32.mrf.mxu0  ;;  %6936 = vmatprep.mubr.bf16.mxu1 %v10196_v27  ;;  %v5077_v6 = vpop.f32.mrf.mxu1 }
 0x3c1   :  { %6948 = vmatpush1.bf16.msra.mxu0 %v8970_v33  ;;  %7001 = vmatpush1.bf16.msra.mxu1 %v9098_v56  ;;  %v12415_v50 = vadd.f32 %v7172_v28, %v5076_v15  ;;  %v5078_v44 = vadd.f32 %v5077_v6, %v5024_v17  ;;  %v8691_v33 = vld [vmem:[%s12762_s4 + $0x1138] sm:$0xff]  ;;  %v9082_v15 = vcombine.low %v8823_v46, %v8827_v42  ;;  %v12823_v6 = vrot.slane %v11497_v13, 7 }
 0x3c2   :  { %6949 = vmatprep.subr.bf16.mxu0 %v8963_v21  ;;  %v5026_v62 = vpop.f32.mrf.mxu0  ;;  %7002 = vmatprep.subr.bf16.mxu1 %v9091_v12  ;;  %v5079_v29 = vpop.f32.mrf.mxu1  ;;  %v8819_v56 = vld [vmem:[%s12762_s4 + $0x1538] sm:$0xff]  ;;  %v8954_v12 = vcombine.low %v8695_v61, %v8699_v40  ;;  %v8947_v28 = vcombine.high %v8687_v30, %v8691_v33 }
 0x3c3   :  { %v12424_v45 = vadd.f32 %v11509_v54, %v5078_v44  ;;  %v5080_v24 = vadd.f32 %v5079_v29, %v5026_v62  ;;  %v7179_v44 = vsel %vm963_vm0, 0.0, %v12823_v6  ;;  %v8679_v61 = vld [vmem:[%s12762_s4 + $0x10d8] sm:$0xff] }
 0x3c4   :  { %v5030_v7 = vpop.f32.mrf.mxu0  ;;  %v5083_v21 = vpop.f32.mrf.mxu1  ;;  %v8807_v42 = vld [vmem:[%s12762_s4 + $0x14d8] sm:$0xff] }
 0x3c5   :  { %6950 = vmatpush1.bf16.msra.mxu0 %v8962_v19  ;;  %7003 = vmatpush1.bf16.msra.mxu1 %v9090_v2  ;;  %v12433_v17 = vadd.f32 %v11524_v39, %v5080_v24  ;;  %v5084_v54 = vadd.f32 %v5083_v21, %v5030_v7  ;;  %v9075_v19 = vcombine.high %v8815_v3, %v8819_v56  ;;  %v8683_v39 = vld [vmem:[%s12762_s4 + $0x10f8] sm:$0xff] }
 0x3c6   :  { %6951 = vmatprep.subr.bf16.mxu0 %v8955_v36  ;;  %v5032_v52 = vpop.f32.mrf.mxu0  ;;  %7004 = vmatprep.subr.bf16.mxu1 %v9083_v18  ;;  %v5085_v62 = vpop.f32.mrf.mxu1  ;;  %v8811_v2 = vld [vmem:[%s12762_s4 + $0x14f8] sm:$0xff]  ;;  %v12824_v36 = vrot.slane %v11513_v43, 7  ;;  %v8946_v24 = vcombine.low %v8687_v30, %v8691_v33 }
 0x3c7   :  { %6884 = vmatmul.mubr.bf16.gmra.mxu0 %v10181_v59  ;;  %v12445_v40 = vadd.f32 %v7179_v44, %v5084_v54  ;;  %6937 = vmatmul.mubr.bf16.gmra.mxu1 %v10205_v20  ;;  %v5086_v13 = vadd.f32 %v5085_v62, %v5032_v52  ;;  %v8939_v52 = vcombine.high %v8679_v61, %v8683_v39  ;;  %v8671_v43 = vld [vmem:[%s12762_s4 + $0x1098] sm:$0xff] }
 0x3c8   :  { %6979 = vmatprep.mubr.bf16.mxu0 %v10115_v10  ;;  %v5034_v46 = vpop.f32.mrf.mxu0  ;;  %v7180_v29 = vsel %vm963_vm0, 0.0, %v12824_v36  ;;  %7032 = vmatprep.mubr.bf16.mxu1 %v10117_v5  ;;  %v5087_v18 = vpop.f32.mrf.mxu1  ;;  %v9074_v10 = vcombine.low %v8815_v3, %v8819_v56  ;;  %v9067_v44 = vcombine.high %v8807_v42, %v8811_v2  ;;  %v8675_v5 = vld [vmem:[%s12762_s4 + $0x10b8] sm:$0xff] }
 0x3c9   :  { %6952 = vmatpush1.bf16.msra.mxu0 %v8954_v12  ;;  %7005 = vmatpush1.bf16.msra.mxu1 %v9082_v15  ;;  %v12459_v7 = vadd.f32 %v7180_v29, %v5086_v13  ;;  %v5088_v21 = vadd.f32 %v5087_v18, %v5034_v46  ;;  %v8799_v3 = vld [vmem:[%s12762_s4 + $0x1498] sm:$0xff]  ;;  %v8938_v12 = vcombine.low %v8679_v61, %v8683_v39 }
 0x3ca   :  { %6953 = vmatprep.subr.bf16.mxu0 %v8947_v28  ;;  %v5036_v54 = vpop.f32.mrf.mxu0  ;;  %7006 = vmatprep.subr.bf16.mxu1 %v9075_v19  ;;  %v5089_v6 = vpop.f32.mrf.mxu1  ;;  %v8803_v56 = vld [vmem:[%s12762_s4 + $0x14b8] sm:$0xff]  ;;  %v9066_v28 = vcombine.low %v8807_v42, %v8811_v2  ;;  %v8931_v62 = vcombine.high %v8671_v43, %v8675_v5  ;;  %v8930_v39 = vcombine.low %v8671_v43, %v8675_v5 }
 0x3cb   :  { %v12468_v30 = vadd.f32 %v11550_v9, %v5088_v21  ;;  %v5090_v33 = vadd.f32 %v5089_v6, %v5036_v54  ;;  %v9059_v9 = vcombine.high %v8799_v3, %v8803_v56  ;;  %v8663_v19 = vld [vmem:[%s12762_s4 + $0x1058] sm:$0xff]  ;;  %v9058_v46 = vcombine.low %v8799_v3, %v8803_v56 }
 0x3cc   :  { %v8667_v13 = vld [vmem:[%s12762_s4 + $0x1078] sm:$0xff] }
 0x3cd   :  { %6954 = vmatpush1.bf16.msra.mxu0 %v8946_v24  ;;  %7007 = vmatpush1.bf16.msra.mxu1 %v9074_v10  ;;  %v12477_v15 = vadd.f32 %v11561_v63, %v5090_v33  ;;  %v8791_v61 = vld [vmem:[%s12762_s4 + $0x1458] sm:$0xff]  ;;  %v8923_v42 = vcombine.high %v8663_v19, %v8667_v13  ;;  %v8922_v10 = vcombine.low %v8663_v19, %v8667_v13 }
 0x3ce   :  { %6955 = vmatprep.subr.bf16.mxu0 %v8939_v52  ;;  %7008 = vmatprep.subr.bf16.mxu1 %v9067_v44  ;;  %v8795_v63 = vld [vmem:[%s12762_s4 + $0x1478] sm:$0xff] }
 0x3cf   :  { %v9051_v2 = vcombine.high %v8791_v61, %v8795_v63  ;;  %v8655_v36 = vld [vmem:[%s12762_s4 + $0x1018] sm:$0xff]  ;;  %v9050_v21 = vcombine.low %v8791_v61, %v8795_v63 }
 0x3d0   :  { %v8659_v29 = vld [vmem:[%s12762_s4 + $0x1038] sm:$0xff] }
 0x3d1   :  { %6956 = vmatpush1.bf16.msra.mxu0 %v8938_v12  ;;  %7009 = vmatpush1.bf16.msra.mxu1 %v9066_v28  ;;  %v8783_v18 = vld [vmem:[%s12762_s4 + $0x1418] sm:$0xff]  ;;  %v8915_v54 = vcombine.high %v8655_v36, %v8659_v29  ;;  %v8914_v33 = vcombine.low %v8655_v36, %v8659_v29 }
 0x3d2   :  { %6957 = vmatprep.subr.bf16.mxu0 %v8931_v62  ;;  %7010 = vmatprep.subr.bf16.mxu1 %v9059_v9  ;;  %v8787_v24 = vld [vmem:[%s12762_s4 + $0x1438] sm:$0xff] }
 0x3d3   :  { %v9043_v52 = vcombine.high %v8783_v18, %v8787_v24  ;;  %v8775_v6 = vld [vmem:[%s12762_s4 + $0x13d8] sm:$0xff]  ;;  %v9042_v3 = vcombine.low %v8783_v18, %v8787_v24 }
 0x3d4   :  { %v8779_v44 = vld [vmem:[%s12762_s4 + $0x13f8] sm:$0xff] }
 0x3d5   :  { %6958 = vmatpush1.bf16.msra.mxu0 %v8930_v39  ;;  %7011 = vmatpush1.bf16.msra.mxu1 %v9058_v46  ;;  %v8903_v43 = vld [vmem:[%s12762_s4 + $0x17d8] sm:$0xff]  ;;  %v9035_v56 = vcombine.high %v8775_v6, %v8779_v44  ;;  %v9034_v13 = vcombine.low %v8775_v6, %v8779_v44 }
 0x3d6   :  { %6959 = vmatprep.subr.bf16.mxu0 %v8923_v42  ;;  %7012 = vmatprep.subr.bf16.mxu1 %v9051_v2  ;;  %v8907_v5 = vld [vmem:[%s12762_s4 + $0x17f8] sm:$0xff] }
 0x3d7   :  { %v9163_v12 = vcombine.high %v8903_v43, %v8907_v5  ;;  %v8767_v28 = vld [vmem:[%s12762_s4 + $0x1398] sm:$0xff]  ;;  %v9162_v61 = vcombine.low %v8903_v43, %v8907_v5 }
 0x3d8   :  { %v8771_v62 = vld [vmem:[%s12762_s4 + $0x13b8] sm:$0xff] }
 0x3d9   :  { %6960 = vmatpush1.bf16.msra.mxu0 %v8922_v10  ;;  %7013 = vmatpush1.bf16.msra.mxu1 %v9050_v21  ;;  %v8895_v9 = vld [vmem:[%s12762_s4 + $0x1798] sm:$0xff]  ;;  %v9027_v63 = vcombine.high %v8767_v28, %v8771_v62  ;;  %v9026_v29 = vcombine.low %v8767_v28, %v8771_v62 }
 0x3da   :  { %6961 = vmatprep.subr.bf16.mxu0 %v8915_v54  ;;  %7014 = vmatprep.subr.bf16.mxu1 %v9043_v52  ;;  %v8899_v19 = vld [vmem:[%s12762_s4 + $0x17b8] sm:$0xff] }
 0x3db   :  { %v9155_v39 = vcombine.high %v8895_v9, %v8899_v19  ;;  %v8759_v46 = vld [vmem:[%s12762_s4 + $0x1358] sm:$0xff]  ;;  %v9154_v18 = vcombine.low %v8895_v9, %v8899_v19 }
 0x3dc   :  { %v8763_v42 = vld [vmem:[%s12762_s4 + $0x1378] sm:$0xff] }
 0x3dd   :  { %6962 = vmatpush1.bf16.msra.mxu0 %v8914_v33  ;;  %7015 = vmatpush1.bf16.msra.mxu1 %v9042_v3  ;;  %v8887_v2 = vld [vmem:[%s12762_s4 + $0x1758] sm:$0xff]  ;;  %v9019_v24 = vcombine.high %v8759_v46, %v8763_v42  ;;  %v9018_v44 = vcombine.low %v8759_v46, %v8763_v42 }
 0x3de   :  { %6963 = vmatprep.subr.bf16.mxu0 %v9035_v56  ;;  %7016 = vmatprep.subr.bf16.mxu1 %v9163_v12  ;;  %v8891_v36 = vld [vmem:[%s12762_s4 + $0x1778] sm:$0xff] }
 0x3df   :  { %v9147_v10 = vcombine.high %v8887_v2, %v8891_v36  ;;  %v8751_v21 = vld [vmem:[%s12762_s4 + $0x1318] sm:$0xff]  ;;  %v9146_v43 = vcombine.low %v8887_v2, %v8891_v36 }
 0x3e0   :  { %v8755_v54 = vld [vmem:[%s12762_s4 + $0x1338] sm:$0xff] }
 0x3e1   :  { %6964 = vmatpush2.bf16.msra.mxu0 %v9034_v13  ;;  %7017 = vmatpush2.bf16.msra.mxu1 %v9162_v61  ;;  %v8879_v52 = vld [vmem:[%s12762_s4 + $0x1718] sm:$0xff]  ;;  %v9011_v5 = vcombine.high %v8751_v21, %v8755_v54  ;;  %v9010_v62 = vcombine.low %v8751_v21, %v8755_v54 }
 0x3e2   :  { %6965 = vmatprep.subr.bf16.mxu0 %v9027_v63  ;;  %7018 = vmatprep.subr.bf16.mxu1 %v9155_v39  ;;  %v8883_v6 = vld [vmem:[%s12762_s4 + $0x1738] sm:$0xff] }
 0x3e3   :  { %v9139_v33 = vcombine.high %v8879_v52, %v8883_v6  ;;  %v8743_v3 = vld [vmem:[%s12762_s4 + $0x12d8] sm:$0xff]  ;;  %v9138_v9 = vcombine.low %v8879_v52, %v8883_v6 }
 0x3e4   :  { %v8747_v56 = vld [vmem:[%s12762_s4 + $0x12f8] sm:$0xff] }
 0x3e5   :  { %6966 = vmatpush2.bf16.msra.mxu0 %v9026_v29  ;;  %7019 = vmatpush2.bf16.msra.mxu1 %v9154_v18  ;;  %v8871_v12 = vld [vmem:[%s12762_s4 + $0x16d8] sm:$0xff]  ;;  %v9003_v19 = vcombine.high %v8743_v3, %v8747_v56  ;;  %v9002_v42 = vcombine.low %v8743_v3, %v8747_v56 }
 0x3e6   :  { %6967 = vmatprep.subr.bf16.mxu0 %v9019_v24  ;;  %7020 = vmatprep.subr.bf16.mxu1 %v9147_v10  ;;  %v8875_v28 = vld [vmem:[%s12762_s4 + $0x16f8] sm:$0xff] }
 0x3e7   :  { %v9131_v13 = vcombine.high %v8871_v12, %v8875_v28  ;;  %v8735_v61 = vld [vmem:[%s12762_s4 + $0x1298] sm:$0xff]  ;;  %v9130_v2 = vcombine.low %v8871_v12, %v8875_v28 }
 0x3e8   :  { %v8739_v63 = vld [vmem:[%s12762_s4 + $0x12b8] sm:$0xff] }
 0x3e9   :  { %6968 = vmatpush2.bf16.msra.mxu0 %v9018_v44  ;;  %7021 = vmatpush2.bf16.msra.mxu1 %v9146_v43  ;;  %v8863_v39 = vld [vmem:[%s12762_s4 + $0x1698] sm:$0xff]  ;;  %v8995_v36 = vcombine.high %v8735_v61, %v8739_v63  ;;  %v8994_v54 = vcombine.low %v8735_v61, %v8739_v63 }
 0x3ea   :  { %6969 = vmatprep.subr.bf16.mxu0 %v9011_v5  ;;  %7022 = vmatprep.subr.bf16.mxu1 %v9139_v33  ;;  %v8867_v46 = vld [vmem:[%s12762_s4 + $0x16b8] sm:$0xff] }
 0x3eb   :  { %v9123_v29 = vcombine.high %v8863_v39, %v8867_v46  ;;  %v8727_v18 = vld [vmem:[%s12762_s4 + $0x1258] sm:$0xff]  ;;  %v9122_v52 = vcombine.low %v8863_v39, %v8867_v46 }
 0x3ec   :  { %v8731_v24 = vld [vmem:[%s12762_s4 + $0x1278] sm:$0xff] }
 0x3ed   :  { %6970 = vmatpush2.bf16.msra.mxu0 %v9010_v62  ;;  %7023 = vmatpush2.bf16.msra.mxu1 %v9138_v9  ;;  %v8855_v10 = vld [vmem:[%s12762_s4 + $0x1658] sm:$0xff]  ;;  %v8987_v6 = vcombine.high %v8727_v18, %v8731_v24  ;;  %v8986_v56 = vcombine.low %v8727_v18, %v8731_v24  ;;  %v12606_v18 = vld [vmem:[%s12764_s5] sm:$0xff] }
 0x3ee   :  { %6971 = vmatprep.subr.bf16.mxu0 %v9003_v19  ;;  %7024 = vmatprep.subr.bf16.mxu1 %v9131_v13  ;;  %v8859_v21 = vld [vmem:[%s12762_s4 + $0x1678] sm:$0xff] }
 0x3ef   :  { %v9115_v44 = vcombine.high %v8855_v10, %v8859_v21  ;;  %v8719_v43 = vld [vmem:[%s12762_s4 + $0x1218] sm:$0xff]  ;;  %v9114_v12 = vcombine.low %v8855_v10, %v8859_v21 }
 0x3f0   :  { %v8723_v5 = vld [vmem:[%s12762_s4 + $0x1238] sm:$0xff] }
 0x3f1   :  { %6972 = vmatpush2.bf16.msra.mxu0 %v9002_v42  ;;  %7025 = vmatpush2.bf16.msra.mxu1 %v9130_v2  ;;  %v8847_v33 = vld [vmem:[%s12762_s4 + $0x1618] sm:$0xff]  ;;  %v8979_v28 = vcombine.high %v8719_v43, %v8723_v5  ;;  %v8978_v9 = vcombine.low %v8719_v43, %v8723_v5 }
 0x3f2   :  { %6973 = vmatprep.subr.bf16.mxu0 %v8995_v36  ;;  %7026 = vmatprep.subr.bf16.mxu1 %v9123_v29  ;;  %v8851_v3 = vld [vmem:[%s12762_s4 + $0x1638] sm:$0xff] }
 0x3f3   :  { %v9107_v62 = vcombine.high %v8847_v33, %v8851_v3  ;;  %v9106_v19 = vcombine.low %v8847_v33, %v8851_v3  ;;  %v12826_v3 = vld [vmem:[#allocation9_spill] sm:$0xff] }
 0x3f5   :  { %6974 = vmatpush2.bf16.msra.mxu0 %v8994_v54  ;;  %7027 = vmatpush2.bf16.msra.mxu1 %v9122_v52 }
 0x3f6   :  { %6975 = vmatprep.subr.bf16.mxu0 %v8987_v6  ;;  %7028 = vmatprep.subr.bf16.mxu1 %v9115_v44 }
 0x3f9   :  { %6976 = vmatpush2.bf16.msra.mxu0 %v8986_v56  ;;  %7029 = vmatpush2.bf16.msra.mxu1 %v9114_v12 }
 0x3fa   :  { %6977 = vmatprep.subr.bf16.mxu0 %v8979_v28  ;;  %7030 = vmatprep.subr.bf16.mxu1 %v9107_v62  ;;  %v12827_v28 = vld [vmem:[#allocation7_spill] sm:$0xff] }
 0x3fb   :  { %v7382_v62 = vrot.slane %v12606_v18, %v12827_v28 }
 0x3fd   :  { %6978 = vmatpush2.bf16.msra.mxu0 %v8978_v9  ;;  %v6663_v13 = vpop.f32.mrf.mxu0  ;;  %7031 = vmatpush2.bf16.msra.mxu1 %v9106_v19  ;;  %v6716_v61 = vpop.f32.mrf.mxu1 }
 0x3fe   :  { %v6717_v46 = vadd.f32 %v6716_v61, %v6663_v13 }
 0x3ff   :  { %v6665_v63 = vpop.f32.mrf.mxu0  ;;  %v6718_v39 = vpop.f32.mrf.mxu1 }
 0x400   :  { %6980 = vmatmul.mubr.bf16.vlgmr.msra.gmra.mxu0 %v10103_v41  ;;  %7033 = vmatmul.mubr.bf16.vlgmr.msra.gmra.mxu1 %v10105_v1  ;;  %v6719_v36 = vadd.f32 %v6718_v39, %v6665_v63  ;;  %v7245_v41 = vrot.slane %v6717_v46, 1  ;;  %v12825_v1 = vld [vmem:[#allocation5_spill] sm:$0xff] }
 0x401   :  { %6989 = vmatprep.mubr.bf16.mxu0 %v10168_v51  ;;  %v6667_v42 = vpop.f32.mrf.mxu0  ;;  %7042 = vmatprep.mubr.bf16.mxu1 %v10196_v27  ;;  %v6720_v2 = vpop.f32.mrf.mxu1  ;;  %v7378_v51 = vrot.slane %v12606_v18, %v12825_v1 }
 0x402   :  { %v6721_v29 = vadd.f32 %v6720_v2, %v6667_v42  ;;  %v7248_v44 = vrot.slane %v6719_v36, 1 }
 0x403   :  { %v6669_v24 = vpop.f32.mrf.mxu0  ;;  %v6722_v10 = vpop.f32.mrf.mxu1 }
 0x404   :  { %v7246_v21 = vrot.slane %v6721_v29, 1  ;;  %v6723_v54 = vadd.f32 %v6722_v10, %v6669_v24 }
 0x405   :  { %v6673_v52 = vpop.f32.mrf.mxu0  ;;  %v6726_v6 = vpop.f32.mrf.mxu1 }
 0x406   :  { %v7247_v27 = vsel %vm1044_vm1, %v7245_v41, %v7246_v21  ;;  %v7325_v43 = vsel %vm1044_vm1, %v7246_v21, 0.0  ;;  %v7249_v5 = vrot.slane %v6723_v54, 1  ;;  %v6727_v61 = vadd.f32 %v6726_v6, %v6673_v52 }
 0x407   :  { %v6675_v33 = vpop.f32.mrf.mxu0  ;;  %v7341_v56 = vadd.f32 %v7247_v27, %v12826_v3  ;;  %v7349_v12 = vadd.f32 %v7325_v43, %v11728_v16  ;;  %v6728_v9 = vpop.f32.mrf.mxu1 }
 0x408   :  { %6990 = vmatmul.mubr.bf16.gmra.mxu0 %v10181_v59  ;;  %v7250_v19 = vsel %vm1044_vm1, %v7248_v44, %v7249_v5  ;;  %v7326_v13 = vsel %vm1044_vm1, %v7249_v5, 0.0  ;;  %7043 = vmatmul.mubr.bf16.gmra.mxu1 %v10205_v20  ;;  %v6729_v36 = vadd.f32 %v6728_v9, %v6675_v33  ;;  %v7269_v44 = vrot.slane %v6727_v61, 1 }
 0x409   :  { %v6677_v63 = vpop.f32.mrf.mxu0  ;;  %v7415_v39 = vadd.f32 %v7378_v51, %v7341_v56  ;;  %v7423_v46 = vadd.f32 %v7378_v51, %v7349_v12  ;;  %v7342_v42 = vadd.f32 %v7250_v19, %v11719_v34  ;;  %v7350_v16 = vadd.f32 %v7326_v13, %v11737_v53  ;;  %v6730_v2 = vpop.f32.mrf.mxu1 }
 0x40a   :  { %v6731_v29 = vadd.f32 %v6730_v2, %v6677_v63  ;;  %v7272_v5 = vrot.slane %v6729_v36, 1 }
 0x40b   :  { %v6679_v24 = vpop.f32.mrf.mxu0  ;;  %v7447_v59 = vmax.f32 %v7415_v39, 0.0  ;;  %v7455_v10 = vmax.f32 %v7423_v46, 0.0  ;;  %v7416_v41 = vadd.f32 %v7382_v62, %v7342_v42  ;;  %v7424_v21 = vadd.f32 %v7382_v62, %v7350_v16  ;;  %v6732_v54 = vpop.f32.mrf.mxu1 }
 0x40c   :  { %v7270_v52 = vrot.slane %v6731_v29, 1  ;;  %v6733_v6 = vadd.f32 %v6732_v54, %v6679_v24 }
 0x40d   :  { %v7479_v20 = vadd.f32 %v7455_v10, %v7447_v59  ;;  %v7448_v27 = vmax.f32 %v7416_v41, 0.0  ;;  %v7456_v43 = vmax.f32 %v7424_v21, 0.0 }
 0x40e   :  { %v7271_v34 = vsel %vm1044_vm1, %v7269_v44, %v7270_v52  ;;  %v7333_v53 = vsel %vm1044_vm1, %v7270_v52, 0.0  ;;  %v7273_v3 = vrot.slane %v6733_v6, 1 }
 0x40f   :  { %v7480_v33 = vrot.slane %v7479_v20, 4  ;;  %v7486_v56 = vadd.f32 %v7456_v43, %v7448_v27  ;;  %v7357_v12 = vadd.f32 %v7271_v34, %v11749_v11  ;;  %v7365_v9 = vadd.f32 %v7333_v53, %v11772_v55 }
 0x410   :  { %v7274_v19 = vsel %vm1044_vm1, %v7272_v5, %v7273_v3  ;;  %v7334_v13 = vsel %vm1044_vm1, %v7273_v3, 0.0  ;;  %v12633_v5 = vld [vmem:[%s12765_s6] sm:$0xff] }
 0x411   :  { %v7481_v61 = vadd.f32 %v7480_v33, %v7479_v20  ;;  %v7487_v63 = vrot.slane %v7486_v56, 4  ;;  %v7431_v39 = vadd.f32 %v7378_v51, %v7357_v12  ;;  %v7439_v46 = vadd.f32 %v7378_v51, %v7365_v9 }
 0x412   :  { %v7358_v42 = vadd.f32 %v7274_v19, %v11763_v35  ;;  %v7366_v16 = vadd.f32 %v7334_v13, %v11781_v60 }
 0x413   :  { %v7463_v2 = vmax.f32 %v7431_v39, 0.0  ;;  %v7471_v36 = vmax.f32 %v7439_v46, 0.0  ;;  %v7488_v29 = vadd.f32 %v7487_v63, %v7486_v56  ;;  %v7482_v11 = vrot.slane %v7481_v61, 2 }
 0x414   :  { %v7432_v24 = vadd.f32 %v7382_v62, %v7358_v42  ;;  %v7440_v59 = vadd.f32 %v7382_v62, %v7366_v16  ;;  %v7596_v56 = vrot.slane %v12633_v5, %v12825_v1 }
 0x415   :  { %v7535_v10 = vadd.f32 %v7471_v36, %v7463_v2  ;;  %v7489_v54 = vrot.slane %v7488_v29, 2  ;;  %v7483_v52 = vadd.f32 %v7482_v11, %v7481_v61  ;;  %v7600_v61 = vrot.slane %v12633_v5, %v12827_v28 }
 0x416   :  { %v7464_v55 = vmax.f32 %v7432_v24, 0.0  ;;  %v7472_v41 = vmax.f32 %v7440_v59, 0.0 }
 0x417   :  { %v7536_v21 = vrot.slane %v7535_v10, 4  ;;  %v7490_v27 = vadd.f32 %v7489_v54, %v7488_v29  ;;  %v7484_v43 = vrot.slane %v7483_v52, 1 }
 0x418   :  { %v7542_v44 = vadd.f32 %v7472_v41, %v7464_v55 }
 0x419   :  { %v7537_v6 = vadd.f32 %v7536_v21, %v7535_v10  ;;  %v7491_v53 = vrot.slane %v7490_v27, 1  ;;  %v7485_v33 = vadd.f32 %v7484_v43, %v7483_v52 }
 0x41a   :  { %v7543_v20 = vrot.slane %v7542_v44, 4 }
 0x41b   :  { %v7538_v51 = vrot.slane %v7537_v6, 2  ;;  %v7492_v13 = vadd.f32 %v7491_v53, %v7490_v27  ;;  %v7633_v39 = vmul.f32 %v7596_v56, %v7485_v33 }
 0x41c   :  { %v7544_v35 = vadd.f32 %v7543_v20, %v7542_v44 }
 0x41d   :  { %v7539_v60 = vadd.f32 %v7538_v51, %v7537_v6  ;;  %v7634_v2 = vmul.f32 %v7600_v61, %v7492_v13  ;;  %v12829_v13 = vld [vmem:[#allocation8_spill] sm:$0xff] }
 0x41e   :  { %v7545_v62 = vrot.slane %v7544_v35, 2 }
 0x41f   :  { %v7540_v34 = vrot.slane %v7539_v60, 1 }
 0x420   :  { %v7546_v3 = vadd.f32 %v7545_v62, %v7544_v35 }
 0x421   :  { %v7541_v12 = vadd.f32 %v7540_v34, %v7539_v60  ;;  %v12828_v60 = vld [vmem:[#allocation6_spill] sm:$0xff] }
 0x422   :  { %v7547_v9 = vrot.slane %v7546_v3, 1  ;;  %v7386_v62 = vrot.slane %v12606_v18, %v12828_v60 }
 0x423   :  { %v7641_v19 = vmul.f32 %v7596_v56, %v7541_v12 }
 0x424   :  { %v7548_v63 = vadd.f32 %v7547_v9, %v7546_v3 }
 0x425   :  { %v7665_v46 = vrot.slane %v7641_v19, 7 }
 0x426   :  { %v7642_v42 = vmul.f32 %v7600_v61, %v7548_v63  ;;  %v7390_v61 = vrot.slane %v12606_v18, %v12829_v13 }
 0x427   :  { %v7667_v16 = vsel %vm7666_vm2, %v7665_v46, %v7633_v39 }
 0x428   :  { %v7668_v36 = vrot.slane %v7642_v42, 7  ;;  %v7691_v1 = vsel %vm7690_vm3, %v7667_v16, 0.0 }
 0x42a   :  { %v7669_v29 = vsel %vm7666_vm2, %v7668_v36, %v7634_v2 }
 0x42b   :  { %v7692_v24 = vsel %vm7690_vm3, %v7669_v29, 0.0 }
 0x42c   :  { %v12643_v59 = vadd.f32 %v7692_v24, %v7691_v1 }
 0x43e   :  { %v6769_v11 = vpop.f32.mrf.mxu0  ;;  %v6822_v28 = vpop.f32.mrf.mxu1 }
 0x43f   :  { %v6823_v41 = vadd.f32 %v6822_v28, %v6769_v11 }
 0x440   :  { %v6771_v10 = vpop.f32.mrf.mxu0  ;;  %v6824_v55 = vpop.f32.mrf.mxu1 }
 0x441   :  { %v6825_v44 = vadd.f32 %v6824_v55, %v6771_v10  ;;  %v7251_v51 = vrot.slane %v6823_v41, 1 }
 0x442   :  { %v6773_v21 = vpop.f32.mrf.mxu0  ;;  %v6826_v54 = vpop.f32.mrf.mxu1 }
 0x443   :  { %v6827_v52 = vadd.f32 %v6826_v54, %v6773_v21  ;;  %v7254_v53 = vrot.slane %v6825_v44, 1 }
 0x444   :  { %v6775_v6 = vpop.f32.mrf.mxu0  ;;  %v6828_v20 = vpop.f32.mrf.mxu1 }
 0x445   :  { %v7252_v27 = vrot.slane %v6827_v52, 1  ;;  %v6829_v35 = vadd.f32 %v6828_v20, %v6775_v6 }
 0x446   :  { %v6779_v43 = vpop.f32.mrf.mxu0  ;;  %v6832_v34 = vpop.f32.mrf.mxu1 }
 0x447   :  { %v7253_v3 = vsel %vm1044_vm1, %v7251_v51, %v7252_v27  ;;  %v7327_v33 = vsel %vm1044_vm1, %v7252_v27, 0.0  ;;  %v7255_v56 = vrot.slane %v6829_v35, 1  ;;  %v6833_v42 = vadd.f32 %v6832_v34, %v6779_v43 }
 0x448   :  { %v6781_v12 = vpop.f32.mrf.mxu0  ;;  %v7343_v9 = vadd.f32 %v7253_v3, %v11937_v8  ;;  %v7351_v19 = vadd.f32 %v7327_v33, %v11960_v58  ;;  %v6834_v63 = vpop.f32.mrf.mxu1 }
 0x449   :  { %v7256_v39 = vsel %vm1044_vm1, %v7254_v53, %v7255_v56  ;;  %v7328_v46 = vsel %vm1044_vm1, %v7255_v56, 0.0  ;;  %v6835_v8 = vadd.f32 %v6834_v63, %v6781_v12  ;;  %v7275_v54 = vrot.slane %v6833_v42, 1 }
 0x44a   :  { %v6783_v16 = vpop.f32.mrf.mxu0  ;;  %v7417_v2 = vadd.f32 %v7386_v62, %v7343_v9  ;;  %v7425_v36 = vadd.f32 %v7386_v62, %v7351_v19  ;;  %v7344_v29 = vadd.f32 %v7256_v39, %v11951_v14  ;;  %v7352_v1 = vadd.f32 %v7328_v46, %v11969_v48  ;;  %v6836_v24 = vpop.f32.mrf.mxu1 }
 0x44b   :  { %v6837_v11 = vadd.f32 %v6836_v24, %v6783_v16  ;;  %v7278_v27 = vrot.slane %v6835_v8, 1 }
 0x44c   :  { %v6785_v58 = vpop.f32.mrf.mxu0  ;;  %v7449_v28 = vmax.f32 %v7417_v2, 0.0  ;;  %v7457_v10 = vmax.f32 %v7425_v36, 0.0  ;;  %v7418_v55 = vadd.f32 %v7390_v61, %v7344_v29  ;;  %v7426_v41 = vadd.f32 %v7390_v61, %v7352_v1  ;;  %v6838_v21 = vpop.f32.mrf.mxu1 }
 0x44d   :  { %v7276_v44 = vrot.slane %v6837_v11, 1  ;;  %v6839_v52 = vadd.f32 %v6838_v21, %v6785_v58 }
 0x44e   :  { %v7493_v6 = vadd.f32 %v7457_v10, %v7449_v28  ;;  %v7450_v20 = vmax.f32 %v7418_v55, 0.0  ;;  %v7458_v51 = vmax.f32 %v7426_v41, 0.0 }
 0x44f   :  { %v7277_v14 = vsel %vm1044_vm1, %v7275_v54, %v7276_v44  ;;  %v7335_v48 = vsel %vm1044_vm1, %v7276_v44, 0.0  ;;  %v7279_v35 = vrot.slane %v6839_v52, 1 }
 0x450   :  { %v7494_v43 = vrot.slane %v7493_v6, 4  ;;  %v7500_v34 = vadd.f32 %v7458_v51, %v7450_v20  ;;  %v7359_v53 = vadd.f32 %v7277_v14, %v11981_v23  ;;  %v7367_v3 = vadd.f32 %v7335_v48, %v12004_v49 }
 0x451   :  { %v7280_v33 = vsel %vm1044_vm1, %v7278_v27, %v7279_v35  ;;  %v7336_v56 = vsel %vm1044_vm1, %v7279_v35, 0.0  ;;  %v7604_v51 = vrot.slane %v12633_v5, %v12828_v60 }
 0x452   :  { %v7495_v12 = vadd.f32 %v7494_v43, %v7493_v6  ;;  %v7501_v9 = vrot.slane %v7500_v34, 4  ;;  %v7433_v19 = vadd.f32 %v7386_v62, %v7359_v53  ;;  %v7441_v63 = vadd.f32 %v7386_v62, %v7367_v3 }
 0x453   :  { %v7360_v39 = vadd.f32 %v7280_v33, %v11995_v26  ;;  %v7368_v46 = vadd.f32 %v7336_v56, %v12013_v57  ;;  %v7608_v43 = vrot.slane %v12633_v5, %v12829_v13 }
 0x454   :  { %v7465_v42 = vmax.f32 %v7433_v19, 0.0  ;;  %v7473_v16 = vmax.f32 %v7441_v63, 0.0  ;;  %v7502_v2 = vadd.f32 %v7501_v9, %v7500_v34  ;;  %v7496_v23 = vrot.slane %v7495_v12, 2 }
 0x455   :  { %v7434_v36 = vadd.f32 %v7390_v61, %v7360_v39  ;;  %v7442_v29 = vadd.f32 %v7390_v61, %v7368_v46 }
 0x456   :  { %v7549_v1 = vadd.f32 %v7473_v16, %v7465_v42  ;;  %v7503_v11 = vrot.slane %v7502_v2, 2  ;;  %v7497_v28 = vadd.f32 %v7496_v23, %v7495_v12  ;;  %v12830_v23 = vld [vmem:[#allocation4_spill] sm:$0xff] }
 0x457   :  { %v7466_v49 = vmax.f32 %v7434_v36, 0.0  ;;  %v7474_v24 = vmax.f32 %v7442_v29, 0.0 }
 0x458   :  { %v7550_v8 = vrot.slane %v7549_v1, 4  ;;  %v7504_v41 = vadd.f32 %v7503_v11, %v7502_v2  ;;  %v7498_v21 = vrot.slane %v7497_v28, 1 }
 0x459   :  { %v7556_v58 = vadd.f32 %v7474_v24, %v7466_v49 }
 0x45a   :  { %v7551_v10 = vadd.f32 %v7550_v8, %v7549_v1  ;;  %v7505_v52 = vrot.slane %v7504_v41, 1  ;;  %v7499_v61 = vadd.f32 %v7498_v21, %v7497_v28  ;;  %v7393_v1 = vsub.s32 4, %v12830_v23 }
 0x45b   :  { %v7557_v55 = vrot.slane %v7556_v58, 4 }
 0x45c   :  { %v7552_v62 = vrot.slane %v7551_v10, 2  ;;  %v7506_v48 = vadd.f32 %v7505_v52, %v7504_v41  ;;  %v7635_v34 = vmul.f32 %v7604_v51, %v7499_v61 }
 0x45d   :  { %v7558_v26 = vadd.f32 %v7557_v55, %v7556_v58 }
 0x45e   :  { %v7553_v57 = vadd.f32 %v7552_v62, %v7551_v10  ;;  %v7636_v56 = vmul.f32 %v7608_v43, %v7506_v48  ;;  %v7394_v62 = vrot.slane %v12606_v18, %v7393_v1 }
 0x45f   :  { %v7559_v54 = vrot.slane %v7558_v26, 2 }
 0x460   :  { %v7554_v44 = vrot.slane %v7553_v57, 1 }
 0x461   :  { %v7560_v6 = vadd.f32 %v7559_v54, %v7558_v26 }
 0x462   :  { %v7555_v20 = vadd.f32 %v7554_v44, %v7553_v57 }
 0x463   :  { %v7561_v27 = vrot.slane %v7560_v6, 1 }
 0x464   :  { %v7643_v14 = vmul.f32 %v7604_v51, %v7555_v20 }
 0x465   :  { %v7562_v35 = vadd.f32 %v7561_v27, %v7560_v6 }
 0x466   :  { %v7670_v53 = vrot.slane %v7643_v14, 7 }
 0x467   :  { %v7644_v3 = vmul.f32 %v7608_v43, %v7562_v35 }
 0x468   :  { %v7671_v33 = vsel %vm7666_vm2, %v7670_v53, %v7635_v34 }
 0x469   :  { %v7672_v12 = vrot.slane %v7644_v3, 7  ;;  %v7694_v9 = vsel %vm7690_vm3, %v7671_v33, 0.0 }
 0x46a   :  { %v7695_v19 = vadd.f32 %v7694_v9, %v12643_v59  ;;  %v7397_v59 = vsub.s32 5, %v12830_v23 }
 0x46b   :  { %v7673_v60 = vsel %vm7666_vm2, %v7672_v12, %v7636_v56 }
 0x46c   :  { %v7696_v63 = vsel %vm7690_vm3, %v7673_v60, 0.0  ;;  %v7398_v61 = vrot.slane %v12606_v18, %v7397_v59 }
 0x46d   :  { %v12674_v39 = vadd.f32 %v7696_v63, %v7695_v19 }
 0x47f   :  { %v6875_v46 = vpop.f32.mrf.mxu0  ;;  %v6928_v42 = vpop.f32.mrf.mxu1 }
 0x480   :  { %v6929_v2 = vadd.f32 %v6928_v42, %v6875_v46 }
 0x481   :  { %v6877_v13 = vpop.f32.mrf.mxu0  ;;  %v6930_v16 = vpop.f32.mrf.mxu1 }
 0x482   :  { %v6931_v49 = vadd.f32 %v6930_v16, %v6877_v13  ;;  %v7257_v58 = vrot.slane %v6929_v2, 1 }
 0x483   :  { %v6879_v36 = vpop.f32.mrf.mxu0  ;;  %v6932_v29 = vpop.f32.mrf.mxu1 }
 0x484   :  { %v6933_v24 = vadd.f32 %v6932_v29, %v6879_v36  ;;  %v7260_v26 = vrot.slane %v6931_v49, 1 }
 0x485   :  { %v6881_v8 = vpop.f32.mrf.mxu0  ;;  %v6934_v11 = vpop.f32.mrf.mxu1 }
 0x486   :  { %v7258_v28 = vrot.slane %v6933_v24, 1  ;;  %v6935_v10 = vadd.f32 %v6934_v11, %v6881_v8 }
 0x487   :  { %v6885_v55 = vpop.f32.mrf.mxu0  ;;  %v6938_v41 = vpop.f32.mrf.mxu1 }
 0x488   :  { %v7259_v21 = vsel %vm1044_vm1, %v7257_v58, %v7258_v28  ;;  %v7329_v57 = vsel %vm1044_vm1, %v7258_v28, 0.0  ;;  %v7261_v54 = vrot.slane %v6935_v10, 1  ;;  %v6939_v14 = vadd.f32 %v6938_v41, %v6885_v55 }
 0x489   :  { %v6887_v44 = vpop.f32.mrf.mxu0  ;;  %v7345_v52 = vadd.f32 %v7259_v21, %v12169_v0  ;;  %v7353_v6 = vadd.f32 %v7329_v57, %v12192_v47  ;;  %v6940_v20 = vpop.f32.mrf.mxu1 }
 0x48a   :  { %v7262_v51 = vsel %vm1044_vm1, %v7260_v26, %v7261_v54  ;;  %v7330_v27 = vsel %vm1044_vm1, %v7261_v54, 0.0  ;;  %v6941_v3 = vadd.f32 %v6940_v20, %v6887_v44  ;;  %v7281_v63 = vrot.slane %v6939_v14, 1 }
 0x48b   :  { %v6889_v48 = vpop.f32.mrf.mxu0  ;;  %v7419_v35 = vadd.f32 %v7394_v62, %v7345_v52  ;;  %v7427_v43 = vadd.f32 %v7394_v62, %v7353_v6  ;;  %v7346_v34 = vadd.f32 %v7262_v51, %v12183_v22  ;;  %v7354_v53 = vadd.f32 %v7330_v27, %v12201_v37  ;;  %v6942_v0 = vpop.f32.mrf.mxu1 }
 0x48c   :  { %v6943_v47 = vadd.f32 %v6942_v0, %v6889_v48  ;;  %v7284_v36 = vrot.slane %v6941_v3, 1 }
 0x48d   :  { %v6891_v33 = vpop.f32.mrf.mxu0  ;;  %v7451_v56 = vmax.f32 %v7419_v35, 0.0  ;;  %v7459_v12 = vmax.f32 %v7427_v43, 0.0  ;;  %v7420_v9 = vadd.f32 %v7398_v61, %v7346_v34  ;;  %v7428_v19 = vadd.f32 %v7398_v61, %v7354_v53  ;;  %v6944_v60 = vpop.f32.mrf.mxu1 }
 0x48e   :  { %v7282_v46 = vrot.slane %v6943_v47, 1  ;;  %v6945_v42 = vadd.f32 %v6944_v60, %v6891_v33 }
 0x48f   :  { %v7507_v13 = vadd.f32 %v7459_v12, %v7451_v56  ;;  %v7452_v16 = vmax.f32 %v7420_v9, 0.0  ;;  %v7460_v2 = vmax.f32 %v7428_v19, 0.0  ;;  %v7612_v19 = vrot.slane %v12633_v5, %v7393_v1 }
 0x490   :  { %v7283_v22 = vsel %vm1044_vm1, %v7281_v63, %v7282_v46  ;;  %v7337_v37 = vsel %vm1044_vm1, %v7282_v46, 0.0  ;;  %v7285_v29 = vrot.slane %v6945_v42, 1 }
 0x491   :  { %v7508_v49 = vrot.slane %v7507_v13, 4  ;;  %v7514_v24 = vadd.f32 %v7460_v2, %v7452_v16  ;;  %v7361_v8 = vadd.f32 %v7283_v22, %v12213_v25  ;;  %v7369_v11 = vadd.f32 %v7337_v37, %v12236_v4 }
 0x492   :  { %v7286_v58 = vsel %vm1044_vm1, %v7284_v36, %v7285_v29  ;;  %v7338_v28 = vsel %vm1044_vm1, %v7285_v29, 0.0 }
 0x493   :  { %v7509_v10 = vadd.f32 %v7508_v49, %v7507_v13  ;;  %v7515_v55 = vrot.slane %v7514_v24, 4  ;;  %v7435_v41 = vadd.f32 %v7394_v62, %v7361_v8  ;;  %v7443_v26 = vadd.f32 %v7394_v62, %v7369_v11 }
 0x494   :  { %v7362_v21 = vadd.f32 %v7286_v58, %v12227_v31  ;;  %v7370_v57 = vadd.f32 %v7338_v28, %v12245_v38  ;;  %v7616_v13 = vrot.slane %v12633_v5, %v7397_v59 }
 0x495   :  { %v7467_v54 = vmax.f32 %v7435_v41, 0.0  ;;  %v7475_v44 = vmax.f32 %v7443_v26, 0.0  ;;  %v7516_v52 = vadd.f32 %v7515_v55, %v7514_v24  ;;  %v7510_v25 = vrot.slane %v7509_v10, 2 }
 0x496   :  { %v7436_v6 = vadd.f32 %v7398_v61, %v7362_v21  ;;  %v7444_v20 = vadd.f32 %v7398_v61, %v7370_v57  ;;  %v7401_v21 = vsub.s32 6, %v12830_v23 }
 0x497   :  { %v7563_v51 = vadd.f32 %v7475_v44, %v7467_v54  ;;  %v7517_v48 = vrot.slane %v7516_v52, 2  ;;  %v7511_v43 = vadd.f32 %v7510_v25, %v7509_v10 }
 0x498   :  { %v7468_v4 = vmax.f32 %v7436_v6, 0.0  ;;  %v7476_v27 = vmax.f32 %v7444_v20, 0.0 }
 0x499   :  { %v7564_v14 = vrot.slane %v7563_v51, 4  ;;  %v7518_v0 = vadd.f32 %v7517_v48, %v7516_v52  ;;  %v7512_v3 = vrot.slane %v7511_v43, 1 }
 0x49a   :  { %v7570_v35 = vadd.f32 %v7476_v27, %v7468_v4  ;;  %v7402_v4 = vrot.slane %v12606_v18, %v7401_v21 }
 0x49b   :  { %v7565_v34 = vadd.f32 %v7564_v14, %v7563_v51  ;;  %v7519_v12 = vrot.slane %v7518_v0, 1  ;;  %v7513_v9 = vadd.f32 %v7512_v3, %v7511_v43 }
 0x49c   :  { %v7571_v53 = vrot.slane %v7570_v35, 4 }
 0x49d   :  { %v7566_v62 = vrot.slane %v7565_v34, 2  ;;  %v7520_v46 = vadd.f32 %v7519_v12, %v7518_v0  ;;  %v7637_v16 = vmul.f32 %v7612_v19, %v7513_v9 }
 0x49e   :  { %v7572_v31 = vadd.f32 %v7571_v53, %v7570_v35 }
 0x49f   :  { %v7567_v38 = vadd.f32 %v7566_v62, %v7565_v34  ;;  %v7638_v37 = vmul.f32 %v7616_v13, %v7520_v46 }
 0x4a0   :  { %v7573_v47 = vrot.slane %v7572_v31, 2 }
 0x4a1   :  { %v7568_v33 = vrot.slane %v7567_v38, 1 }
 0x4a2   :  { %v7574_v56 = vadd.f32 %v7573_v47, %v7572_v31 }
 0x4a3   :  { %v7569_v61 = vadd.f32 %v7568_v33, %v7567_v38 }
 0x4a4   :  { %v7575_v60 = vrot.slane %v7574_v56, 1 }
 0x4a5   :  { %v7645_v63 = vmul.f32 %v7612_v19, %v7569_v61 }
 0x4a6   :  { %v7576_v42 = vadd.f32 %v7575_v60, %v7574_v56 }
 0x4a7   :  { %v7674_v2 = vrot.slane %v7645_v63, 7 }
 0x4a8   :  { %v7646_v36 = vmul.f32 %v7616_v13, %v7576_v42 }
 0x4a9   :  { %v7675_v22 = vsel %vm7666_vm2, %v7674_v2, %v7637_v16 }
 0x4aa   :  { %v7676_v29 = vrot.slane %v7646_v36, 7  ;;  %v7698_v49 = vsel %vm7690_vm3, %v7675_v22, 0.0 }
 0x4ab   :  { %v7699_v24 = vadd.f32 %v7698_v49, %v12674_v39  ;;  %v7405_v39 = vsub.s32 7, %v12830_v23  ;;  %v7710_v23 = vstv %s12767_s7 }
 0x4ac   :  { %v7677_v1 = vsel %vm7666_vm2, %v7676_v29, %v7638_v37 }
 0x4ad   :  { %v7700_v8 = vsel %vm7690_vm3, %v7677_v1, 0.0  ;;  %v7406_v0 = vrot.slane %v12606_v18, %v7405_v39 }
 0x4ae   :  { %v12711_v11 = vadd.f32 %v7700_v8, %v7699_v24 }
 0x4c0   :  { %v6981_v58 = vpop.f32.mrf.mxu0  ;;  %v7034_v28 = vpop.f32.mrf.mxu1 }
 0x4c1   :  { %v7035_v55 = vadd.f32 %v7034_v28, %v6981_v58 }
 0x4c2   :  { %v6983_v59 = vpop.f32.mrf.mxu0  ;;  %v7036_v10 = vpop.f32.mrf.mxu1 }
 0x4c3   :  { %v7037_v57 = vadd.f32 %v7036_v10, %v6983_v59  ;;  %v7263_v6 = vrot.slane %v7035_v55, 1 }
 0x4c4   :  { %v6985_v41 = vpop.f32.mrf.mxu0  ;;  %v7038_v26 = vpop.f32.mrf.mxu1 }
 0x4c5   :  { %v7039_v54 = vadd.f32 %v7038_v26, %v6985_v41  ;;  %v7266_v14 = vrot.slane %v7037_v57, 1 }
 0x4c6   :  { %v6987_v44 = vpop.f32.mrf.mxu0  ;;  %v7040_v52 = vpop.f32.mrf.mxu1 }
 0x4c7   :  { %v7264_v20 = vrot.slane %v7039_v54, 1  ;;  %v7041_v25 = vadd.f32 %v7040_v52, %v6987_v44 }
 0x4c8   :  { %v6991_v51 = vpop.f32.mrf.mxu0  ;;  %v7044_v27 = vpop.f32.mrf.mxu1 }
 0x4c9   :  { %v7265_v48 = vsel %vm1044_vm1, %v7263_v6, %v7264_v20  ;;  %v7331_v35 = vsel %vm1044_vm1, %v7264_v20, 0.0  ;;  %v7267_v43 = vrot.slane %v7041_v25, 1  ;;  %v7045_v47 = vadd.f32 %v7044_v27, %v6991_v51 }
 0x4ca   :  { %v6993_v34 = vpop.f32.mrf.mxu0  ;;  %v7347_v53 = vadd.f32 %v7265_v48, %v12401_v32  ;;  %v7355_v62 = vadd.f32 %v7331_v35, %v12424_v45  ;;  %v7046_v31 = vpop.f32.mrf.mxu1 }
 0x4cb   :  { %v7268_v3 = vsel %vm1044_vm1, %v7266_v14, %v7267_v43  ;;  %v7332_v38 = vsel %vm1044_vm1, %v7267_v43, 0.0  ;;  %v7047_v19 = vadd.f32 %v7046_v31, %v6993_v34  ;;  %v7287_v16 = vrot.slane %v7045_v47, 1 }
 0x4cc   :  { %v6995_v33 = vpop.f32.mrf.mxu0  ;;  %v7421_v56 = vadd.f32 %v7402_v4, %v7347_v53  ;;  %v7429_v12 = vadd.f32 %v7402_v4, %v7355_v62  ;;  %v7348_v61 = vadd.f32 %v7268_v3, %v12415_v50  ;;  %v7356_v9 = vadd.f32 %v7332_v38, %v12433_v17  ;;  %v7048_v32 = vpop.f32.mrf.mxu1 }
 0x4cd   :  { %v7049_v45 = vadd.f32 %v7048_v32, %v6995_v33  ;;  %v7290_v49 = vrot.slane %v7047_v19, 1 }
 0x4ce   :  { %v6997_v60 = vpop.f32.mrf.mxu0  ;;  %v7453_v63 = vmax.f32 %v7421_v56, 0.0  ;;  %v7461_v46 = vmax.f32 %v7429_v12, 0.0  ;;  %v7422_v18 = vadd.f32 %v7406_v0, %v7348_v61  ;;  %v7430_v42 = vadd.f32 %v7406_v0, %v7356_v9  ;;  %v7050_v13 = vpop.f32.mrf.mxu1 }
 0x4cf   :  { %v7288_v2 = vrot.slane %v7049_v45, 1  ;;  %v7051_v36 = vadd.f32 %v7050_v13, %v6997_v60  ;;  %v7620_v61 = vrot.slane %v12633_v5, %v7401_v21  ;;  %v7624_v60 = vrot.slane %v12633_v5, %v7405_v39  ;;  %v7708_v5 = vld [vmem:[%s12766_s1] sm:$0x3] }
 0x4d0   :  { %v7521_v22 = vadd.f32 %v7461_v46, %v7453_v63  ;;  %v7454_v37 = vmax.f32 %v7422_v18, 0.0  ;;  %v7462_v29 = vmax.f32 %v7430_v42, 0.0  ;;  %v7711_v39 = vmul.f32 %v7710_v23, %v7708_v5 }
 0x4d1   :  { %v7289_v50 = vsel %vm1044_vm1, %v7287_v16, %v7288_v2  ;;  %v7339_v17 = vsel %vm1044_vm1, %v7288_v2, 0.0  ;;  %v7291_v24 = vrot.slane %v7051_v36, 1 }
 0x4d2   :  { %v7522_v1 = vrot.slane %v7521_v22, 4  ;;  %v7528_v8 = vadd.f32 %v7462_v29, %v7454_v37  ;;  %v7363_v58 = vadd.f32 %v7289_v50, %v12445_v40  ;;  %v7371_v28 = vadd.f32 %v7339_v17, %v12468_v30 }
 0x4d3   :  { %v7292_v59 = vsel %vm1044_vm1, %v7290_v49, %v7291_v24  ;;  %v7340_v10 = vsel %vm1044_vm1, %v7291_v24, 0.0 }
 0x4d4   :  { %v7523_v55 = vadd.f32 %v7522_v1, %v7521_v22  ;;  %v7529_v41 = vrot.slane %v7528_v8, 4  ;;  %v7437_v26 = vadd.f32 %v7402_v4, %v7363_v58  ;;  %v7445_v57 = vadd.f32 %v7402_v4, %v7371_v28 }
 0x4d5   :  { %v7364_v54 = vadd.f32 %v7292_v59, %v12459_v7  ;;  %v7372_v44 = vadd.f32 %v7340_v10, %v12477_v15 }
 0x4d6   :  { %v7469_v52 = vmax.f32 %v7437_v26, 0.0  ;;  %v7477_v6 = vmax.f32 %v7445_v57, 0.0  ;;  %v7530_v20 = vadd.f32 %v7529_v41, %v7528_v8  ;;  %v7524_v40 = vrot.slane %v7523_v55, 2 }
 0x4d7   :  { %v7438_v25 = vadd.f32 %v7406_v0, %v7364_v54  ;;  %v7446_v51 = vadd.f32 %v7406_v0, %v7372_v44 }
 0x4d8   :  { %v7577_v27 = vadd.f32 %v7477_v6, %v7469_v52  ;;  %v7531_v43 = vrot.slane %v7530_v20, 2  ;;  %v7525_v53 = vadd.f32 %v7524_v40, %v7523_v55 }
 0x4d9   :  { %v7470_v30 = vmax.f32 %v7438_v25, 0.0  ;;  %v7478_v14 = vmax.f32 %v7446_v51, 0.0 }
 0x4da   :  { %v7578_v48 = vrot.slane %v7577_v27, 4  ;;  %v7532_v7 = vadd.f32 %v7531_v43, %v7530_v20  ;;  %v7526_v15 = vrot.slane %v7525_v53, 1 }
 0x4db   :  { %v7584_v35 = vadd.f32 %v7478_v14, %v7470_v30 }
 0x4dc   :  { %v7579_v34 = vadd.f32 %v7578_v48, %v7577_v27  ;;  %v7533_v33 = vrot.slane %v7532_v7, 1  ;;  %v7527_v0 = vadd.f32 %v7526_v15, %v7525_v53 }
 0x4dd   :  { %v7585_v62 = vrot.slane %v7584_v35, 4 }
 0x4de   :  { %v7580_v4 = vrot.slane %v7579_v34, 2  ;;  %v7534_v19 = vadd.f32 %v7533_v33, %v7532_v7  ;;  %v7639_v63 = vmul.f32 %v7620_v61, %v7527_v0 }
 0x4df   :  { %v7586_v31 = vadd.f32 %v7585_v62, %v7584_v35 }
 0x4e0   :  { %v7581_v3 = vadd.f32 %v7580_v4, %v7579_v34  ;;  %v7640_v13 = vmul.f32 %v7624_v60, %v7534_v19 }
 0x4e1   :  { %v7587_v38 = vrot.slane %v7586_v31, 2 }
 0x4e2   :  { %v7582_v47 = vrot.slane %v7581_v3, 1 }
 0x4e3   :  { %v7588_v56 = vadd.f32 %v7587_v38, %v7586_v31 }
 0x4e4   :  { %v7583_v12 = vadd.f32 %v7582_v47, %v7581_v3 }
 0x4e5   :  { %v7589_v9 = vrot.slane %v7588_v56, 1 }
 0x4e6   :  { %v7647_v32 = vmul.f32 %v7620_v61, %v7583_v12 }
 0x4e7   :  { %v7590_v45 = vadd.f32 %v7589_v9, %v7588_v56 }
 0x4e8   :  { %v7678_v46 = vrot.slane %v7647_v32, 7 }
 0x4e9   :  { %v7648_v18 = vmul.f32 %v7624_v60, %v7590_v45 }
 0x4ea   :  { %v7679_v42 = vsel %vm7666_vm2, %v7678_v46, %v7639_v63 }
 0x4eb   :  { %v7680_v16 = vrot.slane %v7648_v18, 7  ;;  %v7702_v2 = vsel %vm7690_vm3, %v7679_v42, 0.0 }
 0x4ec   :  { %v7703_v36 = vadd.f32 %v7702_v2, %v12711_v11  ;;  %v7714_v11 = vstv %s12768_s8 }
 0x4ed   :  { %v7681_v21 = vsel %vm7666_vm2, %v7680_v16, %v7640_v13 }
 0x4ee   :  { %v7704_v22 = vsel %vm7690_vm3, %v7681_v21, 0.0 }
 0x4ef   :  { %v7705_v37 = vadd.f32 %v7704_v22, %v7703_v36 }
 0x4f1   :  { %7706 = vadd.xlane.f32.xlu0 %v7705_v37 }
 0x57a   :  { %v7707_v29 = vpop.xlane.xlu0 %7706 }
 0x57b   :  { %v7712_v49 = vadd.f32 %v7711_v39, %v7707_v29 }
 0x57d   :  { %v7715_v50 = vadd.f32 %v7714_v11, %v7712_v49 }
 0x57f   :  { %7717 = vst.msk [vmem:[%s12769_s9] sm:$0x3] %vm7716_vm4, %v7715_v50 }

</bundles_post_ra>
